<compile_context>
chip_gen: v5e
topology: v5e:2x2
jax: 0.10.0
libtpu: 0.0.40
codegen_flags: <defaults>
</compile_context>

<pallas_src>
import jax
import jax.numpy as jnp
from jax.experimental import pallas as pl
from jax.experimental.pallas import tpu as pltpu

IN_DIM = 1024
HID_DIM = 512
LANE = 128

# Constant-index weight/bias blocks never change -> a single pipeline buffer
# is enough (saves the duplicate VMEM buffer). Detected once at import time.
_HAS_BUFFERED = hasattr(pl, "Buffered")


def _round_up(a, b):
    return ((a + b - 1) // b) * b


def _pick_block_b(B):
    """MXU-aligned batch tile: >=128 rows, >=2 grid steps when B>128, <=512."""
    if B <= 128:
        return 128
    return min(512, _round_up(pl.cdiv(B, 2), LANE))


def _mlp_kernel(x_ref, w1_ref, b1_ref, w2_ref, b2_ref, o_ref):
    # x_ref:  (tb, 1024)      w1_ref: (1024, 512)   b1_ref: (1, 512)
    # w2_ref: (512, n_pad)    b2_ref: (1, n_pad)    o_ref:  (tb, n_pad)
    x = x_ref[...]
    if x.dtype != w1_ref.dtype:            # no-op when the producer emits bf16
        x = x.astype(w1_ref.dtype)

    # Linear(1024, 512) + (Dropout -> identity) + ReLU, f32 accumulation.
    h = jnp.dot(x, w1_ref[...], preferred_element_type=jnp.float32)
    h = jnp.maximum(h + b1_ref[...], 0.0)

    # Linear(512, n_class) + (Dropout -> identity) + ReLU, f32 accumulation.
    o = jnp.dot(h.astype(w2_ref.dtype), w2_ref[...],
                preferred_element_type=jnp.float32)
    o = jnp.maximum(o + b2_ref[...], 0.0)

    o_ref[...] = o.astype(o_ref.dtype)


def prepare_downstream_mlp_params(w1, b1, w2, b2, *, compute_dtype=jnp.bfloat16):
    """One-time weight preprocessing (bf16 cast, lane-dense class padding)."""
    assert w1.shape == (IN_DIM, HID_DIM) and w2.shape[0] == HID_DIM
    n_class = w2.shape[1]
    n_pad = _round_up(max(n_class, LANE), LANE)
    return {
        "w1": w1.astype(compute_dtype),
        "b1": b1.reshape(1, HID_DIM).astype(jnp.float32),
        "w2": jnp.pad(w2, ((0, 0), (0, n_pad - n_class))).astype(compute_dtype),
        "b2": jnp.pad(b2, (0, n_pad - n_class)).reshape(1, n_pad).astype(jnp.float32),
        "n_class": n_class,
        "n_pad": n_pad,
    }


def downstream_mlp_apply(params, x, *, block_b=None, out_dtype=jnp.float32):
    """Fused MLP forward. x: (B, 1024) f32 or bf16 -> (B, n_class) out_dtype."""
    B, D = x.shape
    assert D == IN_DIM
    n_class, n_pad = params["n_class"], params["n_pad"]

    if block_b is None:
        block_b = _pick_block_b(B)
    block_b = max(8, _round_up(block_b, 8))
    grid = (pl.cdiv(B, block_b),)          # ragged last block handled by Pallas

    wkw = {"pipeline_mode": pl.Buffered(1)} if _HAS_BUFFERED else {}

    out = pl.pallas_call(
        _mlp_kernel,
        out_shape=jax.ShapeDtypeStruct((B, n_pad), out_dtype),
        grid_spec=pltpu.PrefetchScalarGridSpec(
            num_scalar_prefetch=0,
            grid=grid,
            in_specs=[
                pl.BlockSpec((block_b, IN_DIM), lambda i: (i, 0)),
                pl.BlockSpec((IN_DIM, HID_DIM), lambda i: (0, 0), **wkw),
                pl.BlockSpec((1, HID_DIM), lambda i: (0, 0), **wkw),
                pl.BlockSpec((HID_DIM, n_pad), lambda i: (0, 0), **wkw),
                pl.BlockSpec((1, n_pad), lambda i: (0, 0), **wkw),
            ],
            out_specs=pl.BlockSpec((block_b, n_pad), lambda i: (i, 0)),
        ),
        compiler_params=pltpu.CompilerParams(
            dimension_semantics=("parallel",),   # shard batch steps across TCs
            vmem_limit_bytes=32 * 1024 * 1024,   # ~6 MiB footprint; safe on v7x
        ),
    )(x, params["w1"], params["b1"], params["w2"], params["b2"])

    return out[:, :n_class]


def downstream_mlp(x, w1, b1, w2, b2, **kwargs):
    """Convenience one-shot wrapper (prefer prepare + apply for repeated use)."""
    return downstream_mlp_apply(prepare_downstream_mlp_params(w1, b1, w2, b2),
                                x, **kwargs)


if __name__ == "__main__":
    key = jax.random.PRNGKey(0)
    k_x, k_w1, k_b1, k_w2, k_b2, k_x2, k_x3 = jax.random.split(key, 7)

    n_class = 10
    batch = 8

    # Parameters laid out as (in, out), matching nn.Linear(1024,512)/(512,n_class).
    w1 = jax.random.normal(k_w1, (IN_DIM, HID_DIM), jnp.float32) * 0.02
    b1 = jax.random.normal(k_b1, (HID_DIM,), jnp.float32) * 0.02
    w2 = jax.random.normal(k_w2, (HID_DIM, n_class), jnp.float32) * 0.02
    b2 = jax.random.normal(k_b2, (n_class,), jnp.float32) * 0.02

    # One-time weight preprocessing, reused across all forward calls.
    params = prepare_downstream_mlp_params(w1, b1, w2, b2)

    # References: bf16-matched (tight) and pure-f32 (loose, sanity).
    def ref_fn(xa):
        h = jnp.maximum(
            jnp.dot(xa.astype(jnp.bfloat16), w1.astype(jnp.bfloat16),
                    preferred_element_type=jnp.float32) + b1, 0.0)
        return jnp.maximum(
            jnp.dot(h.astype(jnp.bfloat16), w2.astype(jnp.bfloat16),
                    preferred_element_type=jnp.float32) + b2, 0.0)

    # Case 1: small batch, f32 input.
    x = jax.random.normal(k_x, (batch, IN_DIM), jnp.float32)
    out = jax.block_until_ready(downstream_mlp_apply(params, x))
    assert out.shape == (batch, n_class)
    ref_f32 = jnp.maximum(jnp.maximum(x @ w1 + b1, 0.0) @ w2 + b2, 0.0)
    assert jnp.allclose(out, ref_fn(x), atol=2e-3, rtol=2e-2)
    assert jnp.allclose(out, ref_f32, atol=5e-2, rtol=5e-2)

    # Case 2: B not divisible by block_b (ragged last block, no host-side pad),
    # producer already emits bf16 x (fast mem-bound path on v6e/v7x).
    x2_f32 = jax.random.normal(k_x2, (20, IN_DIM), jnp.float32)
    out2 = jax.block_until_ready(
        downstream_mlp_apply(params, x2_f32.astype(jnp.bfloat16), block_b=8))
    assert out2.shape == (20, n_class)
    assert jnp.allclose(out2, ref_fn(x2_f32), atol=2e-3, rtol=2e-2)

    # Case 3: medium batch -> default tile gives >=2 grid steps (both v7x TCs)
    # and a ragged final block (300 = 256 + 44).
    x3 = jax.random.normal(k_x3, (300, IN_DIM), jnp.float32)
    out3 = jax.block_until_ready(downstream_mlp_apply(params, x3))
    assert out3.shape == (300, n_class)
    assert jnp.allclose(out3, ref_fn(x3), atol=2e-3, rtol=2e-2)

    # TODO(synk): training-mode Dropout (p=0.25) would need pltpu.prng_seed /
    # pltpu.prng_random_bits masking; eval-mode forward is the target here.
    print("KERNEL_OK")
</pallas_src>

<mosaic_0001>
module attributes {stable_mosaic.version = 11 : i64} {
  func.func @_mlp_kernel(%arg0: i32, %arg1: memref<128x1024xf32, #tpu.memory_space<vmem>>, %arg2: memref<1024x512xbf16, #tpu.memory_space<vmem>>, %arg3: memref<1x512xf32, #tpu.memory_space<vmem>>, %arg4: memref<512x128xbf16, #tpu.memory_space<vmem>>, %arg5: memref<1x128xf32, #tpu.memory_space<vmem>>, %arg6: memref<128x128xf32, #tpu.memory_space<vmem>>) attributes {dimension_semantics = [#tpu.dimension_semantics<parallel>], iteration_bounds = array<i64: 1>, scalar_prefetch = 0 : i64, scratch_operands = 0 : i64, tpu.core_type = #tpu.core_type<tc>, window_params = [{transform_indices = @transform_0, window_bounds = array<i64: 128, 1024>}, {pipeline_mode = #tpu.pipeline_mode<synchronous>, transform_indices = @transform_1, window_bounds = array<i64: 1024, 512>}, {pipeline_mode = #tpu.pipeline_mode<synchronous>, transform_indices = @transform_2, window_bounds = array<i64: 1, 512>}, {pipeline_mode = #tpu.pipeline_mode<synchronous>, transform_indices = @transform_3, window_bounds = array<i64: 512, 128>}, {pipeline_mode = #tpu.pipeline_mode<synchronous>, transform_indices = @transform_4, window_bounds = array<i64: 1, 128>}, {transform_indices = @transform_5, window_bounds = array<i64: 128, 128>}]} {
    %c0 = arith.constant 0 : index
    %c0_0 = arith.constant 0 : index
    %0 = vector.load %arg1[%c0, %c0_0] : memref<128x1024xf32, #tpu.memory_space<vmem>>, vector<128x1024xf32>
    %1 = arith.truncf %0 : vector<128x1024xf32> to vector<128x1024xbf16>
    %c0_1 = arith.constant 0 : index
    %c0_2 = arith.constant 0 : index
    %2 = vector.load %arg2[%c0_1, %c0_2] : memref<1024x512xbf16, #tpu.memory_space<vmem>>, vector<1024x512xbf16>
    %cst = arith.constant dense<0.000000e+00> : vector<128x512xf32>
    %3 = tpu.matmul %1, %2, %cst {dimension_numbers = #tpu.dot_dimension_numbers<[1], [0], [0], [1], [0, 0, 1, 1], [], []>} : vector<128x1024xbf16>, vector<1024x512xbf16>, vector<128x512xf32> -> vector<128x512xf32>
    %c0_3 = arith.constant 0 : index
    %c0_4 = arith.constant 0 : index
    %4 = vector.load %arg3[%c0_3, %c0_4] : memref<1x512xf32, #tpu.memory_space<vmem>>, vector<1x512xf32>
    %5 = vector.broadcast %4 : vector<1x512xf32> to vector<128x512xf32>
    %6 = arith.addf %3, %5 : vector<128x512xf32>
    %cst_5 = arith.constant 0.000000e+00 : f32
    %7 = vector.broadcast %cst_5 : f32 to vector<128x512xf32>
    %8 = arith.maximumf %6, %7 : vector<128x512xf32>
    %9 = arith.truncf %8 : vector<128x512xf32> to vector<128x512xbf16>
    %c0_6 = arith.constant 0 : index
    %c0_7 = arith.constant 0 : index
    %10 = vector.load %arg4[%c0_6, %c0_7] : memref<512x128xbf16, #tpu.memory_space<vmem>>, vector<512x128xbf16>
    %cst_8 = arith.constant dense<0.000000e+00> : vector<128x128xf32>
    %11 = tpu.matmul %9, %10, %cst_8 {dimension_numbers = #tpu.dot_dimension_numbers<[1], [0], [0], [1], [0, 0, 1, 1], [], []>} : vector<128x512xbf16>, vector<512x128xbf16>, vector<128x128xf32> -> vector<128x128xf32>
    %c0_9 = arith.constant 0 : index
    %c0_10 = arith.constant 0 : index
    %12 = vector.load %arg5[%c0_9, %c0_10] : memref<1x128xf32, #tpu.memory_space<vmem>>, vector<1x128xf32>
    %13 = vector.broadcast %12 : vector<1x128xf32> to vector<128x128xf32>
    %14 = arith.addf %11, %13 : vector<128x128xf32>
    %cst_11 = arith.constant 0.000000e+00 : f32
    %15 = vector.broadcast %cst_11 : f32 to vector<128x128xf32>
    %16 = arith.maximumf %14, %15 : vector<128x128xf32>
    %c0_12 = arith.constant 0 : index
    %c0_13 = arith.constant 0 : index
    %17 = vector.load %arg6[%c0_12, %c0_13] : memref<128x128xf32, #tpu.memory_space<vmem>>, vector<128x128xf32>
    tpu.vector_store %arg6[%c0_12, %c0_13], %16 {strides = array<i32>} : memref<128x128xf32, #tpu.memory_space<vmem>>, vector<128x128xf32>,
    return
  }
  func.func @transform_0(%arg0: i32) -> (i32, i32) {
    %c0_i32 = arith.constant 0 : i32
    %c0_i32_0 = arith.constant 0 : i32
    return %arg0, %c0_i32 : i32, i32
  }
  func.func @transform_1(%arg0: i32) -> (i32, i32) {
    %c0_i32 = arith.constant 0 : i32
    %c0_i32_0 = arith.constant 0 : i32
    %c0_i32_1 = arith.constant 0 : i32
    return %c0_i32, %c0_i32_0 : i32, i32
  }
  func.func @transform_2(%arg0: i32) -> (i32, i32) {
    %c0_i32 = arith.constant 0 : i32
    %c0_i32_0 = arith.constant 0 : i32
    %c0_i32_1 = arith.constant 0 : i32
    return %c0_i32, %c0_i32_0 : i32, i32
  }
  func.func @transform_3(%arg0: i32) -> (i32, i32) {
    %c0_i32 = arith.constant 0 : i32
    %c0_i32_0 = arith.constant 0 : i32
    %c0_i32_1 = arith.constant 0 : i32
    return %c0_i32, %c0_i32_0 : i32, i32
  }
  func.func @transform_4(%arg0: i32) -> (i32, i32) {
    %c0_i32 = arith.constant 0 : i32
    %c0_i32_0 = arith.constant 0 : i32
    %c0_i32_1 = arith.constant 0 : i32
    return %c0_i32, %c0_i32_0 : i32, i32
  }
  func.func @transform_5(%arg0: i32) -> (i32, i32) {
    %c0_i32 = arith.constant 0 : i32
    %c0_i32_0 = arith.constant 0 : i32
    return %arg0, %c0_i32 : i32, i32
  }
}

</mosaic_0001>

<bundles_post_ra>
// kernel: tpu_custom_call.1
= control target key start
LH: loop header
LB: loop body
LE: loop exit
PB: predicated region body
PF: predicated region fallthrough
CT: control target
= control target key end

     0   :  { %10 = vsyncpa [#allocation3], 0  ;;  %s6387_s0 = inlined_call_operand.hbm [shape: f32[8,1024], index: 0, kind: input, shape index: {}]   ;;  %s6388_s1 = inlined_call_operand.hbm [shape: bf16[1024,512], index: 1, kind: input, shape index: {}]   ;;  %s6389_s2 = inlined_call_operand.hbm [shape: f32[1,512], index: 2, kind: input, shape index: {}]   ;;  %s6390_s3 = inlined_call_operand.hbm [shape: bf16[512,128], index: 3, kind: input, shape index: {}]   ;;  %s6391_s4 = inlined_call_operand.vmem [shape: f32[1,128], index: 4, kind: input, shape index: {}]   ;;  %s6392_s5 = inlined_call_operand.hbm [shape: f32[8,128], index: 5, kind: output, shape index: {}]  }
   0x1   :  { %11 = vsyncpa [#allocation6], 0 }
   0x2   :  { %12 = vsyncpa [#allocation9], 0 }
   0x3   :  { %13 = vsyncpa [#allocation4], 0  ;;  %s31_s20 = sshll.u32 %s6388_s1, 4  ;;  %s32_s20 = int_to_ptr.hbm [resolvable:$true] %s31_s20 }
   0x4   :  { %17 = vsyncadd [#allocation3], 15360  ;;  %s5577_s21 = smov [#allocation5]   ;;  %s18_s25 = sshll.u32 %s6387_s0, 4  ;;  %s19_s25 = int_to_ptr.hbm [resolvable:$true] %s18_s25 }
   0x5   :  { %s33_s22 = sshll.u32 %s5577_s21, 4  ;;  %s5578_s26 = smov 256   ;;  %s34_s22 = int_to_ptr.vmem [resolvable:$true] %s33_s22 }
   0x6   :  { %s5579_s27 = smov 16   ;;  %s5580_s28 = smov [#allocation2]  }
   0x7   :  { %39 = dma.hbm_to_vmem [thread:$0]  %s32_s20, 32768, %s34_s22, [#allocation6], %s5578_s26, %s5578_s26, %s5579_s27  }
   0x8   :  { %s20_s29 = sshll.u32 %s5580_s28, 4  ;;  %s5581_s30 = smov 1024   ;;  %s21_s29 = int_to_ptr.vmem [resolvable:$true] %s20_s29 }
   0x9   :  { %s5582_s6 = smov 64   ;;  %s45_s8 = sshll.u32 %s6389_s2, 4  ;;  %s46_s8 = int_to_ptr.hbm [resolvable:$true] %s45_s8 }
   0xa   :  { %26 = dma.hbm_to_vmem [thread:$0]  %s19_s25, 1024, %s21_s29, [#allocation3], %s5581_s30, %s5581_s30, %s5582_s6  }
   0xb   :  { %s5583_s9 = smov [#allocation7]   ;;  %s55_s12 = sshll.u32 %s6390_s3, 4  ;;  %s56_s12 = int_to_ptr.hbm [resolvable:$true] %s55_s12 }
   0xc   :  { %s47_s10 = sshll.u32 %s5583_s9, 4  ;;  %s5584_s13 = smov [#allocation8]   ;;  %s48_s10 = int_to_ptr.vmem [resolvable:$true] %s47_s10 }
   0xd   :  { %50 = dma.hbm_to_vmem [thread:$0]  %s46_s8, 64, %s48_s10, [#allocation6]  }
   0xe   :  { %s57_s14 = sshll.u32 %s5584_s13, 4  ;;  %s5585_s15 = smov 4   ;;  %s58_s14 = int_to_ptr.vmem [resolvable:$true] %s57_s14 }
   0xf   :  { %63 = dma.hbm_to_vmem [thread:$0]  %s56_s12, 4096, %s58_s14, [#allocation9], %s5582_s6, %s5582_s6, %s5585_s15  }
  0x10   :  { %5569 = dma.done.wait [#allocation3], 16384  }
  0x11   :  { %5570 = vsyncadd [#allocation3], 4294950912 }
  0x12   :  { %5571 = dma.done.wait [#allocation6], 32832  }
  0x13   :  { %5572 = vsyncadd [#allocation6], 4294934464 }
  0x14   :  { %5573 = dma.done.wait [#allocation9], 4096  }
  0x15   :  { %5574 = vsyncadd [#allocation9], 4294963200  ;;  %v4107_v0 = vld [vmem:[#allocation5 + $0xe0] sm:$0xf]  ;;  %v5175_v1 = vld [vmem:[#allocation5 + $0xec] sm:$0xf0] }
  0x16   :  { %v4235_v2 = vld [vmem:[#allocation5 + $0x1e0] sm:$0xf]  ;;  %v4108_v3 = vor.u32 %v5175_v1, %v4107_v0  ;;  %v5207_v4 = vld [vmem:[#allocation5 + $0x1ec] sm:$0xf0] }
  0x17   :  { %v4363_v5 = vld [vmem:[#allocation5 + $0x2e0] sm:$0xf]  ;;  %v5239_v6 = vld [vmem:[#allocation5 + $0x2ec] sm:$0xf0]  ;;  %v4236_v7 = vor.u32 %v5207_v4, %v4235_v2 }
  0x18   :  { %v4364_v8 = vor.u32 %v5239_v6, %v4363_v5  ;;  %v4491_v9 = vld [vmem:[#allocation5 + $0x3e0] sm:$0xf]  ;;  %v5271_v10 = vld [vmem:[#allocation5 + $0x3ec] sm:$0xf0]  ;;  %1820 = vmatpush.bf16.msra.mxu0 %v4108_v3 }
  0x19   :  { %v4091_v11 = vld [vmem:[#allocation5 + $0xc0] sm:$0xf]  ;;  %v4492_v12 = vor.u32 %v5271_v10, %v4491_v9  ;;  %v5171_v13 = vld [vmem:[#allocation5 + $0xcc] sm:$0xf0]  ;;  %1869 = vmatpush.bf16.msra.mxu1 %v4236_v7 }
  0x1a   :  { %v4219_v14 = vld [vmem:[#allocation5 + $0x1c0] sm:$0xf]  ;;  %v5203_v15 = vld [vmem:[#allocation5 + $0x1cc] sm:$0xf0]  ;;  %1918 = vmatpush.bf16.msra.mxu2 %v4364_v8  ;;  %v4092_v16 = vor.u32 %v5171_v13, %v4091_v11 }
  0x1b   :  { %v4220_v17 = vor.u32 %v5203_v15, %v4219_v14  ;;  %v4347_v18 = vld [vmem:[#allocation5 + $0x2c0] sm:$0xf]  ;;  %v5235_v19 = vld [vmem:[#allocation5 + $0x2cc] sm:$0xf0]  ;;  %1967 = vmatpush.bf16.msra.mxu3 %v4492_v12 }
  0x1c   :  { %v4475_v20 = vld [vmem:[#allocation5 + $0x3c0] sm:$0xf]  ;;  %v4348_v21 = vor.u32 %v5235_v19, %v4347_v18  ;;  %v5267_v22 = vld [vmem:[#allocation5 + $0x3cc] sm:$0xf0]  ;;  %1821 = vmatpush.bf16.msra.mxu0 %v4092_v16 }
  0x1d   :  { %v4075_v23 = vld [vmem:[#allocation5 + $0xa0] sm:$0xf]  ;;  %v5167_v24 = vld [vmem:[#allocation5 + $0xac] sm:$0xf0]  ;;  %v4476_v25 = vor.u32 %v5267_v22, %v4475_v20  ;;  %1870 = vmatpush.bf16.msra.mxu1 %v4220_v17 }
  0x1e   :  { %v4203_v26 = vld [vmem:[#allocation5 + $0x1a0] sm:$0xf]  ;;  %v5199_v27 = vld [vmem:[#allocation5 + $0x1ac] sm:$0xf0]  ;;  %v4076_v29 = vor.u32 %v5167_v24, %v4075_v23  ;;  %1919 = vmatpush.bf16.msra.mxu2 %v4348_v21 }
  0x1f   :  { %v4331_v28 = vld [vmem:[#allocation5 + $0x2a0] sm:$0xf]  ;;  %v5231_v30 = vld [vmem:[#allocation5 + $0x2ac] sm:$0xf0]  ;;  %v4204_v33 = vor.u32 %v5199_v27, %v4203_v26  ;;  %1968 = vmatpush.bf16.msra.mxu3 %v4476_v25 }
  0x20   :  { %v4459_v31 = vld [vmem:[#allocation5 + $0x3a0] sm:$0xf]  ;;  %v5263_v32 = vld [vmem:[#allocation5 + $0x3ac] sm:$0xf0]  ;;  %v4332_v34 = vor.u32 %v5231_v30, %v4331_v28  ;;  %1822 = vmatpush.bf16.msra.mxu0 %v4076_v29  ;;  %v83_v30 = vld [vmem:[#allocation2 + $0x8] sm:$0xff] }
  0x21   :  { %v4059_v35 = vld [vmem:[#allocation5 + $0x80] sm:$0xf]  ;;  %v5163_v36 = vld [vmem:[#allocation5 + $0x8c] sm:$0xf0]  ;;  %v4460_v38 = vor.u32 %v5263_v32, %v4459_v31  ;;  %1871 = vmatpush.bf16.msra.mxu1 %v4204_v33  ;;  %v91_v31 = vld [vmem:[#allocation2 + $0x48] sm:$0xff] }
  0x22   :  { %v4187_v37 = vld [vmem:[#allocation5 + $0x180] sm:$0xf]  ;;  %v5195_v39 = vld [vmem:[#allocation5 + $0x18c] sm:$0xf0]  ;;  %v4060_v44 = vor.u32 %v5163_v36, %v4059_v35  ;;  %1920 = vmatpush.bf16.msra.mxu2 %v4332_v34 }
  0x23   :  { %v4315_v40 = vld [vmem:[#allocation5 + $0x280] sm:$0xf]  ;;  %v5227_v41 = vld [vmem:[#allocation5 + $0x28c] sm:$0xf0]  ;;  %v4188_v45 = vor.u32 %v5195_v39, %v4187_v37  ;;  %1969 = vmatpush.bf16.msra.mxu3 %v4460_v38 }
  0x24   :  { %v4443_v42 = vld [vmem:[#allocation5 + $0x380] sm:$0xf]  ;;  %v5259_v43 = vld [vmem:[#allocation5 + $0x38c] sm:$0xf0]  ;;  %v4316_v46 = vor.u32 %v5227_v41, %v4315_v40  ;;  %1823 = vmatpush.bf16.msra.mxu0 %v4060_v44  ;;  %v85_v41 = vld [vmem:[#allocation2 + $0x18] sm:$0xff] }
  0x25   :  { %v4043_v47 = vld [vmem:[#allocation5 + $0x60] sm:$0xf]  ;;  %v5159_v48 = vld [vmem:[#allocation5 + $0x6c] sm:$0xf0]  ;;  %v4444_v50 = vor.u32 %v5259_v43, %v4443_v42  ;;  %1872 = vmatpush.bf16.msra.mxu1 %v4188_v45  ;;  %v93_v42 = vld [vmem:[#allocation2 + $0x58] sm:$0xff] }
  0x26   :  { %v4171_v49 = vld [vmem:[#allocation5 + $0x160] sm:$0xf]  ;;  %v5191_v51 = vld [vmem:[#allocation5 + $0x16c] sm:$0xf0]  ;;  %v4044_v56 = vor.u32 %v5159_v48, %v4043_v47  ;;  %1921 = vmatpush.bf16.msra.mxu2 %v4316_v46 }
  0x27   :  { %v4299_v52 = vld [vmem:[#allocation5 + $0x260] sm:$0xf]  ;;  %v5223_v53 = vld [vmem:[#allocation5 + $0x26c] sm:$0xf0]  ;;  %v4172_v57 = vor.u32 %v5191_v51, %v4171_v49  ;;  %1970 = vmatpush.bf16.msra.mxu3 %v4444_v50 }
  0x28   :  { %v4427_v54 = vld [vmem:[#allocation5 + $0x360] sm:$0xf]  ;;  %v5255_v55 = vld [vmem:[#allocation5 + $0x36c] sm:$0xf0]  ;;  %v4300_v58 = vor.u32 %v5223_v53, %v4299_v52  ;;  %1824 = vmatpush.bf16.msra.mxu0 %v4044_v56  ;;  %v5633_v53 = vpack.c.bf16 %v91_v31, %v83_v30 }
  0x29   :  { %v4027_v59 = vld [vmem:[#allocation5 + $0x40] sm:$0xf]  ;;  %v5155_v60 = vld [vmem:[#allocation5 + $0x4c] sm:$0xf0]  ;;  %v4428_v62 = vor.u32 %v5255_v55, %v4427_v54  ;;  %1873 = vmatpush.bf16.msra.mxu1 %v4172_v57  ;;  %v5637_v57 = vpack.c.bf16 %v93_v42, %v85_v41  ;;  %v115_v42 = vld [vmem:[#allocation2 + $0x108] sm:$0xff] }
  0x2a   :  { %v4155_v61 = vld [vmem:[#allocation5 + $0x140] sm:$0xf]  ;;  %v5187_v63 = vld [vmem:[#allocation5 + $0x14c] sm:$0xf0]  ;;  %v4028_v4 = vor.u32 %v5155_v60, %v4027_v59  ;;  %1922 = vmatpush.bf16.msra.mxu2 %v4300_v58 }
  0x2b   :  { %v4283_v0 = vld [vmem:[#allocation5 + $0x240] sm:$0xf]  ;;  %v5219_v1 = vld [vmem:[#allocation5 + $0x24c] sm:$0xf0]  ;;  %v4156_v5 = vor.u32 %v5187_v63, %v4155_v61  ;;  %1971 = vmatpush.bf16.msra.mxu3 %v4428_v62  ;;  %6471 = vst [vmem:[#allocation16_spill] sm:$0xff] %v5637_v57 }
  0x2c   :  { %v4411_v2 = vld [vmem:[#allocation5 + $0x340] sm:$0xf]  ;;  %v5251_v3 = vld [vmem:[#allocation5 + $0x34c] sm:$0xf0]  ;;  %v4284_v6 = vor.u32 %v5219_v1, %v4283_v0  ;;  %1825 = vmatpush.bf16.msra.mxu0 %v4028_v4 }
  0x2d   :  { %v4011_v7 = vld [vmem:[#allocation5 + $0x20] sm:$0xf]  ;;  %v5151_v8 = vld [vmem:[#allocation5 + $0x2c] sm:$0xf0]  ;;  %v4412_v10 = vor.u32 %v5251_v3, %v4411_v2  ;;  %1874 = vmatpush.bf16.msra.mxu1 %v4156_v5 }
  0x2e   :  { %v4139_v9 = vld [vmem:[#allocation5 + $0x120] sm:$0xf]  ;;  %v5183_v11 = vld [vmem:[#allocation5 + $0x12c] sm:$0xf0]  ;;  %v4012_v17 = vor.u32 %v5151_v8, %v4011_v7  ;;  %1923 = vmatpush.bf16.msra.mxu2 %v4284_v6 }
  0x2f   :  { %v4267_v12 = vld [vmem:[#allocation5 + $0x220] sm:$0xf]  ;;  %v5215_v13 = vld [vmem:[#allocation5 + $0x22c] sm:$0xf0]  ;;  %v4140_v21 = vor.u32 %v5183_v11, %v4139_v9  ;;  %1972 = vmatpush.bf16.msra.mxu3 %v4412_v10 }
  0x30   :  { %v4395_v14 = vld [vmem:[#allocation5 + $0x320] sm:$0xf]  ;;  %v5247_v15 = vld [vmem:[#allocation5 + $0x32c] sm:$0xf0]  ;;  %v4268_v22 = vor.u32 %v5215_v13, %v4267_v12  ;;  %1826 = vmatpush.bf16.msra.mxu0 %v4012_v17 }
  0x31   :  { %v3995_v16 = vld [vmem:[#allocation5] sm:$0xf]  ;;  %v5147_v18 = vld [vmem:[#allocation5 + $0xc] sm:$0xf0]  ;;  %v4396_v26 = vor.u32 %v5247_v15, %v4395_v14  ;;  %1875 = vmatpush.bf16.msra.mxu1 %v4140_v21 }
  0x32   :  { %v4123_v19 = vld [vmem:[#allocation5 + $0x100] sm:$0xf]  ;;  %v5179_v20 = vld [vmem:[#allocation5 + $0x10c] sm:$0xf0]  ;;  %v3996_v34 = vor.u32 %v5147_v18, %v3995_v16  ;;  %1924 = vmatpush.bf16.msra.mxu2 %v4268_v22  ;;  %v99_v18 = vld [vmem:[#allocation2 + $0x88] sm:$0xff] }
  0x33   :  { %v4251_v23 = vld [vmem:[#allocation5 + $0x200] sm:$0xf]  ;;  %v5211_v24 = vld [vmem:[#allocation5 + $0x20c] sm:$0xf0]  ;;  %v4124_v38 = vor.u32 %v5179_v20, %v4123_v19  ;;  %1973 = vmatpush.bf16.msra.mxu3 %v4396_v26  ;;  %v107_v19 = vld [vmem:[#allocation2 + $0xc8] sm:$0xff] }
  0x34   :  { %v4379_v25 = vld [vmem:[#allocation5 + $0x300] sm:$0xf]  ;;  %v5243_v27 = vld [vmem:[#allocation5 + $0x30c] sm:$0xf0]  ;;  %v4252_v39 = vor.u32 %v5211_v24, %v4251_v23  ;;  %1827 = vmatpush.bf16.msra.mxu0 %v3996_v34  ;;  %v101_v22 = vld [vmem:[#allocation2 + $0x98] sm:$0xff] }
  0x35   :  { %v82_v28 = vld [vmem:[#allocation2] sm:$0xff]  ;;  %v5367_v33 = vld [vmem:[#allocation5 + $0x6ec] sm:$0xf0]  ;;  %v4380_v43 = vor.u32 %v5243_v27, %v4379_v25  ;;  %1876 = vmatpush.bf16.msra.mxu1 %v4124_v38  ;;  %v109_v23 = vld [vmem:[#allocation2 + $0xd8] sm:$0xff]  ;;  %v5645_v25 = vpack.c.bf16 %v107_v19, %v99_v18 }
  0x36   :  { %v90_v29 = vld [vmem:[#allocation2 + $0x40] sm:$0xff]  ;;  %v84_v35 = vld [vmem:[#allocation2 + $0x10] sm:$0xff]  ;;  %1925 = vmatpush.bf16.msra.mxu2 %v4252_v39  ;;  %v5649_v27 = vpack.c.bf16 %v109_v23, %v101_v22 }
  0x37   :  { %v4875_v32 = vld [vmem:[#allocation5 + $0x6e0] sm:$0xf]  ;;  %v5399_v37 = vld [vmem:[#allocation5 + $0x7ec] sm:$0xf0]  ;;  %v5631_v48 = vpack.c.bf16 %v90_v29, %v82_v28  ;;  %1974 = vmatpush.bf16.msra.mxu3 %v4380_v43  ;;  %v123_v43 = vld [vmem:[#allocation2 + $0x148] sm:$0xff] }
  0x38   :  { %v5003_v36 = vld [vmem:[#allocation5 + $0x7e0] sm:$0xf]  ;;  %v92_v40 = vld [vmem:[#allocation2 + $0x50] sm:$0xff]  ;;  %v4876_v44 = vor.u32 %v5367_v33, %v4875_v32  ;;  %1877 = vmatmul.bf16.vlgmr.msra.gmra.mxu1 %v5633_v53 }
  0x39   :  { %v4619_v45 = vld [vmem:[#allocation5 + $0x4e0] sm:$0xf]  ;;  %v5303_v46 = vld [vmem:[#allocation5 + $0x4ec] sm:$0xf0]  ;;  %v5004_v49 = vor.u32 %v5399_v37, %v5003_v36  ;;  %v5635_v54 = vpack.c.bf16 %v92_v40, %v84_v35  ;;  %1828 = vmatmul.bf16.vlgmr.msra.gmra.mxu0 %v5631_v48 }
  0x3a   :  { %v4747_v47 = vld [vmem:[#allocation5 + $0x5e0] sm:$0xf]  ;;  %v5335_v50 = vld [vmem:[#allocation5 + $0x5ec] sm:$0xf0]  ;;  %v4620_v58 = vor.u32 %v5303_v46, %v4619_v45  ;;  %2114 = vmatpush.bf16.msrb.mxu2 %v4876_v44  ;;  %1975 = vmatmul.bf16.vlgmr.msra.gmra.mxu3 %v5637_v57  ;;  %v117_v46 = vld [vmem:[#allocation2 + $0x118] sm:$0xff] }
  0x3b   :  { %v4859_v51 = vld [vmem:[#allocation5 + $0x6c0] sm:$0xf]  ;;  %v5363_v52 = vld [vmem:[#allocation5 + $0x6cc] sm:$0xf0]  ;;  %6470 = vst [vmem:[#allocation15_spill] sm:$0xff] %v5635_v54  ;;  %v4748_v59 = vor.u32 %v5335_v50, %v4747_v47  ;;  %2163 = vmatpush.bf16.msrb.mxu3 %v5004_v49  ;;  %1926 = vmatmul.bf16.vlgmr.msra.gmra.mxu2 %v5635_v54  ;;  %v125_v47 = vld [vmem:[#allocation2 + $0x158] sm:$0xff]  ;;  %v5657_v50 = vpack.c.bf16 %v123_v43, %v115_v42 }
  0x3c   :  { %v4987_v55 = vld [vmem:[#allocation5 + $0x7c0] sm:$0xf]  ;;  %v5395_v56 = vld [vmem:[#allocation5 + $0x7cc] sm:$0xf0]  ;;  %v4860_v60 = vor.u32 %v5363_v52, %v4859_v51  ;;  %2016 = vmatpush.bf16.msrb.mxu0 %v4620_v58  ;;  %v5661_v52 = vpack.c.bf16 %v125_v47, %v117_v46 }
  0x3d   :  { %v4603_v61 = vld [vmem:[#allocation5 + $0x4c0] sm:$0xf]  ;;  %v5299_v62 = vld [vmem:[#allocation5 + $0x4cc] sm:$0xf0]  ;;  %v4988_v63 = vor.u32 %v5395_v56, %v4987_v55  ;;  %2065 = vmatpush.bf16.msrb.mxu1 %v4748_v59 }
  0x3e   :  { %v4731_v0 = vld [vmem:[#allocation5 + $0x5c0] sm:$0xf]  ;;  %v5331_v1 = vld [vmem:[#allocation5 + $0x5cc] sm:$0xf0]  ;;  %v4604_v2 = vor.u32 %v5299_v62, %v4603_v61  ;;  %2115 = vmatpush.bf16.msrb.mxu2 %v4860_v60 }
  0x3f   :  { %v4843_v3 = vld [vmem:[#allocation5 + $0x6a0] sm:$0xf]  ;;  %v5359_v4 = vld [vmem:[#allocation5 + $0x6ac] sm:$0xf0]  ;;  %v4732_v6 = vor.u32 %v5331_v1, %v4731_v0  ;;  %2164 = vmatpush.bf16.msrb.mxu3 %v4988_v63 }
  0x40   :  { %v4587_v5 = vld [vmem:[#allocation5 + $0x4a0] sm:$0xf]  ;;  %v4844_v7 = vor.u32 %v5359_v4, %v4843_v3  ;;  %v5295_v8 = vld [vmem:[#allocation5 + $0x4ac] sm:$0xf0]  ;;  %2017 = vmatpush.bf16.msrb.mxu0 %v4604_v2 }
  0x41   :  { %v4971_v9 = vld [vmem:[#allocation5 + $0x7a0] sm:$0xf]  ;;  %v5391_v10 = vld [vmem:[#allocation5 + $0x7ac] sm:$0xf0]  ;;  %v4588_v14 = vor.u32 %v5295_v8, %v4587_v5  ;;  %2066 = vmatpush.bf16.msrb.mxu1 %v4732_v6  ;;  %v131_v6 = vld [vmem:[#allocation2 + $0x188] sm:$0xff] }
  0x42   :  { %v4972_v11 = vor.u32 %v5391_v10, %v4971_v9  ;;  %v4715_v12 = vld [vmem:[#allocation5 + $0x5a0] sm:$0xf]  ;;  %v5327_v13 = vld [vmem:[#allocation5 + $0x5ac] sm:$0xf0]  ;;  %2116 = vmatpush.bf16.msrb.mxu2 %v4844_v7  ;;  %v139_v7 = vld [vmem:[#allocation2 + $0x1c8] sm:$0xff] }
  0x43   :  { %v4716_v15 = vor.u32 %v5327_v13, %v4715_v12  ;;  %v98_v16 = vld [vmem:[#allocation2 + $0x80] sm:$0xff]  ;;  %v100_v20 = vld [vmem:[#allocation2 + $0x90] sm:$0xff]  ;;  %v133_v10 = vld [vmem:[#allocation2 + $0x198] sm:$0xff]  ;;  %v5669_v13 = vpack.c.bf16 %v139_v7, %v131_v6 }
  0x44   :  { %2165 = vmatpush.bf16.msrb.mxu3 %v4972_v11  ;;  %v106_v17 = vld [vmem:[#allocation2 + $0xc0] sm:$0xff]  ;;  %v108_v21 = vld [vmem:[#allocation2 + $0xd0] sm:$0xff]  ;;  %2018 = vmatpush.bf16.msrb.mxu0 %v4588_v14  ;;  %v141_v11 = vld [vmem:[#allocation2 + $0x1d8] sm:$0xff] }
  0x45   :  { %2067 = vmatpush.bf16.msrb.mxu1 %v4716_v15  ;;  %v5643_v24 = vpack.c.bf16 %v106_v17, %v98_v16  ;;  %v5647_v26 = vpack.c.bf16 %v108_v21, %v100_v20  ;;  %v4827_v28 = vld [vmem:[#allocation5 + $0x680] sm:$0xf]  ;;  %v5355_v29 = vld [vmem:[#allocation5 + $0x68c] sm:$0xf0]  ;;  %v5673_v15 = vpack.c.bf16 %v141_v11, %v133_v10  ;;  %v165_v6 = vld [vmem:[#allocation2 + $0x298] sm:$0xff] }
  0x46   :  { %v4571_v30 = vld [vmem:[#allocation5 + $0x480] sm:$0xf]  ;;  %v4828_v31 = vor.u32 %v5355_v29, %v4827_v28  ;;  %v5291_v32 = vld [vmem:[#allocation5 + $0x48c] sm:$0xf0]  ;;  %v173_v7 = vld [vmem:[#allocation2 + $0x2d8] sm:$0xff] }
  0x47   :  { %v4955_v33 = vld [vmem:[#allocation5 + $0x780] sm:$0xf]  ;;  %v5387_v34 = vld [vmem:[#allocation5 + $0x78c] sm:$0xf0]  ;;  %v4572_v35 = vor.u32 %v5291_v32, %v4571_v30  ;;  %v5697_v11 = vpack.c.bf16 %v173_v7, %v165_v6  ;;  %v195_v6 = vld [vmem:[#allocation2 + $0x388] sm:$0xff] }
  0x48   :  { %1882 = vmatmul.bf16.gmra.mxu1 %v5645_v25  ;;  %v4956_v36 = vor.u32 %v5387_v34, %v4955_v33  ;;  %v4699_v37 = vld [vmem:[#allocation5 + $0x580] sm:$0xf]  ;;  %v5323_v38 = vld [vmem:[#allocation5 + $0x58c] sm:$0xf0]  ;;  %2117 = vmatpush.bf16.msrb.mxu2 %v4828_v31  ;;  %v147_v34 = vld [vmem:[#allocation2 + $0x208] sm:$0xff] }
  0x49   :  { %1833 = vmatmul.bf16.gmra.mxu0 %v5643_v24  ;;  %v4700_v39 = vor.u32 %v5323_v38, %v4699_v37  ;;  %v114_v40 = vld [vmem:[#allocation2 + $0x100] sm:$0xff]  ;;  %v116_v44 = vld [vmem:[#allocation2 + $0x110] sm:$0xff]  ;;  %v149_v38 = vld [vmem:[#allocation2 + $0x218] sm:$0xff] }
  0x4a   :  { %1980 = vmatmul.bf16.gmra.mxu3 %v5649_v27  ;;  %2019 = vmatpush.bf16.msrb.mxu0 %v4572_v35  ;;  %v122_v41 = vld [vmem:[#allocation2 + $0x140] sm:$0xff]  ;;  %v124_v45 = vld [vmem:[#allocation2 + $0x150] sm:$0xff]  ;;  %v155_v35 = vld [vmem:[#allocation2 + $0x248] sm:$0xff] }
  0x4b   :  { %1931 = vmatmul.bf16.gmra.mxu2 %v5647_v26  ;;  %2166 = vmatpush.bf16.msrb.mxu3 %v4956_v36  ;;  %v5655_v49 = vpack.c.bf16 %v122_v41, %v114_v40  ;;  %v5659_v51 = vpack.c.bf16 %v124_v45, %v116_v44  ;;  %v4811_v55 = vld [vmem:[#allocation5 + $0x660] sm:$0xf]  ;;  %v5351_v56 = vld [vmem:[#allocation5 + $0x66c] sm:$0xf0]  ;;  %v5681_v41 = vpack.c.bf16 %v155_v35, %v147_v34  ;;  %v179_v34 = vld [vmem:[#allocation2 + $0x308] sm:$0xff] }
  0x4c   :  { %2068 = vmatpush.bf16.msrb.mxu1 %v4700_v39  ;;  %v4555_v58 = vld [vmem:[#allocation5 + $0x460] sm:$0xf]  ;;  %v4812_v59 = vor.u32 %v5351_v56, %v4811_v55  ;;  %v5287_v60 = vld [vmem:[#allocation5 + $0x46c] sm:$0xf0]  ;;  %v157_v39 = vld [vmem:[#allocation2 + $0x258] sm:$0xff] }
  0x4d   :  { %v4939_v61 = vld [vmem:[#allocation5 + $0x760] sm:$0xf]  ;;  %v5383_v62 = vld [vmem:[#allocation5 + $0x76c] sm:$0xf0]  ;;  %v4556_v63 = vor.u32 %v5287_v60, %v4555_v58  ;;  %v5685_v43 = vpack.c.bf16 %v157_v39, %v149_v38  ;;  %v187_v35 = vld [vmem:[#allocation2 + $0x348] sm:$0xff] }
  0x4e   :  { %v4940_v0 = vor.u32 %v5383_v62, %v4939_v61  ;;  %v4683_v1 = vld [vmem:[#allocation5 + $0x560] sm:$0xf]  ;;  %v5319_v2 = vld [vmem:[#allocation5 + $0x56c] sm:$0xf0]  ;;  %2118 = vmatpush.bf16.msrb.mxu2 %v4812_v59  ;;  %v181_v38 = vld [vmem:[#allocation2 + $0x318] sm:$0xff] }
  0x4f   :  { %v4684_v3 = vor.u32 %v5319_v2, %v4683_v1  ;;  %2020 = vmatpush.bf16.msrb.mxu0 %v4556_v63  ;;  %v130_v4 = vld [vmem:[#allocation2 + $0x180] sm:$0xff]  ;;  %v132_v8 = vld [vmem:[#allocation2 + $0x190] sm:$0xff]  ;;  %v163_v2 = vld [vmem:[#allocation2 + $0x288] sm:$0xff] }
  0x50   :  { %2167 = vmatpush.bf16.msrb.mxu3 %v4940_v0  ;;  %v138_v5 = vld [vmem:[#allocation2 + $0x1c0] sm:$0xff]  ;;  %v140_v9 = vld [vmem:[#allocation2 + $0x1d0] sm:$0xff]  ;;  %v189_v39 = vld [vmem:[#allocation2 + $0x358] sm:$0xff] }
  0x51   :  { %2069 = vmatpush.bf16.msrb.mxu1 %v4684_v3  ;;  %v5667_v12 = vpack.c.bf16 %v138_v5, %v130_v4  ;;  %v5671_v14 = vpack.c.bf16 %v140_v9, %v132_v8  ;;  %v4795_v16 = vld [vmem:[#allocation5 + $0x640] sm:$0xf]  ;;  %v5347_v17 = vld [vmem:[#allocation5 + $0x64c] sm:$0xf0]  ;;  %v171_v3 = vld [vmem:[#allocation2 + $0x2c8] sm:$0xff] }
  0x52   :  { %v4539_v18 = vld [vmem:[#allocation5 + $0x440] sm:$0xf]  ;;  %v4796_v19 = vor.u32 %v5347_v17, %v4795_v16  ;;  %v5283_v20 = vld [vmem:[#allocation5 + $0x44c] sm:$0xf0]  ;;  %v5693_v9 = vpack.c.bf16 %v171_v3, %v163_v2  ;;  %v4237_v2 = vld [vmem:[#allocation5 + $0x1f0] sm:$0xf0] }
  0x53   :  { %v4923_v21 = vld [vmem:[#allocation5 + $0x740] sm:$0xf]  ;;  %v5379_v22 = vld [vmem:[#allocation5 + $0x74c] sm:$0xf0]  ;;  %v4540_v23 = vor.u32 %v5283_v20, %v4539_v18  ;;  %v203_v7 = vld [vmem:[#allocation2 + $0x3c8] sm:$0xff] }
  0x54   :  { %v4924_v28 = vor.u32 %v5379_v22, %v4923_v21  ;;  %v4667_v29 = vld [vmem:[#allocation5 + $0x540] sm:$0xf]  ;;  %v5315_v30 = vld [vmem:[#allocation5 + $0x54c] sm:$0xf0]  ;;  %2119 = vmatpush.bf16.msrb.mxu2 %v4796_v19 }
  0x55   :  { %v4668_v31 = vor.u32 %v5315_v30, %v4667_v29  ;;  %2021 = vmatpush.bf16.msrb.mxu0 %v4540_v23  ;;  %v146_v32 = vld [vmem:[#allocation2 + $0x200] sm:$0xff]  ;;  %v148_v36 = vld [vmem:[#allocation2 + $0x210] sm:$0xff] }
  0x56   :  { %2168 = vmatpush.bf16.msrb.mxu3 %v4924_v28  ;;  %v154_v33 = vld [vmem:[#allocation2 + $0x240] sm:$0xff]  ;;  %v156_v37 = vld [vmem:[#allocation2 + $0x250] sm:$0xff] }
  0x57   :  { %2070 = vmatpush.bf16.msrb.mxu1 %v4668_v31  ;;  %v5679_v40 = vpack.c.bf16 %v154_v33, %v146_v32  ;;  %v5683_v42 = vpack.c.bf16 %v156_v37, %v148_v36  ;;  %v4779_v44 = vld [vmem:[#allocation5 + $0x620] sm:$0xf]  ;;  %v5343_v45 = vld [vmem:[#allocation5 + $0x62c] sm:$0xf0] }
  0x58   :  { %1887 = vmatmul.bf16.gmra.mxu1 %v5657_v50  ;;  %v4523_v46 = vld [vmem:[#allocation5 + $0x420] sm:$0xf]  ;;  %v4780_v47 = vor.u32 %v5343_v45, %v4779_v44  ;;  %v5279_v55 = vld [vmem:[#allocation5 + $0x42c] sm:$0xf0]  ;;  %v5705_v45 = vpack.c.bf16 %v187_v35, %v179_v34  ;;  %v4477_v34 = vld [vmem:[#allocation5 + $0x3d0] sm:$0xf0] }
  0x59   :  { %1838 = vmatmul.bf16.gmra.mxu0 %v5655_v49  ;;  %v4907_v56 = vld [vmem:[#allocation5 + $0x720] sm:$0xf]  ;;  %v5375_v58 = vld [vmem:[#allocation5 + $0x72c] sm:$0xf0]  ;;  %v4524_v59 = vor.u32 %v5279_v55, %v4523_v46  ;;  %v5237_v55 = vld [vmem:[#allocation5 + $0x2e4] sm:$0xf] }
  0x5a   :  { %1985 = vmatmul.bf16.gmra.mxu3 %v5661_v52  ;;  %v4908_v60 = vor.u32 %v5375_v58, %v4907_v56  ;;  %v4651_v61 = vld [vmem:[#allocation5 + $0x520] sm:$0xf]  ;;  %v5311_v62 = vld [vmem:[#allocation5 + $0x52c] sm:$0xf0]  ;;  %2120 = vmatpush.bf16.msrb.mxu2 %v4780_v47  ;;  %v5709_v47 = vpack.c.bf16 %v189_v39, %v181_v38  ;;  %v4365_v56 = vld [vmem:[#allocation5 + $0x2f0] sm:$0xf0] }
  0x5b   :  { %1936 = vmatmul.bf16.gmra.mxu2 %v5659_v51  ;;  %v4652_v63 = vor.u32 %v5311_v62, %v4651_v61  ;;  %2022 = vmatpush.bf16.msrb.mxu0 %v4524_v59  ;;  %v162_v0 = vld [vmem:[#allocation2 + $0x280] sm:$0xff]  ;;  %v164_v4 = vld [vmem:[#allocation2 + $0x290] sm:$0xff]  ;;  %v4368_v59 = vor.u32 %v5237_v55, %v4365_v56 }
  0x5c   :  { %2169 = vmatpush.bf16.msrb.mxu3 %v4908_v60  ;;  %v170_v1 = vld [vmem:[#allocation2 + $0x2c0] sm:$0xff]  ;;  %v172_v5 = vld [vmem:[#allocation2 + $0x2d0] sm:$0xff]  ;;  %6472 = vst [vmem:[#allocation17_spill] sm:$0xff] %v5709_v47 }
  0x5d   :  { %2071 = vmatpush.bf16.msrb.mxu1 %v4652_v63  ;;  %v5691_v8 = vpack.c.bf16 %v170_v1, %v162_v0  ;;  %v5695_v10 = vpack.c.bf16 %v172_v5, %v164_v4  ;;  %v4763_v16 = vld [vmem:[#allocation5 + $0x600] sm:$0xf]  ;;  %v5339_v17 = vld [vmem:[#allocation5 + $0x60c] sm:$0xf0]  ;;  %v5173_v58 = vld [vmem:[#allocation5 + $0xe4] sm:$0xf] }
  0x5e   :  { %v4507_v18 = vld [vmem:[#allocation5 + $0x400] sm:$0xf]  ;;  %v4764_v19 = vor.u32 %v5339_v17, %v4763_v16  ;;  %v5275_v20 = vld [vmem:[#allocation5 + $0x40c] sm:$0xf0]  ;;  %v4109_v60 = vld [vmem:[#allocation5 + $0xf0] sm:$0xf0] }
  0x5f   :  { %v4891_v21 = vld [vmem:[#allocation5 + $0x700] sm:$0xf]  ;;  %v5371_v22 = vld [vmem:[#allocation5 + $0x70c] sm:$0xf0]  ;;  %v4508_v23 = vor.u32 %v5275_v20, %v4507_v18  ;;  %v5269_v61 = vld [vmem:[#allocation5 + $0x3e4] sm:$0xf]  ;;  %v4112_v63 = vor.u32 %v5173_v58, %v4109_v60 }
  0x60   :  { %v4892_v28 = vor.u32 %v5371_v22, %v4891_v21  ;;  %v4635_v29 = vld [vmem:[#allocation5 + $0x500] sm:$0xf]  ;;  %v5307_v30 = vld [vmem:[#allocation5 + $0x50c] sm:$0xf0]  ;;  %2121 = vmatpush.bf16.msrb.mxu2 %v4764_v19  ;;  %v4493_v62 = vld [vmem:[#allocation5 + $0x3f0] sm:$0xf0]  ;;  %v5717_v21 = vpack.c.bf16 %v203_v7, %v195_v6 }
  0x61   :  { %v4636_v31 = vor.u32 %v5307_v30, %v4635_v29  ;;  %2023 = vmatpush.bf16.msrb.mxu0 %v4508_v23  ;;  %v178_v32 = vld [vmem:[#allocation2 + $0x300] sm:$0xff]  ;;  %v180_v36 = vld [vmem:[#allocation2 + $0x310] sm:$0xff]  ;;  %v4496_v0 = vor.u32 %v5269_v61, %v4493_v62  ;;  %v197_v18 = vld [vmem:[#allocation2 + $0x398] sm:$0xff] }
  0x62   :  { %2170 = vmatpush.bf16.msrb.mxu3 %v4892_v28  ;;  %v186_v33 = vld [vmem:[#allocation2 + $0x340] sm:$0xff]  ;;  %v188_v37 = vld [vmem:[#allocation2 + $0x350] sm:$0xff]  ;;  %v205_v19 = vld [vmem:[#allocation2 + $0x3d8] sm:$0xff]  ;;  %6474 = vst [vmem:[#allocation19_spill] sm:$0xff] %v5717_v21 }
  0x63   :  { %2072 = vmatpush.bf16.msrb.mxu1 %v4636_v31  ;;  %v5703_v44 = vpack.c.bf16 %v186_v33, %v178_v32  ;;  %v5707_v46 = vpack.c.bf16 %v188_v37, %v180_v36  ;;  %v5205_v1 = vld [vmem:[#allocation5 + $0x1e4] sm:$0xf]  ;;  %v196_v16 = vld [vmem:[#allocation2 + $0x390] sm:$0xff]  ;;  %v5721_v23 = vpack.c.bf16 %v205_v19, %v197_v18  ;;  %v530_v37 = vld [vmem:[#allocation7] sm:$0xf] }
  0x64   :  { %2310 = vmatpush.bf16.msra.mxu2 %v4368_v59  ;;  %v4240_v3 = vor.u32 %v5205_v1, %v4237_v2  ;;  %v194_v4 = vld [vmem:[#allocation2 + $0x380] sm:$0xff]  ;;  %v204_v17 = vld [vmem:[#allocation2 + $0x3d0] sm:$0xff]  ;;  %v87_v59 = vld [vmem:[#allocation2 + $0x28] sm:$0xff]  ;;  %v5727_v60 = vperm.slane %v530_v37, 0 }
  0x65   :  { %2212 = vmatpush.bf16.msra.mxu0 %v4112_v63  ;;  %v202_v5 = vld [vmem:[#allocation2 + $0x3c0] sm:$0xff]  ;;  %v5719_v22 = vpack.c.bf16 %v204_v17, %v196_v16  ;;  %6476 = vst [vmem:[#allocation21_spill] sm:$0xff] %v5721_v23  ;;  %v4349_v29 = vld [vmem:[#allocation5 + $0x2d0] sm:$0xf0]  ;;  %v95_v61 = vld [vmem:[#allocation2 + $0x68] sm:$0xff] }
  0x66   :  { %2359 = vmatpush.bf16.msra.mxu3 %v4496_v0  ;;  %v5715_v20 = vpack.c.bf16 %v202_v5, %v194_v4  ;;  %v5233_v28 = vld [vmem:[#allocation5 + $0x2c4] sm:$0xf]  ;;  %v4093_v32 = vld [vmem:[#allocation5 + $0xd0] sm:$0xf0]  ;;  %v89_v0 = vld [vmem:[#allocation2 + $0x38] sm:$0xff]  ;;  %v5731_v4 = vpack.c.bf16 %v95_v61, %v87_v59 }
  0x67   :  { %2261 = vmatpush.bf16.msra.mxu1 %v4240_v3  ;;  %6475 = vst [vmem:[#allocation20_spill] sm:$0xff] %v5719_v22  ;;  %v5169_v30 = vld [vmem:[#allocation5 + $0xc4] sm:$0xf]  ;;  %v4352_v31 = vor.u32 %v5233_v28, %v4349_v29  ;;  %v4221_v39 = vld [vmem:[#allocation5 + $0x1d0] sm:$0xf0]  ;;  %v97_v1 = vld [vmem:[#allocation2 + $0x78] sm:$0xff] }
  0x68   :  { %1892 = vmatmul.bf16.gmra.mxu1 %v5669_v13  ;;  %6473 = vst [vmem:[#allocation18_spill] sm:$0xff] %v5715_v20  ;;  %v5265_v33 = vld [vmem:[#allocation5 + $0x3c4] sm:$0xf]  ;;  %v4096_v35 = vor.u32 %v5169_v30, %v4093_v32  ;;  %v88_v62 = vld [vmem:[#allocation2 + $0x30] sm:$0xff]  ;;  %v5736_v16 = vpack.c.bf16 %v97_v1, %v89_v0  ;;  %v103_v1 = vld [vmem:[#allocation2 + $0xa8] sm:$0xff] }
  0x69   :  { %1843 = vmatmul.bf16.gmra.mxu0 %v5667_v12  ;;  %v4480_v36 = vor.u32 %v5265_v33, %v4477_v34  ;;  %2311 = vmatpush.bf16.msra.mxu2 %v4352_v31  ;;  %v5201_v38 = vld [vmem:[#allocation5 + $0x1c4] sm:$0xf]  ;;  %v96_v63 = vld [vmem:[#allocation2 + $0x70] sm:$0xff]  ;;  %6478 = vst [vmem:[#allocation23_spill] sm:$0xff] %v5731_v4 }
  0x6a   :  { %1990 = vmatmul.bf16.gmra.mxu3 %v5673_v15  ;;  %2213 = vmatpush.bf16.msra.mxu0 %v4096_v35  ;;  %v4224_v55 = vor.u32 %v5201_v38, %v4221_v39  ;;  %v86_v56 = vld [vmem:[#allocation2 + $0x20] sm:$0xff]  ;;  %v5733_v5 = vpack.c.bf16 %v96_v63, %v88_v62  ;;  %6480 = vst [vmem:[#allocation25_spill] sm:$0xff] %v5736_v16  ;;  %v4333_v19 = vld [vmem:[#allocation5 + $0x2b0] sm:$0xf0] }
  0x6b   :  { %1941 = vmatmul.bf16.gmra.mxu2 %v5671_v14  ;;  %2360 = vmatpush.bf16.msra.mxu3 %v4480_v36  ;;  %v94_v58 = vld [vmem:[#allocation2 + $0x60] sm:$0xff]  ;;  %v4077_v30 = vld [vmem:[#allocation5 + $0xb0] sm:$0xf0] }
  0x6c   :  { %2262 = vmatpush.bf16.msra.mxu1 %v4224_v55  ;;  %v5729_v2 = vpack.c.bf16 %v94_v58, %v86_v56  ;;  %6479 = vst [vmem:[#allocation24_spill] sm:$0xff] %v5733_v5  ;;  %v5229_v18 = vld [vmem:[#allocation5 + $0x2a4] sm:$0xf]  ;;  %v4461_v32 = vld [vmem:[#allocation5 + $0x3b0] sm:$0xf0] }
  0x6d   :  { %v5165_v28 = vld [vmem:[#allocation5 + $0xa4] sm:$0xf]  ;;  %v4336_v29 = vor.u32 %v5229_v18, %v4333_v19  ;;  %v4205_v59 = vld [vmem:[#allocation5 + $0x1b0] sm:$0xf0]  ;;  %v113_v18 = vld [vmem:[#allocation2 + $0xf8] sm:$0xff] }
  0x6e   :  { %6477 = vst [vmem:[#allocation22_spill] sm:$0xff] %v5729_v2  ;;  %v5261_v31 = vld [vmem:[#allocation5 + $0x3a4] sm:$0xf]  ;;  %v4080_v34 = vor.u32 %v5165_v28, %v4077_v30 }
  0x6f   :  { %v4464_v35 = vor.u32 %v5261_v31, %v4461_v32  ;;  %2312 = vmatpush.bf16.msra.mxu2 %v4336_v29  ;;  %v5197_v58 = vld [vmem:[#allocation5 + $0x1a4] sm:$0xf] }
  0x70   :  { %2214 = vmatpush.bf16.msra.mxu0 %v4080_v34  ;;  %v4208_v62 = vor.u32 %v5197_v58, %v4205_v59  ;;  %v102_v63 = vld [vmem:[#allocation2 + $0xa0] sm:$0xff] }
  0x71   :  { %2361 = vmatpush.bf16.msra.mxu3 %v4464_v35  ;;  %v110_v0 = vld [vmem:[#allocation2 + $0xe0] sm:$0xff] }
  0x72   :  { %2263 = vmatpush.bf16.msra.mxu1 %v4208_v62  ;;  %v5745_v28 = vpack.c.bf16 %v110_v0, %v102_v63  ;;  %v5161_v58 = vld [vmem:[#allocation5 + $0x84] sm:$0xf]  ;;  %v4445_v63 = vld [vmem:[#allocation5 + $0x390] sm:$0xf0] }
  0x73   :  { %v5257_v62 = vld [vmem:[#allocation5 + $0x384] sm:$0xf] }
  0x74   :  { %6481 = vst [vmem:[#allocation26_spill] sm:$0xff] %v5745_v28 }
  0x78   :  { %1897 = vmatmul.bf16.gmra.mxu1 %v5681_v41 }
  0x79   :  { %1848 = vmatmul.bf16.gmra.mxu0 %v5679_v40 }
  0x7a   :  { %1995 = vmatmul.bf16.gmra.mxu3 %v5685_v43 }
  0x7b   :  { %1946 = vmatmul.bf16.gmra.mxu2 %v5683_v42 }
  0x88   :  { %1902 = vmatmul.bf16.gmra.mxu1 %v5693_v9 }
  0x89   :  { %1853 = vmatmul.bf16.gmra.mxu0 %v5691_v8 }
  0x8a   :  { %2000 = vmatmul.bf16.gmra.mxu3 %v5697_v11 }
  0x8b   :  { %1951 = vmatmul.bf16.gmra.mxu2 %v5695_v10 }
  0x98   :  { %1907 = vmatmul.bf16.gmra.mxu1 %v5705_v45 }
  0x99   :  { %1858 = vmatmul.bf16.gmra.mxu0 %v5703_v44 }
  0x9a   :  { %2005 = vmatmul.bf16.gmra.mxu3 %v5709_v47 }
  0x9b   :  { %1956 = vmatmul.bf16.gmra.mxu2 %v5707_v46 }
  0xa8   :  { %1912 = vmatmul.bf16.gmra.mxu1 %v5717_v21  ;;  %v207_v21 = vld [vmem:[#allocation2 + $0x3e8] sm:$0xff] }
  0xa9   :  { %1863 = vmatmul.bf16.gmra.mxu0 %v5715_v20 }
  0xaa   :  { %2010 = vmatmul.bf16.gmra.mxu3 %v5721_v23  ;;  %v183_v23 = vld [vmem:[#allocation2 + $0x328] sm:$0xff] }
  0xab   :  { %1961 = vmatmul.bf16.gmra.mxu2 %v5719_v22  ;;  %v4749_v22 = vld [vmem:[#allocation5 + $0x5f0] sm:$0xf0] }
  0xb5   :  { %v1878_v7 = vpop.f32.mrf.mxu1 }
  0xb6   :  { %v1829_v3 = vpop.f32.mrf.mxu0 }
  0xb7   :  { %v1830_v6 = vadd.f32 %v1829_v3, %v5727_v60  ;;  %v111_v3 = vld [vmem:[#allocation2 + $0xe8] sm:$0xff] }
  0xb8   :  { %2073 = vmatmul.bf16.vlgmr.msrb.gmra.mxu1 %v5731_v4  ;;  %v5747_v32 = vpack.c.bf16 %v111_v3, %v103_v1  ;;  %v4448_v3 = vor.u32 %v5257_v62, %v4445_v63  ;;  %v121_v62 = vld [vmem:[#allocation2 + $0x138] sm:$0xff]  ;;  %v167_v4 = vld [vmem:[#allocation2 + $0x2a8] sm:$0xff] }
  0xb9   :  { %v1879_v17 = vadd.f32 %v1878_v7, %v1830_v6  ;;  %2024 = vmatmul.bf16.vlgmr.msrb.gmra.mxu0 %v5729_v2  ;;  %v104_v6 = vld [vmem:[#allocation2 + $0xb0] sm:$0xff]  ;;  %v190_v2 = vld [vmem:[#allocation2 + $0x360] sm:$0xff] }
  0xba   :  { %2171 = vmatmul.bf16.vlgmr.msrb.gmra.mxu3 %v5736_v16  ;;  %v112_v7 = vld [vmem:[#allocation2 + $0xf0] sm:$0xff]  ;;  %6482 = vst [vmem:[#allocation27_spill] sm:$0xff] %v5747_v32  ;;  %v151_v16 = vld [vmem:[#allocation2 + $0x228] sm:$0xff] }
  0xbb   :  { %2122 = vmatmul.bf16.vlgmr.msrb.gmra.mxu2 %v5733_v5  ;;  %2362 = vmatpush.bf16.msra.mxu3 %v4448_v3  ;;  %v174_v5 = vld [vmem:[#allocation2 + $0x2e0] sm:$0xff] }
  0xbd   :  { %v1976_v37 = vpop.f32.mrf.mxu3  ;;  %v1880_v55 = vpop.f32.mrf.mxu1 }
  0xbe   :  { %v1927_v33 = vpop.f32.mrf.mxu2  ;;  %v1831_v38 = vpop.f32.mrf.mxu0 }
  0xbf   :  { %v1928_v36 = vadd.f32 %v1927_v33, %v1879_v17  ;;  %v1832_v39 = vadd.f32 %v1831_v38, %v5727_v60  ;;  %v105_v17 = vld [vmem:[#allocation2 + $0xb8] sm:$0xff]  ;;  %v5749_v33 = vpack.c.bf16 %v112_v7, %v104_v6 }
  0xc1   :  { %v5743_v56 = vadd.f32 %v1976_v37, %v1928_v36  ;;  %v1881_v61 = vadd.f32 %v1880_v55, %v1832_v39  ;;  %6483 = vst [vmem:[#allocation28_spill] sm:$0xff] %v5749_v33  ;;  %v5752_v36 = vpack.c.bf16 %v113_v18, %v105_v17  ;;  %v5225_v39 = vld [vmem:[#allocation5 + $0x284] sm:$0xf]  ;;  %v4317_v55 = vld [vmem:[#allocation5 + $0x290] sm:$0xf0] }
  0xc2   :  { %v4320_v59 = vor.u32 %v5225_v39, %v4317_v55  ;;  %v118_v39 = vld [vmem:[#allocation2 + $0x120] sm:$0xff] }
  0xc3   :  { %6484 = vst [vmem:[#allocation29_spill] sm:$0xff] %v5752_v36  ;;  %v126_v55 = vld [vmem:[#allocation2 + $0x160] sm:$0xff] }
  0xc4   :  { %2313 = vmatpush.bf16.msra.mxu2 %v4320_v59  ;;  %v129_v59 = vld [vmem:[#allocation2 + $0x178] sm:$0xff] }
  0xc5   :  { %v1978_v30 = vpop.f32.mrf.mxu3  ;;  %v1883_v35 = vpop.f32.mrf.mxu1 }
  0xc6   :  { %v1929_v19 = vpop.f32.mrf.mxu2  ;;  %v1834_v31 = vpop.f32.mrf.mxu0 }
  0xc7   :  { %v1930_v29 = vadd.f32 %v1929_v19, %v1881_v61  ;;  %v1835_v34 = vadd.f32 %v1834_v31, %v5727_v60  ;;  %v4061_v61 = vld [vmem:[#allocation5 + $0x90] sm:$0xf0] }
  0xc8   :  { %2078 = vmatmul.bf16.gmra.mxu1 %v5747_v32  ;;  %v4064_v1 = vor.u32 %v5161_v58, %v4061_v61  ;;  %v4189_v31 = vld [vmem:[#allocation5 + $0x190] sm:$0xf0]  ;;  %v127_v58 = vld [vmem:[#allocation2 + $0x168] sm:$0xff] }
  0xc9   :  { %v5754_v37 = vadd.f32 %v1978_v30, %v1930_v29  ;;  %v1884_v38 = vadd.f32 %v1883_v35, %v1835_v34  ;;  %2029 = vmatmul.bf16.gmra.mxu0 %v5745_v28  ;;  %v5193_v30 = vld [vmem:[#allocation5 + $0x184] sm:$0xf]  ;;  %v120_v61 = vld [vmem:[#allocation2 + $0x130] sm:$0xff]  ;;  %v135_v32 = vld [vmem:[#allocation2 + $0x1a8] sm:$0xff] }
  0xca   :  { %2176 = vmatmul.bf16.gmra.mxu3 %v5752_v36  ;;  %2215 = vmatpush.bf16.msra.mxu0 %v4064_v1  ;;  %v4192_v35 = vor.u32 %v5193_v30, %v4189_v31  ;;  %v119_v36 = vld [vmem:[#allocation2 + $0x128] sm:$0xff]  ;;  %v5770_v30 = vpack.c.bf16 %v129_v59, %v121_v62  ;;  %v158_v28 = vld [vmem:[#allocation2 + $0x260] sm:$0xff] }
  0xcb   :  { %2127 = vmatmul.bf16.gmra.mxu2 %v5749_v33  ;;  %v142_v33 = vld [vmem:[#allocation2 + $0x1e0] sm:$0xff] }
  0xcc   :  { %2264 = vmatpush.bf16.msra.mxu1 %v4192_v35  ;;  %6488 = vst [vmem:[#allocation33_spill] sm:$0xff] %v5770_v30 }
  0xcd   :  { %v1981_v7 = vpop.f32.mrf.mxu3  ;;  %v1885_v19 = vpop.f32.mrf.mxu1 }
  0xce   :  { %v1932_v0 = vpop.f32.mrf.mxu2  ;;  %v1836_v17 = vpop.f32.mrf.mxu0 }
  0xcf   :  { %v1933_v6 = vadd.f32 %v1932_v0, %v1884_v38  ;;  %v1837_v18 = vadd.f32 %v1836_v17, %v5727_v60  ;;  %v128_v38 = vld [vmem:[#allocation2 + $0x170] sm:$0xff]  ;;  %v5763_v0 = vpack.c.bf16 %v126_v55, %v118_v39  ;;  %v5157_v39 = vld [vmem:[#allocation5 + $0x64] sm:$0xf] }
  0xd0   :  { %v5767_v17 = vpack.c.bf16 %v128_v38, %v120_v61  ;;  %v5253_v61 = vld [vmem:[#allocation5 + $0x364] sm:$0xf]  ;;  %v4429_v38 = vld [vmem:[#allocation5 + $0x370] sm:$0xf0] }
  0xd1   :  { %v5761_v29 = vadd.f32 %v1981_v7, %v1933_v6  ;;  %v1886_v34 = vadd.f32 %v1885_v19, %v1837_v18  ;;  %6485 = vst [vmem:[#allocation30_spill] sm:$0xff] %v5763_v0  ;;  %v5765_v7 = vpack.c.bf16 %v127_v58, %v119_v36  ;;  %v5221_v36 = vld [vmem:[#allocation5 + $0x264] sm:$0xf]  ;;  %v4045_v58 = vld [vmem:[#allocation5 + $0x70] sm:$0xf0] }
  0xd2   :  { %6487 = vst [vmem:[#allocation32_spill] sm:$0xff] %v5767_v17  ;;  %v4048_v59 = vor.u32 %v5157_v39, %v4045_v58  ;;  %v143_v39 = vld [vmem:[#allocation2 + $0x1e8] sm:$0xff]  ;;  %v136_v58 = vld [vmem:[#allocation2 + $0x1b0] sm:$0xff] }
  0xd3   :  { %6486 = vst [vmem:[#allocation31_spill] sm:$0xff] %v5765_v7 }
  0xd4   :  { %2216 = vmatpush.bf16.msra.mxu0 %v4048_v59 }
  0xd5   :  { %v1983_v3 = vpop.f32.mrf.mxu3  ;;  %v1888_v19 = vpop.f32.mrf.mxu1 }
  0xd6   :  { %v1934_v63 = vpop.f32.mrf.mxu2  ;;  %v1839_v6 = vpop.f32.mrf.mxu0 }
  0xd7   :  { %v1935_v1 = vadd.f32 %v1934_v63, %v1886_v34  ;;  %v1840_v18 = vadd.f32 %v1839_v6, %v5727_v60  ;;  %v4301_v34 = vld [vmem:[#allocation5 + $0x270] sm:$0xf0]  ;;  %v4432_v63 = vor.u32 %v5253_v61, %v4429_v38  ;;  %v137_v61 = vld [vmem:[#allocation2 + $0x1b8] sm:$0xff] }
  0xd8   :  { %2083 = vmatmul.bf16.gmra.mxu1 %v5765_v7  ;;  %v4304_v55 = vor.u32 %v5221_v36, %v4301_v34  ;;  %v4173_v7 = vld [vmem:[#allocation5 + $0x170] sm:$0xf0] }
  0xd9   :  { %v5772_v31 = vadd.f32 %v1983_v3, %v1935_v1  ;;  %v1889_v35 = vadd.f32 %v1888_v19, %v1840_v18  ;;  %2034 = vmatmul.bf16.gmra.mxu0 %v5763_v0  ;;  %2363 = vmatpush.bf16.msra.mxu3 %v4432_v63  ;;  %v134_v0 = vld [vmem:[#allocation2 + $0x1a0] sm:$0xff] }
  0xda   :  { %2181 = vmatmul.bf16.gmra.mxu3 %v5770_v30  ;;  %2314 = vmatpush.bf16.msra.mxu2 %v4304_v55  ;;  %v145_v55 = vld [vmem:[#allocation2 + $0x1f8] sm:$0xff] }
  0xdb   :  { %2132 = vmatmul.bf16.gmra.mxu2 %v5767_v17  ;;  %v5189_v17 = vld [vmem:[#allocation5 + $0x164] sm:$0xf] }
  0xdc   :  { %v4176_v34 = vor.u32 %v5189_v17, %v4173_v7 }
  0xdd   :  { %v1986_v3 = vpop.f32.mrf.mxu3  ;;  %v1890_v19 = vpop.f32.mrf.mxu1 }
  0xde   :  { %v1937_v62 = vpop.f32.mrf.mxu2  ;;  %v1841_v6 = vpop.f32.mrf.mxu0  ;;  %2265 = vmatpush.bf16.msra.mxu1 %v4176_v34 }
  0xdf   :  { %v1938_v1 = vadd.f32 %v1937_v62, %v1889_v35  ;;  %v1842_v18 = vadd.f32 %v1841_v6, %v5727_v60  ;;  %v144_v35 = vld [vmem:[#allocation2 + $0x1f0] sm:$0xff]  ;;  %v5781_v62 = vpack.c.bf16 %v142_v33, %v134_v0  ;;  %v5153_v0 = vld [vmem:[#allocation5 + $0x44] sm:$0xf] }
  0xe0   :  { %v5785_v6 = vpack.c.bf16 %v144_v35, %v136_v58  ;;  %v4285_v33 = vld [vmem:[#allocation5 + $0x250] sm:$0xf0]  ;;  %v5249_v58 = vld [vmem:[#allocation5 + $0x344] sm:$0xf] }
  0xe1   :  { %v5779_v30 = vadd.f32 %v1986_v3, %v1938_v1  ;;  %v1891_v36 = vadd.f32 %v1890_v19, %v1842_v18  ;;  %6489 = vst [vmem:[#allocation34_spill] sm:$0xff] %v5781_v62  ;;  %v5783_v3 = vpack.c.bf16 %v143_v39, %v135_v32  ;;  %v5788_v18 = vpack.c.bf16 %v145_v55, %v137_v61  ;;  %v5217_v32 = vld [vmem:[#allocation5 + $0x244] sm:$0xf]  ;;  %v4029_v39 = vld [vmem:[#allocation5 + $0x50] sm:$0xf0] }
  0xe2   :  { %6491 = vst [vmem:[#allocation36_spill] sm:$0xff] %v5785_v6  ;;  %v4413_v35 = vld [vmem:[#allocation5 + $0x350] sm:$0xf0]  ;;  %v4032_v55 = vor.u32 %v5153_v0, %v4029_v39  ;;  %v159_v0 = vld [vmem:[#allocation2 + $0x268] sm:$0xff] }
  0xe3   :  { %6490 = vst [vmem:[#allocation35_spill] sm:$0xff] %v5783_v3  ;;  %v152_v39 = vld [vmem:[#allocation2 + $0x230] sm:$0xff] }
  0xe4   :  { %6492 = vst [vmem:[#allocation37_spill] sm:$0xff] %v5788_v18  ;;  %2217 = vmatpush.bf16.msra.mxu0 %v4032_v55 }
  0xe5   :  { %v1988_v63 = vpop.f32.mrf.mxu3  ;;  %v1893_v17 = vpop.f32.mrf.mxu1 }
  0xe6   :  { %v1939_v38 = vpop.f32.mrf.mxu2  ;;  %v1844_v1 = vpop.f32.mrf.mxu0 }
  0xe7   :  { %v1940_v59 = vadd.f32 %v1939_v38, %v1891_v36  ;;  %v1845_v7 = vadd.f32 %v1844_v1, %v5727_v60  ;;  %v4288_v36 = vor.u32 %v5217_v32, %v4285_v33  ;;  %v4416_v38 = vor.u32 %v5249_v58, %v4413_v35  ;;  %v153_v58 = vld [vmem:[#allocation2 + $0x238] sm:$0xff] }
  0xe8   :  { %2088 = vmatmul.bf16.gmra.mxu1 %v5783_v3  ;;  %v4157_v3 = vld [vmem:[#allocation5 + $0x150] sm:$0xf0] }
  0xe9   :  { %v5790_v19 = vadd.f32 %v1988_v63, %v1940_v59  ;;  %v1894_v34 = vadd.f32 %v1893_v17, %v1845_v7  ;;  %2039 = vmatmul.bf16.gmra.mxu0 %v5781_v62  ;;  %2315 = vmatpush.bf16.msra.mxu2 %v4288_v36  ;;  %v150_v62 = vld [vmem:[#allocation2 + $0x220] sm:$0xff]  ;;  %v161_v36 = vld [vmem:[#allocation2 + $0x278] sm:$0xff] }
  0xea   :  { %2186 = vmatmul.bf16.gmra.mxu3 %v5788_v18 }
  0xeb   :  { %2137 = vmatmul.bf16.gmra.mxu2 %v5785_v6  ;;  %2364 = vmatpush.bf16.msra.mxu3 %v4416_v38  ;;  %v5185_v6 = vld [vmem:[#allocation5 + $0x144] sm:$0xf] }
  0xec   :  { %v4160_v33 = vor.u32 %v5185_v6, %v4157_v3 }
  0xed   :  { %v1991_v63 = vpop.f32.mrf.mxu3  ;;  %v1895_v17 = vpop.f32.mrf.mxu1 }
  0xee   :  { %v1942_v61 = vpop.f32.mrf.mxu2  ;;  %v1846_v1 = vpop.f32.mrf.mxu0  ;;  %2266 = vmatpush.bf16.msra.mxu1 %v4160_v33 }
  0xef   :  { %v1943_v59 = vadd.f32 %v1942_v61, %v1894_v34  ;;  %v1847_v7 = vadd.f32 %v1846_v1, %v5727_v60  ;;  %v160_v34 = vld [vmem:[#allocation2 + $0x270] sm:$0xff]  ;;  %v5799_v61 = vpack.c.bf16 %v158_v28, %v150_v62  ;;  %v5149_v62 = vld [vmem:[#allocation5 + $0x24] sm:$0xf] }
  0xf0   :  { %v5803_v1 = vpack.c.bf16 %v160_v34, %v152_v39  ;;  %v4269_v28 = vld [vmem:[#allocation5 + $0x230] sm:$0xf0]  ;;  %v5245_v39 = vld [vmem:[#allocation5 + $0x324] sm:$0xf] }
  0xf1   :  { %v5797_v18 = vadd.f32 %v1991_v63, %v1943_v59  ;;  %v1896_v32 = vadd.f32 %v1895_v17, %v1847_v7  ;;  %6493 = vst [vmem:[#allocation38_spill] sm:$0xff] %v5799_v61  ;;  %v5801_v63 = vpack.c.bf16 %v159_v0, %v151_v16  ;;  %v5806_v7 = vpack.c.bf16 %v161_v36, %v153_v58  ;;  %v5213_v16 = vld [vmem:[#allocation5 + $0x224] sm:$0xf]  ;;  %v4013_v0 = vld [vmem:[#allocation5 + $0x30] sm:$0xf0] }
  0xf2   :  { %6495 = vst [vmem:[#allocation40_spill] sm:$0xff] %v5803_v1  ;;  %v4397_v34 = vld [vmem:[#allocation5 + $0x330] sm:$0xf0]  ;;  %v4016_v36 = vor.u32 %v5149_v62, %v4013_v0  ;;  %v175_v62 = vld [vmem:[#allocation2 + $0x2e8] sm:$0xff] }
  0xf3   :  { %6494 = vst [vmem:[#allocation39_spill] sm:$0xff] %v5801_v63  ;;  %v168_v0 = vld [vmem:[#allocation2 + $0x2b0] sm:$0xff] }
  0xf4   :  { %6496 = vst [vmem:[#allocation41_spill] sm:$0xff] %v5806_v7  ;;  %2218 = vmatpush.bf16.msra.mxu0 %v4016_v36 }
  0xf5   :  { %v1993_v38 = vpop.f32.mrf.mxu3  ;;  %v1898_v6 = vpop.f32.mrf.mxu1 }
  0xf6   :  { %v1944_v35 = vpop.f32.mrf.mxu2  ;;  %v1849_v59 = vpop.f32.mrf.mxu0 }
  0xf7   :  { %v1945_v55 = vadd.f32 %v1944_v35, %v1896_v32  ;;  %v1850_v3 = vadd.f32 %v1849_v59, %v5727_v60  ;;  %v4272_v32 = vor.u32 %v5213_v16, %v4269_v28  ;;  %v4400_v35 = vor.u32 %v5245_v39, %v4397_v34  ;;  %v169_v39 = vld [vmem:[#allocation2 + $0x2b8] sm:$0xff] }
  0xf8   :  { %2093 = vmatmul.bf16.gmra.mxu1 %v5801_v63  ;;  %v4141_v63 = vld [vmem:[#allocation5 + $0x130] sm:$0xf0] }
  0xf9   :  { %v5808_v17 = vadd.f32 %v1993_v38, %v1945_v55  ;;  %v1899_v33 = vadd.f32 %v1898_v6, %v1850_v3  ;;  %2044 = vmatmul.bf16.gmra.mxu0 %v5799_v61  ;;  %2316 = vmatpush.bf16.msra.mxu2 %v4272_v32  ;;  %v166_v61 = vld [vmem:[#allocation2 + $0x2a0] sm:$0xff]  ;;  %v177_v32 = vld [vmem:[#allocation2 + $0x2f8] sm:$0xff] }
  0xfa   :  { %2191 = vmatmul.bf16.gmra.mxu3 %v5806_v7 }
  0xfb   :  { %2142 = vmatmul.bf16.gmra.mxu2 %v5803_v1  ;;  %2365 = vmatpush.bf16.msra.mxu3 %v4400_v35  ;;  %v5181_v1 = vld [vmem:[#allocation5 + $0x124] sm:$0xf] }
  0xfc   :  { %v4144_v28 = vor.u32 %v5181_v1, %v4141_v63 }
  0xfd   :  { %v1996_v38 = vpop.f32.mrf.mxu3  ;;  %v1900_v6 = vpop.f32.mrf.mxu1 }
  0xfe   :  { %v1947_v58 = vpop.f32.mrf.mxu2  ;;  %v1851_v59 = vpop.f32.mrf.mxu0  ;;  %2267 = vmatpush.bf16.msra.mxu1 %v4144_v28 }
  0xff   :  { %v1948_v55 = vadd.f32 %v1947_v58, %v1899_v33  ;;  %v1852_v3 = vadd.f32 %v1851_v59, %v5727_v60  ;;  %v176_v33 = vld [vmem:[#allocation2 + $0x2f0] sm:$0xff]  ;;  %v5817_v58 = vpack.c.bf16 %v174_v5, %v166_v61  ;;  %v5145_v61 = vld [vmem:[#allocation5 + $0x4] sm:$0xf] }
 0x100   :  { %v5821_v59 = vpack.c.bf16 %v176_v33, %v168_v0  ;;  %v4253_v5 = vld [vmem:[#allocation5 + $0x210] sm:$0xf0]  ;;  %v5241_v0 = vld [vmem:[#allocation5 + $0x304] sm:$0xf] }
 0x101   :  { %v5815_v7 = vadd.f32 %v1996_v38, %v1948_v55  ;;  %v1901_v16 = vadd.f32 %v1900_v6, %v1852_v3  ;;  %6497 = vst [vmem:[#allocation42_spill] sm:$0xff] %v5817_v58  ;;  %v5819_v38 = vpack.c.bf16 %v175_v62, %v167_v4  ;;  %v5824_v3 = vpack.c.bf16 %v177_v32, %v169_v39  ;;  %v5209_v4 = vld [vmem:[#allocation5 + $0x204] sm:$0xf]  ;;  %v3997_v62 = vld [vmem:[#allocation5 + $0x10] sm:$0xf0] }
 0x102   :  { %6499 = vst [vmem:[#allocation44_spill] sm:$0xff] %v5821_v59  ;;  %v4381_v33 = vld [vmem:[#allocation5 + $0x310] sm:$0xf0]  ;;  %v4000_v32 = vor.u32 %v5145_v61, %v3997_v62  ;;  %v191_v61 = vld [vmem:[#allocation2 + $0x368] sm:$0xff] }
 0x103   :  { %6498 = vst [vmem:[#allocation43_spill] sm:$0xff] %v5819_v38  ;;  %v184_v62 = vld [vmem:[#allocation2 + $0x330] sm:$0xff] }
 0x104   :  { %6500 = vst [vmem:[#allocation45_spill] sm:$0xff] %v5824_v3  ;;  %2219 = vmatpush.bf16.msra.mxu0 %v4000_v32 }
 0x105   :  { %v1998_v35 = vpop.f32.mrf.mxu3  ;;  %v1903_v1 = vpop.f32.mrf.mxu1 }
 0x106   :  { %v1949_v34 = vpop.f32.mrf.mxu2  ;;  %v1854_v55 = vpop.f32.mrf.mxu0 }
 0x107   :  { %v1950_v36 = vadd.f32 %v1949_v34, %v1901_v16  ;;  %v1855_v63 = vadd.f32 %v1854_v55, %v5727_v60  ;;  %v4256_v16 = vor.u32 %v5209_v4, %v4253_v5  ;;  %v4384_v34 = vor.u32 %v5241_v0, %v4381_v33  ;;  %v185_v0 = vld [vmem:[#allocation2 + $0x338] sm:$0xff] }
 0x108   :  { %2098 = vmatmul.bf16.gmra.mxu1 %v5819_v38  ;;  %v4125_v38 = vld [vmem:[#allocation5 + $0x110] sm:$0xf0] }
 0x109   :  { %v5826_v6 = vadd.f32 %v1998_v35, %v1950_v36  ;;  %v1904_v28 = vadd.f32 %v1903_v1, %v1855_v63  ;;  %2049 = vmatmul.bf16.gmra.mxu0 %v5817_v58  ;;  %2317 = vmatpush.bf16.msra.mxu2 %v4256_v16  ;;  %v182_v58 = vld [vmem:[#allocation2 + $0x320] sm:$0xff]  ;;  %v193_v16 = vld [vmem:[#allocation2 + $0x378] sm:$0xff] }
 0x10a   :  { %2196 = vmatmul.bf16.gmra.mxu3 %v5824_v3 }
 0x10b   :  { %2147 = vmatmul.bf16.gmra.mxu2 %v5821_v59  ;;  %2366 = vmatpush.bf16.msra.mxu3 %v4384_v34  ;;  %v5177_v59 = vld [vmem:[#allocation5 + $0x104] sm:$0xf] }
 0x10c   :  { %v4128_v5 = vor.u32 %v5177_v59, %v4125_v38 }
 0x10d   :  { %v2001_v35 = vpop.f32.mrf.mxu3  ;;  %v1905_v1 = vpop.f32.mrf.mxu1 }
 0x10e   :  { %v1952_v39 = vpop.f32.mrf.mxu2  ;;  %v1856_v55 = vpop.f32.mrf.mxu0  ;;  %2268 = vmatpush.bf16.msra.mxu1 %v4128_v5 }
 0x10f   :  { %v1953_v36 = vadd.f32 %v1952_v39, %v1904_v28  ;;  %v1857_v63 = vadd.f32 %v1856_v55, %v5727_v60  ;;  %v192_v28 = vld [vmem:[#allocation2 + $0x370] sm:$0xff]  ;;  %v5835_v39 = vpack.c.bf16 %v190_v2, %v182_v58  ;;  %v5301_v58 = vld [vmem:[#allocation5 + $0x4e4] sm:$0xf] }
 0x110   :  { %v5839_v55 = vpack.c.bf16 %v192_v28, %v184_v62  ;;  %v4877_v2 = vld [vmem:[#allocation5 + $0x6f0] sm:$0xf0]  ;;  %v5397_v62 = vld [vmem:[#allocation5 + $0x7e4] sm:$0xf] }
 0x111   :  { %v5833_v3 = vadd.f32 %v2001_v35, %v1953_v36  ;;  %v1906_v4 = vadd.f32 %v1905_v1, %v1857_v63  ;;  %6501 = vst [vmem:[#allocation46_spill] sm:$0xff] %v5835_v39  ;;  %v5837_v35 = vpack.c.bf16 %v191_v61, %v183_v23  ;;  %v5842_v63 = vpack.c.bf16 %v193_v16, %v185_v0  ;;  %v5365_v23 = vld [vmem:[#allocation5 + $0x6e4] sm:$0xf]  ;;  %v4621_v61 = vld [vmem:[#allocation5 + $0x4f0] sm:$0xf0] }
 0x112   :  { %6503 = vst [vmem:[#allocation48_spill] sm:$0xff] %v5839_v55  ;;  %v5005_v28 = vld [vmem:[#allocation5 + $0x7f0] sm:$0xf0]  ;;  %v4624_v16 = vor.u32 %v5301_v58, %v4621_v61 }
 0x113   :  { %6502 = vst [vmem:[#allocation47_spill] sm:$0xff] %v5837_v35  ;;  %v200_v58 = vld [vmem:[#allocation2 + $0x3b0] sm:$0xff] }
 0x114   :  { %6504 = vst [vmem:[#allocation49_spill] sm:$0xff] %v5842_v63  ;;  %2408 = vmatpush.bf16.msrb.mxu0 %v4624_v16  ;;  %v208_v61 = vld [vmem:[#allocation2 + $0x3f0] sm:$0xff] }
 0x115   :  { %v2003_v34 = vpop.f32.mrf.mxu3  ;;  %v1908_v59 = vpop.f32.mrf.mxu1 }
 0x116   :  { %v1954_v33 = vpop.f32.mrf.mxu2  ;;  %v1859_v36 = vpop.f32.mrf.mxu0 }
 0x117   :  { %v1955_v32 = vadd.f32 %v1954_v33, %v1906_v4  ;;  %v1860_v38 = vadd.f32 %v1859_v36, %v5727_v60  ;;  %v4880_v4 = vor.u32 %v5365_v23, %v4877_v2  ;;  %v5008_v33 = vor.u32 %v5397_v62, %v5005_v28  ;;  %v206_v23 = vld [vmem:[#allocation2 + $0x3e0] sm:$0xff]  ;;  %v199_v2 = vld [vmem:[#allocation2 + $0x3a8] sm:$0xff]  ;;  %v201_v62 = vld [vmem:[#allocation2 + $0x3b8] sm:$0xff] }
 0x118   :  { %2103 = vmatmul.bf16.gmra.mxu1 %v5837_v35  ;;  %v198_v35 = vld [vmem:[#allocation2 + $0x3a0] sm:$0xff]  ;;  %v209_v28 = vld [vmem:[#allocation2 + $0x3f8] sm:$0xff] }
 0x119   :  { %v5844_v1 = vadd.f32 %v2003_v34, %v1955_v32  ;;  %v1909_v5 = vadd.f32 %v1908_v59, %v1860_v38  ;;  %2054 = vmatmul.bf16.gmra.mxu0 %v5835_v39  ;;  %2506 = vmatpush.bf16.msrb.mxu2 %v4880_v4  ;;  %v5333_v39 = vld [vmem:[#allocation5 + $0x5e4] sm:$0xf]  ;;  %v5860_v20 = vpack.c.bf16 %v209_v28, %v201_v62 }
 0x11a   :  { %2201 = vmatmul.bf16.gmra.mxu3 %v5842_v63 }
 0x11b   :  { %2152 = vmatmul.bf16.gmra.mxu2 %v5839_v55  ;;  %2555 = vmatpush.bf16.msrb.mxu3 %v5008_v33  ;;  %6508 = vst [vmem:[#allocation53_spill] sm:$0xff] %v5860_v20 }
 0x11d   :  { %v2006_v34 = vpop.f32.mrf.mxu3  ;;  %v1910_v59 = vpop.f32.mrf.mxu1 }
 0x11e   :  { %v1957_v0 = vpop.f32.mrf.mxu2  ;;  %v1861_v36 = vpop.f32.mrf.mxu0 }
 0x11f   :  { %v1958_v32 = vadd.f32 %v1957_v0, %v1909_v5  ;;  %v1862_v38 = vadd.f32 %v1861_v36, %v5727_v60  ;;  %v4752_v5 = vor.u32 %v5333_v39, %v4749_v22  ;;  %v5853_v0 = vpack.c.bf16 %v206_v23, %v198_v35  ;;  %v4861_v39 = vld [vmem:[#allocation5 + $0x6d0] sm:$0xf0]  ;;  %v5297_v35 = vld [vmem:[#allocation5 + $0x4c4] sm:$0xf] }
 0x120   :  { %v5857_v36 = vpack.c.bf16 %v208_v61, %v200_v58  ;;  %v5393_v58 = vld [vmem:[#allocation5 + $0x7c4] sm:$0xf]  ;;  %v4989_v61 = vld [vmem:[#allocation5 + $0x7d0] sm:$0xf0] }
 0x121   :  { %v5851_v63 = vadd.f32 %v2006_v34, %v1958_v32  ;;  %v1911_v55 = vadd.f32 %v1910_v59, %v1862_v38  ;;  %6505 = vst [vmem:[#allocation50_spill] sm:$0xff] %v5853_v0  ;;  %2457 = vmatpush.bf16.msrb.mxu1 %v4752_v5  ;;  %v5855_v34 = vpack.c.bf16 %v207_v21, %v199_v2  ;;  %v5361_v21 = vld [vmem:[#allocation5 + $0x6c4] sm:$0xf]  ;;  %v4605_v2 = vld [vmem:[#allocation5 + $0x4d0] sm:$0xf0] }
 0x122   :  { %6507 = vst [vmem:[#allocation52_spill] sm:$0xff] %v5857_v36  ;;  %v4864_v23 = vor.u32 %v5361_v21, %v4861_v39 }
 0x123   :  { %6506 = vst [vmem:[#allocation51_spill] sm:$0xff] %v5855_v34 }
 0x124   :  { %2507 = vmatpush.bf16.msrb.mxu2 %v4864_v23  ;;  %v5293_v23 = vld [vmem:[#allocation5 + $0x4a4] sm:$0xf] }
 0x125   :  { %v2008_v33 = vpop.f32.mrf.mxu3  ;;  %v1913_v59 = vpop.f32.mrf.mxu1 }
 0x126   :  { %v1959_v4 = vpop.f32.mrf.mxu2  ;;  %v1864_v32 = vpop.f32.mrf.mxu0 }
 0x127   :  { %v1960_v16 = vadd.f32 %v1959_v4, %v1911_v55  ;;  %v1865_v38 = vadd.f32 %v1864_v32, %v5727_v60  ;;  %v4608_v4 = vor.u32 %v5297_v35, %v4605_v2 }
 0x128   :  { %2108 = vmatmul.bf16.gmra.mxu1 %v5855_v34 }
 0x129   :  { %v5862_v47 = vadd.f32 %v2008_v33, %v1960_v16  ;;  %v1914_v22 = vadd.f32 %v1913_v59, %v1865_v38  ;;  %2059 = vmatmul.bf16.gmra.mxu0 %v5853_v0  ;;  %v4992_v16 = vor.u32 %v5393_v58, %v4989_v61 }
 0x12a   :  { %2206 = vmatmul.bf16.gmra.mxu3 %v5860_v20  ;;  %2409 = vmatpush.bf16.msrb.mxu0 %v4608_v4  ;;  %v5329_v20 = vld [vmem:[#allocation5 + $0x5c4] sm:$0xf] }
 0x12b   :  { %2157 = vmatmul.bf16.gmra.mxu2 %v5857_v36  ;;  %2556 = vmatpush.bf16.msrb.mxu3 %v4992_v16  ;;  %v4733_v36 = vld [vmem:[#allocation5 + $0x5d0] sm:$0xf0] }
 0x12c   :  { %v4736_v21 = vor.u32 %v5329_v20, %v4733_v36  ;;  %v5357_v20 = vld [vmem:[#allocation5 + $0x6a4] sm:$0xf]  ;;  %v4845_v36 = vld [vmem:[#allocation5 + $0x6b0] sm:$0xf0] }
 0x12d   :  { %v2011_v62 = vpop.f32.mrf.mxu3  ;;  %v1915_v32 = vpop.f32.mrf.mxu1  ;;  %v4848_v61 = vor.u32 %v5357_v20, %v4845_v36 }
 0x12e   :  { %v1962_v55 = vpop.f32.mrf.mxu2  ;;  %v1866_v28 = vpop.f32.mrf.mxu0  ;;  %2458 = vmatpush.bf16.msrb.mxu1 %v4736_v21 }
 0x12f   :  { %v1963_v5 = vadd.f32 %v1962_v55, %v1914_v22  ;;  %v1867_v33 = vadd.f32 %v1866_v28, %v5727_v60  ;;  %v4973_v28 = vld [vmem:[#allocation5 + $0x7b0] sm:$0xf0]  ;;  %2508 = vmatpush.bf16.msrb.mxu2 %v4848_v61 }
 0x131   :  { %v5869_v38 = vadd.f32 %v2011_v62, %v1963_v5  ;;  %v1916_v59 = vadd.f32 %v1915_v32, %v1867_v33  ;;  %v4589_v5 = vld [vmem:[#allocation5 + $0x4b0] sm:$0xf0]  ;;  %v5389_v62 = vld [vmem:[#allocation5 + $0x7a4] sm:$0xf] }
 0x132   :  { %v4592_v4 = vor.u32 %v5293_v23, %v4589_v5 }
 0x134   :  { %2410 = vmatpush.bf16.msrb.mxu0 %v4592_v4  ;;  %v4829_v4 = vld [vmem:[#allocation5 + $0x690] sm:$0xf0] }
 0x135   :  { %v2013_v22 = vpop.f32.mrf.mxu3  ;;  %v2074_v2 = vpop.f32.mrf.mxu1 }
 0x136   :  { %v1964_v39 = vpop.f32.mrf.mxu2  ;;  %v2025_v55 = vpop.f32.mrf.mxu0 }
 0x137   :  { %v1965_v34 = vadd.f32 %v1964_v39, %v1916_v59  ;;  %v2026_v35 = vadd.f32 %v2025_v55, %v5743_v56  ;;  %v5325_v55 = vld [vmem:[#allocation5 + $0x5a4] sm:$0xf] }
 0x138   :  { %2269 = vmatmul.bf16.vlgmr.msra.gmra.mxu1 %v5633_v53 }
 0x139   :  { %v5872_v58 = vadd.f32 %v2013_v22, %v1965_v34  ;;  %v2075_v60 = vadd.f32 %v2074_v2, %v2026_v35  ;;  %2220 = vmatmul.bf16.vlgmr.msra.gmra.mxu0 %v5631_v48  ;;  %v4976_v34 = vor.u32 %v5389_v62, %v4973_v28  ;;  %v4717_v35 = vld [vmem:[#allocation5 + $0x5b0] sm:$0xf0] }
 0x13a   :  { %2367 = vmatmul.bf16.vlgmr.msra.gmra.mxu3 %v5637_v57  ;;  %v4720_v2 = vor.u32 %v5325_v55, %v4717_v35 }
 0x13b   :  { %2318 = vmatmul.bf16.vlgmr.msra.gmra.mxu2 %v5635_v54  ;;  %2557 = vmatpush.bf16.msrb.mxu3 %v4976_v34  ;;  %v5289_v34 = vld [vmem:[#allocation5 + $0x484] sm:$0xf] }
 0x13c   :  { %2459 = vmatpush.bf16.msrb.mxu1 %v4720_v2 }
 0x13d   :  { %v2172_v33 = vpop.f32.mrf.mxu3  ;;  %v2076_v21 = vpop.f32.mrf.mxu1 }
 0x13e   :  { %v2123_v56 = vpop.f32.mrf.mxu2  ;;  %v2027_v32 = vpop.f32.mrf.mxu0 }
 0x13f   :  { %v2124_v16 = vadd.f32 %v2123_v56, %v2075_v60  ;;  %v2028_v59 = vadd.f32 %v2027_v32, %v5754_v37  ;;  %v5353_v56 = vld [vmem:[#allocation5 + $0x684] sm:$0xf] }
 0x140   :  { %v5385_v32 = vld [vmem:[#allocation5 + $0x784] sm:$0xf] }
 0x141   :  { %v2173_v39 = vadd.f32 %v2172_v33, %v2124_v16  ;;  %v2077_v22 = vadd.f32 %v2076_v21, %v2028_v59  ;;  %v4832_v33 = vor.u32 %v5353_v56, %v4829_v4 }
 0x143   :  { %v3388_v37 = vmax.f32 %v2173_v39, 0.0  ;;  %2509 = vmatpush.bf16.msrb.mxu2 %v4832_v33 }
 0x145   :  { %v2174_v57 = vpop.f32.mrf.mxu3  ;;  %v2079_v5 = vpop.f32.mrf.mxu1 }
 0x146   :  { %v2125_v20 = vpop.f32.mrf.mxu2  ;;  %v2030_v23 = vpop.f32.mrf.mxu0 }
 0x147   :  { %v2126_v36 = vadd.f32 %v2125_v20, %v2077_v22  ;;  %v2031_v60 = vadd.f32 %v2030_v23, %v5761_v29  ;;  %v4573_v29 = vld [vmem:[#allocation5 + $0x490] sm:$0xf0] }
 0x148   :  { %2274 = vmatmul.bf16.gmra.mxu1 %v5645_v25  ;;  %v4576_v21 = vor.u32 %v5289_v34, %v4573_v29 }
 0x149   :  { %v2175_v62 = vadd.f32 %v2174_v57, %v2126_v36  ;;  %v2080_v61 = vadd.f32 %v2079_v5, %v2031_v60  ;;  %2225 = vmatmul.bf16.gmra.mxu0 %v5643_v24  ;;  %v4957_v57 = vld [vmem:[#allocation5 + $0x790] sm:$0xf0]  ;;  %v5321_v60 = vld [vmem:[#allocation5 + $0x584] sm:$0xf] }
 0x14a   :  { %2372 = vmatmul.bf16.gmra.mxu3 %v5649_v27  ;;  %v4960_v22 = vor.u32 %v5385_v32, %v4957_v57  ;;  %2411 = vmatpush.bf16.msrb.mxu0 %v4576_v21  ;;  %v4701_v5 = vld [vmem:[#allocation5 + $0x590] sm:$0xf0]  ;;  %v5349_v57 = vld [vmem:[#allocation5 + $0x664] sm:$0xf] }
 0x14b   :  { %v3392_v28 = vmax.f32 %v2175_v62, 0.0  ;;  %2323 = vmatmul.bf16.gmra.mxu2 %v5647_v26  ;;  %v4704_v62 = vor.u32 %v5321_v60, %v4701_v5  ;;  %v5285_v21 = vld [vmem:[#allocation5 + $0x464] sm:$0xf] }
 0x14c   :  { %2558 = vmatpush.bf16.msrb.mxu3 %v4960_v22 }
 0x14d   :  { %v5884_v16 = vpack.c.bf16 %v3392_v28, %v3388_v37  ;;  %v2177_v55 = vpop.f32.mrf.mxu3  ;;  %v2081_v20 = vpop.f32.mrf.mxu1  ;;  %2460 = vmatpush.bf16.msrb.mxu1 %v4704_v62 }
 0x14e   :  { %v2128_v59 = vpop.f32.mrf.mxu2  ;;  %v2032_v35 = vpop.f32.mrf.mxu0 }
 0x14f   :  { %6509 = vst [vmem:[#allocation54_spill] sm:$0xff] %v5884_v16  ;;  %v2129_v39 = vadd.f32 %v2128_v59, %v2080_v61  ;;  %v2033_v2 = vadd.f32 %v2032_v35, %v5772_v31  ;;  %v4813_v59 = vld [vmem:[#allocation5 + $0x670] sm:$0xf0] }
 0x150   :  { %v4816_v22 = vor.u32 %v5349_v57, %v4813_v59 }
 0x151   :  { %v2178_v36 = vadd.f32 %v2177_v55, %v2129_v39  ;;  %v2082_v23 = vadd.f32 %v2081_v20, %v2033_v2  ;;  %v4557_v39 = vld [vmem:[#allocation5 + $0x470] sm:$0xf0]  ;;  %v5381_v55 = vld [vmem:[#allocation5 + $0x764] sm:$0xf] }
 0x152   :  { %v4560_v20 = vor.u32 %v5285_v21, %v4557_v39  ;;  %2510 = vmatpush.bf16.msrb.mxu2 %v4816_v22 }
 0x153   :  { %v3396_v31 = vmax.f32 %v2178_v36, 0.0 }
 0x154   :  { %2412 = vmatpush.bf16.msrb.mxu0 %v4560_v20 }
 0x155   :  { %v2179_v56 = vpop.f32.mrf.mxu3  ;;  %v2084_v34 = vpop.f32.mrf.mxu1 }
 0x156   :  { %v2130_v37 = vpop.f32.mrf.mxu2  ;;  %v2035_v4 = vpop.f32.mrf.mxu0 }
 0x157   :  { %v2131_v28 = vadd.f32 %v2130_v37, %v2082_v23  ;;  %v2036_v61 = vadd.f32 %v2035_v4, %v5779_v30  ;;  %v4941_v30 = vld [vmem:[#allocation5 + $0x770] sm:$0xf0]  ;;  %v5317_v4 = vld [vmem:[#allocation5 + $0x564] sm:$0xf] }
 0x158   :  { %2279 = vmatmul.bf16.gmra.mxu1 %v5657_v50  ;;  %v4944_v23 = vor.u32 %v5381_v55, %v4941_v30  ;;  %v5345_v55 = vld [vmem:[#allocation5 + $0x644] sm:$0xf]  ;;  %v4797_v30 = vld [vmem:[#allocation5 + $0x650] sm:$0xf0] }
 0x159   :  { %v2180_v29 = vadd.f32 %v2179_v56, %v2131_v28  ;;  %v2085_v33 = vadd.f32 %v2084_v34, %v2036_v61  ;;  %2230 = vmatmul.bf16.gmra.mxu0 %v5655_v49  ;;  %v4685_v61 = vld [vmem:[#allocation5 + $0x570] sm:$0xf0]  ;;  %v4800_v20 = vor.u32 %v5345_v55, %v4797_v30 }
 0x15a   :  { %2377 = vmatmul.bf16.gmra.mxu3 %v5661_v52  ;;  %v4688_v34 = vor.u32 %v5317_v4, %v4685_v61 }
 0x15b   :  { %v3400_v32 = vmax.f32 %v2180_v29, 0.0  ;;  %2328 = vmatmul.bf16.gmra.mxu2 %v5659_v51  ;;  %2559 = vmatpush.bf16.msrb.mxu3 %v4944_v23  ;;  %v4541_v23 = vld [vmem:[#allocation5 + $0x450] sm:$0xf0] }
 0x15c   :  { %2461 = vmatpush.bf16.msrb.mxu1 %v4688_v34  ;;  %2511 = vmatpush.bf16.msrb.mxu2 %v4800_v20 }
 0x15d   :  { %v5892_v35 = vpack.c.bf16 %v3400_v32, %v3396_v31  ;;  %v2182_v60 = vpop.f32.mrf.mxu3  ;;  %v2086_v37 = vpop.f32.mrf.mxu1 }
 0x15e   :  { %v2133_v2 = vpop.f32.mrf.mxu2  ;;  %v2037_v5 = vpop.f32.mrf.mxu0 }
 0x15f   :  { %6510 = vst [vmem:[#allocation55_spill] sm:$0xff] %v5892_v35  ;;  %v2134_v36 = vadd.f32 %v2133_v2, %v2085_v33  ;;  %v2038_v62 = vadd.f32 %v2037_v5, %v5790_v19  ;;  %v5281_v2 = vld [vmem:[#allocation5 + $0x444] sm:$0xf] }
 0x161   :  { %v2183_v28 = vadd.f32 %v2182_v60, %v2134_v36  ;;  %v2087_v56 = vadd.f32 %v2086_v37, %v2038_v62  ;;  %v5377_v36 = vld [vmem:[#allocation5 + $0x744] sm:$0xf]  ;;  %v4544_v62 = vor.u32 %v5281_v2, %v4541_v23 }
 0x162   :  { %v5341_v23 = vld [vmem:[#allocation5 + $0x624] sm:$0xf] }
 0x163   :  { %v3404_v19 = vmax.f32 %v2183_v28, 0.0  ;;  %2413 = vmatpush.bf16.msrb.mxu0 %v4544_v62  ;;  %v4525_v62 = vld [vmem:[#allocation5 + $0x430] sm:$0xf0] }
 0x165   :  { %v2184_v32 = vpop.f32.mrf.mxu3  ;;  %v2089_v59 = vpop.f32.mrf.mxu1 }
 0x166   :  { %v2135_v29 = vpop.f32.mrf.mxu2  ;;  %v2040_v57 = vpop.f32.mrf.mxu0 }
 0x167   :  { %v2136_v31 = vadd.f32 %v2135_v29, %v2087_v56  ;;  %v2041_v33 = vadd.f32 %v2040_v57, %v5797_v18  ;;  %v4925_v18 = vld [vmem:[#allocation5 + $0x750] sm:$0xf0] }
 0x168   :  { %2284 = vmatmul.bf16.gmra.mxu1 %v5669_v13  ;;  %v4928_v37 = vor.u32 %v5377_v36, %v4925_v18  ;;  %v4669_v57 = vld [vmem:[#allocation5 + $0x550] sm:$0xf0]  ;;  %v5277_v18 = vld [vmem:[#allocation5 + $0x424] sm:$0xf] }
 0x169   :  { %v2185_v21 = vadd.f32 %v2184_v32, %v2136_v31  ;;  %v2090_v22 = vadd.f32 %v2089_v59, %v2041_v33  ;;  %2235 = vmatmul.bf16.gmra.mxu0 %v5667_v12  ;;  %v5313_v32 = vld [vmem:[#allocation5 + $0x544] sm:$0xf]  ;;  %v4781_v36 = vld [vmem:[#allocation5 + $0x630] sm:$0xf0] }
 0x16a   :  { %2382 = vmatmul.bf16.gmra.mxu3 %v5673_v15  ;;  %v4672_v33 = vor.u32 %v5313_v32, %v4669_v57 }
 0x16b   :  { %v3408_v39 = vmax.f32 %v2185_v21, 0.0  ;;  %2333 = vmatmul.bf16.gmra.mxu2 %v5671_v14  ;;  %2560 = vmatpush.bf16.msrb.mxu3 %v4928_v37  ;;  %v5373_v37 = vld [vmem:[#allocation5 + $0x724] sm:$0xf] }
 0x16c   :  { %2462 = vmatpush.bf16.msrb.mxu1 %v4672_v33 }
 0x16d   :  { %v5900_v60 = vpack.c.bf16 %v3408_v39, %v3404_v19  ;;  %v2187_v56 = vpop.f32.mrf.mxu3  ;;  %v2091_v34 = vpop.f32.mrf.mxu1 }
 0x16e   :  { %v2138_v5 = vpop.f32.mrf.mxu2  ;;  %v2042_v4 = vpop.f32.mrf.mxu0 }
 0x16f   :  { %6511 = vst [vmem:[#allocation56_spill] sm:$0xff] %v5900_v60  ;;  %v2139_v28 = vadd.f32 %v2138_v5, %v2090_v22  ;;  %v2043_v61 = vadd.f32 %v2042_v4, %v5808_v17  ;;  %v4784_v5 = vor.u32 %v5341_v23, %v4781_v36  ;;  %v4528_v4 = vor.u32 %v5277_v18, %v4525_v62  ;;  %v4765_v62 = vld [vmem:[#allocation5 + $0x610] sm:$0xf0]  ;;  %v5196_v60 = vld [vmem:[#allocation5 + $0x194] sm:$0xf0] }
 0x171   :  { %v2188_v29 = vadd.f32 %v2187_v56, %v2139_v28  ;;  %v2092_v31 = vadd.f32 %v2091_v34, %v2043_v61  ;;  %2512 = vmatpush.bf16.msrb.mxu2 %v4784_v5  ;;  %2414 = vmatpush.bf16.msrb.mxu0 %v4528_v4  ;;  %v5337_v5 = vld [vmem:[#allocation5 + $0x604] sm:$0xf] }
 0x172   :  { %v5369_v4 = vld [vmem:[#allocation5 + $0x704] sm:$0xf] }
 0x173   :  { %v3412_v17 = vmax.f32 %v2188_v29, 0.0 }
 0x175   :  { %v2189_v19 = vpop.f32.mrf.mxu3  ;;  %v2094_v55 = vpop.f32.mrf.mxu1 }
 0x176   :  { %v2140_v59 = vpop.f32.mrf.mxu2  ;;  %v2045_v39 = vpop.f32.mrf.mxu0 }
 0x177   :  { %v2141_v21 = vadd.f32 %v2140_v59, %v2092_v31  ;;  %v2046_v22 = vadd.f32 %v2045_v39, %v5815_v7  ;;  %v4909_v7 = vld [vmem:[#allocation5 + $0x730] sm:$0xf0] }
 0x178   :  { %2289 = vmatmul.bf16.gmra.mxu1 %v5681_v41  ;;  %v4912_v61 = vor.u32 %v5373_v37, %v4909_v7  ;;  %v5273_v37 = vld [vmem:[#allocation5 + $0x404] sm:$0xf]  ;;  %v4768_v7 = vor.u32 %v5337_v5, %v4765_v62 }
 0x179   :  { %v2190_v30 = vadd.f32 %v2189_v19, %v2141_v21  ;;  %v2095_v2 = vadd.f32 %v2094_v55, %v2046_v22  ;;  %2240 = vmatmul.bf16.gmra.mxu0 %v5679_v40  ;;  %v5309_v21 = vld [vmem:[#allocation5 + $0x524] sm:$0xf]  ;;  %v4653_v19 = vld [vmem:[#allocation5 + $0x530] sm:$0xf0] }
 0x17a   :  { %2387 = vmatmul.bf16.gmra.mxu3 %v5685_v43  ;;  %v4656_v39 = vor.u32 %v5309_v21, %v4653_v19  ;;  %2513 = vmatpush.bf16.msrb.mxu2 %v4768_v7  ;;  %v4371_v7 = vld [vmem:[#allocation5 + $0x2e8] sm:$0xf] }
 0x17b   :  { %v3416_v20 = vmax.f32 %v2190_v30, 0.0  ;;  %2338 = vmatmul.bf16.gmra.mxu2 %v5683_v42  ;;  %2561 = vmatpush.bf16.msrb.mxu3 %v4912_v61 }
 0x17c   :  { %2463 = vmatpush.bf16.msrb.mxu1 %v4656_v39 }
 0x17d   :  { %v5908_v28 = vpack.c.bf16 %v3416_v20, %v3412_v17  ;;  %v2192_v29 = vpop.f32.mrf.mxu3  ;;  %v2096_v57 = vpop.f32.mrf.mxu1 }
 0x17e   :  { %v2143_v56 = vpop.f32.mrf.mxu2  ;;  %v2047_v31 = vpop.f32.mrf.mxu0 }
 0x17f   :  { %6512 = vst [vmem:[#allocation57_spill] sm:$0xff] %v5908_v28  ;;  %v2144_v34 = vadd.f32 %v2143_v56, %v2095_v2  ;;  %v2048_v32 = vadd.f32 %v2047_v31, %v5826_v6  ;;  %v4509_v56 = vld [vmem:[#allocation5 + $0x410] sm:$0xf0]  ;;  %v4195_v28 = vld [vmem:[#allocation5 + $0x188] sm:$0xf] }
 0x181   :  { %v2193_v33 = vadd.f32 %v2192_v29, %v2144_v34  ;;  %v2097_v59 = vadd.f32 %v2096_v57, %v2048_v32  ;;  %v4512_v29 = vor.u32 %v5273_v37, %v4509_v56  ;;  %v6514_v37 = vld [vmem:[#allocation17_spill] sm:$0xff] }
 0x182   :  { %v5240_v56 = vld [vmem:[#allocation5 + $0x2f4] sm:$0xf0] }
 0x183   :  { %v3420_v6 = vmax.f32 %v2193_v33, 0.0  ;;  %2415 = vmatpush.bf16.msrb.mxu0 %v4512_v29  ;;  %v4499_v29 = vld [vmem:[#allocation5 + $0x3e8] sm:$0xf] }
 0x185   :  { %v2194_v30 = vpop.f32.mrf.mxu3  ;;  %v2099_v20 = vpop.f32.mrf.mxu1 }
 0x186   :  { %v2145_v22 = vpop.f32.mrf.mxu2  ;;  %v2050_v17 = vpop.f32.mrf.mxu0 }
 0x187   :  { %v2146_v55 = vadd.f32 %v2145_v22, %v2097_v59  ;;  %v2051_v2 = vadd.f32 %v2050_v17, %v5833_v3  ;;  %v4893_v3 = vld [vmem:[#allocation5 + $0x710] sm:$0xf0]  ;;  %v5305_v22 = vld [vmem:[#allocation5 + $0x504] sm:$0xf] }
 0x188   :  { %2294 = vmatmul.bf16.gmra.mxu1 %v5693_v9  ;;  %v4896_v31 = vor.u32 %v5369_v4, %v4893_v3  ;;  %v4115_v4 = vld [vmem:[#allocation5 + $0xe8] sm:$0xf]  ;;  %v4372_v3 = vor.u32 %v5240_v56, %v4371_v7  ;;  %v6516_v56 = vld [vmem:[#allocation18_spill] sm:$0xff] }
 0x189   :  { %v2195_v23 = vadd.f32 %v2194_v30, %v2146_v55  ;;  %v2100_v36 = vadd.f32 %v2099_v20, %v2051_v2  ;;  %2245 = vmatmul.bf16.gmra.mxu0 %v5691_v8  ;;  %v4637_v55 = vld [vmem:[#allocation5 + $0x510] sm:$0xf0] }
 0x18a   :  { %2392 = vmatmul.bf16.gmra.mxu3 %v5697_v11  ;;  %v4640_v30 = vor.u32 %v5305_v22, %v4637_v55  ;;  %2702 = vmatpush.bf16.msra.mxu2 %v4372_v3  ;;  %v6517_v3 = vld [vmem:[#allocation19_spill] sm:$0xff] }
 0x18b   :  { %v3424_v18 = vmax.f32 %v2195_v23, 0.0  ;;  %2343 = vmatmul.bf16.gmra.mxu2 %v5695_v10  ;;  %2562 = vmatpush.bf16.msrb.mxu3 %v4896_v31 }
 0x18c   :  { %2464 = vmatpush.bf16.msrb.mxu1 %v4640_v30  ;;  %v4243_v30 = vld [vmem:[#allocation5 + $0x1e8] sm:$0xf] }
 0x18d   :  { %v5916_v61 = vpack.c.bf16 %v3424_v18, %v3420_v6  ;;  %v2197_v57 = vpop.f32.mrf.mxu3  ;;  %v2101_v21 = vpop.f32.mrf.mxu1 }
 0x18e   :  { %v2148_v34 = vpop.f32.mrf.mxu2  ;;  %v2052_v33 = vpop.f32.mrf.mxu0 }
 0x18f   :  { %6513 = vst [vmem:[#allocation58_spill] sm:$0xff] %v5916_v61  ;;  %v2149_v32 = vadd.f32 %v2148_v34, %v2100_v36  ;;  %v2053_v59 = vadd.f32 %v2052_v33, %v5844_v1  ;;  %v5176_v34 = vld [vmem:[#allocation5 + $0xf4] sm:$0xf0] }
 0x191   :  { %v2198_v19 = vadd.f32 %v2197_v57, %v2149_v32  ;;  %v2102_v39 = vadd.f32 %v2101_v21, %v2053_v59  ;;  %v4116_v57 = vor.u32 %v5176_v34, %v4115_v4  ;;  %v6518_v34 = vld [vmem:[#allocation20_spill] sm:$0xff] }
 0x193   :  { %v3428_v1 = vmax.f32 %v2198_v19, 0.0  ;;  %2604 = vmatpush.bf16.msra.mxu0 %v4116_v57  ;;  %v4099_v57 = vld [vmem:[#allocation5 + $0xc8] sm:$0xf] }
 0x195   :  { %v2199_v20 = vpop.f32.mrf.mxu3  ;;  %v2104_v6 = vpop.f32.mrf.mxu1 }
 0x196   :  { %v2150_v17 = vpop.f32.mrf.mxu2  ;;  %v2055_v23 = vpop.f32.mrf.mxu0 }
 0x197   :  { %v2151_v2 = vadd.f32 %v2150_v17, %v2102_v39  ;;  %v2056_v36 = vadd.f32 %v2055_v23, %v5851_v63  ;;  %v5272_v63 = vld [vmem:[#allocation5 + $0x3f4] sm:$0xf0] }
 0x198   :  { %2299 = vmatmul.bf16.gmra.mxu1 %v5705_v45  ;;  %v4500_v33 = vor.u32 %v5272_v63, %v4499_v29  ;;  %v5208_v17 = vld [vmem:[#allocation5 + $0x1f4] sm:$0xf0]  ;;  %v4355_v63 = vld [vmem:[#allocation5 + $0x2c8] sm:$0xf] }
 0x199   :  { %v2200_v18 = vadd.f32 %v2199_v20, %v2151_v2  ;;  %v2105_v5 = vadd.f32 %v2104_v6, %v2056_v36  ;;  %2250 = vmatmul.bf16.gmra.mxu0 %v5703_v44  ;;  %v4244_v20 = vor.u32 %v5208_v17, %v4243_v30  ;;  %v6519_v29 = vld [vmem:[#allocation21_spill] sm:$0xff] }
 0x19a   :  { %2397 = vmatmul.bf16.gmra.mxu3 %v6514_v37 }
 0x19b   :  { %v3432_v62 = vmax.f32 %v2200_v18, 0.0  ;;  %2348 = vmatmul.bf16.gmra.mxu2 %v5707_v46  ;;  %2751 = vmatpush.bf16.msra.mxu3 %v4500_v33 }
 0x19c   :  { %2653 = vmatpush.bf16.msra.mxu1 %v4244_v20 }
 0x19d   :  { %v5924_v31 = vpack.c.bf16 %v3432_v62, %v3428_v1  ;;  %v2202_v21 = vpop.f32.mrf.mxu3  ;;  %v2106_v22 = vpop.f32.mrf.mxu1 }
 0x19e   :  { %v2153_v32 = vpop.f32.mrf.mxu2  ;;  %v2057_v19 = vpop.f32.mrf.mxu0 }
 0x19f   :  { %6515 = vst [vmem:[#allocation17_spill] sm:$0xff] %v5924_v31  ;;  %v2154_v59 = vadd.f32 %v2153_v32, %v2105_v5  ;;  %v2058_v39 = vadd.f32 %v2057_v19, %v5862_v47  ;;  %v5236_v32 = vld [vmem:[#allocation5 + $0x2d4] sm:$0xf0] }
 0x1a0   :  { %v4356_v33 = vor.u32 %v5236_v32, %v4355_v63 }
 0x1a1   :  { %v2203_v55 = vadd.f32 %v2202_v21, %v2154_v59  ;;  %v2107_v2 = vadd.f32 %v2106_v22, %v2058_v39  ;;  %v5172_v59 = vld [vmem:[#allocation5 + $0xd4] sm:$0xf0]  ;;  %v4483_v21 = vld [vmem:[#allocation5 + $0x3c8] sm:$0xf] }
 0x1a2   :  { %v4100_v22 = vor.u32 %v5172_v59, %v4099_v57  ;;  %2703 = vmatpush.bf16.msra.mxu2 %v4356_v33 }
 0x1a3   :  { %v3436_v47 = vmax.f32 %v2203_v55, 0.0 }
 0x1a4   :  { %2605 = vmatpush.bf16.msra.mxu0 %v4100_v22  ;;  %v6522_v22 = vld [vmem:[#allocation23_spill] sm:$0xff] }
 0x1a5   :  { %v2204_v6 = vpop.f32.mrf.mxu3  ;;  %v2109_v1 = vpop.f32.mrf.mxu1 }
 0x1a6   :  { %v2155_v23 = vpop.f32.mrf.mxu2  ;;  %v2060_v18 = vpop.f32.mrf.mxu0 }
 0x1a7   :  { %v2156_v36 = vadd.f32 %v2155_v23, %v2107_v2  ;;  %v2061_v5 = vadd.f32 %v2060_v18, %v5869_v38  ;;  %v5268_v38 = vld [vmem:[#allocation5 + $0x3d4] sm:$0xf0] }
 0x1a8   :  { %2304 = vmatmul.bf16.gmra.mxu1 %v6517_v3  ;;  %v4484_v30 = vor.u32 %v5268_v38, %v4483_v21  ;;  %v5204_v18 = vld [vmem:[#allocation5 + $0x1d4] sm:$0xf0]  ;;  %v6521_v21 = vld [vmem:[#allocation22_spill] sm:$0xff] }
 0x1a9   :  { %v2205_v62 = vadd.f32 %v2204_v6, %v2156_v36  ;;  %v2110_v7 = vadd.f32 %v2109_v1, %v2061_v5  ;;  %2255 = vmatmul.bf16.gmra.mxu0 %v6516_v56  ;;  %v4227_v6 = vld [vmem:[#allocation5 + $0x1c8] sm:$0xf] }
 0x1aa   :  { %2402 = vmatmul.bf16.gmra.mxu3 %v6519_v29  ;;  %v4228_v1 = vor.u32 %v5204_v18, %v4227_v6  ;;  %v5168_v6 = vld [vmem:[#allocation5 + $0xb4] sm:$0xf0]  ;;  %v4467_v18 = vld [vmem:[#allocation5 + $0x3a8] sm:$0xf] }
 0x1ab   :  { %v3440_v4 = vmax.f32 %v2205_v62, 0.0  ;;  %2353 = vmatmul.bf16.gmra.mxu2 %v6518_v34  ;;  %2752 = vmatpush.bf16.msra.mxu3 %v4484_v30  ;;  %v5446_v62 = vld [vmem:[#allocation7] sm:$0xf]  ;;  %v6523_v30 = vld [vmem:[#allocation24_spill] sm:$0xff] }
 0x1ac   :  { %2654 = vmatpush.bf16.msra.mxu1 %v4228_v1 }
 0x1ad   :  { %v5932_v19 = vpack.c.bf16 %v3440_v4, %v3436_v47  ;;  %v2207_v17 = vpop.f32.mrf.mxu3  ;;  %v2111_v23 = vpop.f32.mrf.mxu1  ;;  %v5935_v47 = vperm.slane %v5446_v62, 1 }
 0x1ae   :  { %v2158_v39 = vpop.f32.mrf.mxu2  ;;  %v2062_v2 = vpop.f32.mrf.mxu0 }
 0x1af   :  { %6520 = vst [vmem:[#allocation18_spill] sm:$0xff] %v5932_v19  ;;  %v2159_v55 = vadd.f32 %v2158_v39, %v2110_v7  ;;  %v2063_v20 = vadd.f32 %v2062_v2, %v5872_v58  ;;  %v5232_v2 = vld [vmem:[#allocation5 + $0x2b4] sm:$0xf0] }
 0x1b1   :  { %v2208_v36 = vadd.f32 %v2207_v17, %v2159_v55  ;;  %v2112_v5 = vadd.f32 %v2111_v23, %v2063_v20  ;;  %v6524_v55 = vld [vmem:[#allocation25_spill] sm:$0xff]  ;;  %v4339_v17 = vld [vmem:[#allocation5 + $0x2a8] sm:$0xf] }
 0x1b2   :  { %v4083_v20 = vld [vmem:[#allocation5 + $0xa8] sm:$0xf]  ;;  %v4340_v23 = vor.u32 %v5232_v2, %v4339_v17  ;;  %v5200_v2 = vld [vmem:[#allocation5 + $0x1b4] sm:$0xf0] }
 0x1b3   :  { %v3444_v38 = vmax.f32 %v2208_v36, 0.0  ;;  %v4211_v17 = vld [vmem:[#allocation5 + $0x1a8] sm:$0xf] }
 0x1b4   :  { %2704 = vmatpush.bf16.msra.mxu2 %v4340_v23  ;;  %v4212_v31 = vor.u32 %v5200_v2, %v4211_v17  ;;  %v5260_v17 = vld [vmem:[#allocation5 + $0x394] sm:$0xf0] }
 0x1b5   :  { %v2209_v7 = vpop.f32.mrf.mxu3  ;;  %v2270_v33 = vpop.f32.mrf.mxu1 }
 0x1b6   :  { %v2160_v4 = vpop.f32.mrf.mxu2  ;;  %v2221_v32 = vpop.f32.mrf.mxu0  ;;  %2655 = vmatpush.bf16.msra.mxu1 %v4212_v31  ;;  %v5228_v31 = vld [vmem:[#allocation5 + $0x294] sm:$0xf0] }
 0x1b7   :  { %v2161_v63 = vadd.f32 %v2160_v4, %v2112_v5  ;;  %v2222_v57 = vadd.f32 %v2221_v32, %v5935_v47  ;;  %v5264_v5 = vld [vmem:[#allocation5 + $0x3b4] sm:$0xf0]  ;;  %v4084_v4 = vor.u32 %v5168_v6, %v4083_v20 }
 0x1b8   :  { %2465 = vmatmul.bf16.vlgmr.msrb.gmra.mxu1 %v6522_v22 }
 0x1b9   :  { %v2210_v58 = vadd.f32 %v2209_v7, %v2161_v63  ;;  %v2271_v59 = vadd.f32 %v2270_v33, %v2222_v57  ;;  %2416 = vmatmul.bf16.vlgmr.msrb.gmra.mxu0 %v6521_v21  ;;  %v4468_v63 = vor.u32 %v5264_v5, %v4467_v18 }
 0x1ba   :  { %2563 = vmatmul.bf16.vlgmr.msrb.gmra.mxu3 %v6524_v55  ;;  %2606 = vmatpush.bf16.msra.mxu0 %v4084_v4  ;;  %v6527_v4 = vld [vmem:[#allocation27_spill] sm:$0xff] }
 0x1bb   :  { %v3448_v39 = vmax.f32 %v2210_v58, 0.0  ;;  %2514 = vmatmul.bf16.vlgmr.msrb.gmra.mxu2 %v6523_v30  ;;  %2753 = vmatpush.bf16.msra.mxu3 %v4468_v63  ;;  %v6528_v63 = vld [vmem:[#allocation28_spill] sm:$0xff] }
 0x1bd   :  { %v5942_v1 = vpack.c.bf16 %v3448_v39, %v3444_v38  ;;  %v2368_v7 = vpop.f32.mrf.mxu3  ;;  %v2272_v33 = vpop.f32.mrf.mxu1 }
 0x1be   :  { %v2319_v62 = vpop.f32.mrf.mxu2  ;;  %v2223_v32 = vpop.f32.mrf.mxu0 }
 0x1bf   :  { %6525 = vst [vmem:[#allocation59_spill] sm:$0xff] %v5942_v1  ;;  %v2320_v36 = vadd.f32 %v2319_v62, %v2271_v59  ;;  %v2224_v57 = vadd.f32 %v2223_v32, %v5935_v47  ;;  %v6526_v62 = vld [vmem:[#allocation26_spill] sm:$0xff]  ;;  %v4067_v32 = vld [vmem:[#allocation5 + $0x88] sm:$0xf] }
 0x1c1   :  { %v5945_v58 = vadd.f32 %v2368_v7, %v2320_v36  ;;  %v2273_v19 = vadd.f32 %v2272_v33, %v2224_v57  ;;  %v6529_v36 = vld [vmem:[#allocation29_spill] sm:$0xff]  ;;  %v4323_v7 = vld [vmem:[#allocation5 + $0x288] sm:$0xf] }
 0x1c2   :  { %v5164_v57 = vld [vmem:[#allocation5 + $0x94] sm:$0xf0]  ;;  %v4451_v33 = vld [vmem:[#allocation5 + $0x388] sm:$0xf] }
 0x1c5   :  { %v2370_v20 = vpop.f32.mrf.mxu3  ;;  %v2275_v18 = vpop.f32.mrf.mxu1 }
 0x1c6   :  { %v2321_v38 = vpop.f32.mrf.mxu2  ;;  %v2226_v6 = vpop.f32.mrf.mxu0 }
 0x1c7   :  { %v2322_v39 = vadd.f32 %v2321_v38, %v2273_v19  ;;  %v2227_v59 = vadd.f32 %v2226_v6, %v5935_v47  ;;  %v4324_v19 = vor.u32 %v5228_v31, %v4323_v7  ;;  %v4068_v38 = vor.u32 %v5164_v57, %v4067_v32 }
 0x1c8   :  { %2470 = vmatmul.bf16.gmra.mxu1 %v6527_v4  ;;  %v4196_v31 = vor.u32 %v5196_v60, %v4195_v28  ;;  %v4307_v60 = vld [vmem:[#allocation5 + $0x268] sm:$0xf]  ;;  %v5224_v28 = vld [vmem:[#allocation5 + $0x274] sm:$0xf0] }
 0x1c9   :  { %v5948_v23 = vadd.f32 %v2370_v20, %v2322_v39  ;;  %v2276_v5 = vadd.f32 %v2275_v18, %v2227_v59  ;;  %2421 = vmatmul.bf16.gmra.mxu0 %v6526_v62  ;;  %v4452_v39 = vor.u32 %v5260_v17, %v4451_v33  ;;  %2705 = vmatpush.bf16.msra.mxu2 %v4324_v19 }
 0x1ca   :  { %2568 = vmatmul.bf16.gmra.mxu3 %v6529_v36  ;;  %2607 = vmatpush.bf16.msra.mxu0 %v4068_v38  ;;  %v6531_v38 = vld [vmem:[#allocation31_spill] sm:$0xff] }
 0x1cb   :  { %2519 = vmatmul.bf16.gmra.mxu2 %v6528_v63  ;;  %2754 = vmatpush.bf16.msra.mxu3 %v4452_v39  ;;  %v6532_v39 = vld [vmem:[#allocation32_spill] sm:$0xff] }
 0x1cc   :  { %2656 = vmatpush.bf16.msra.mxu1 %v4196_v31 }
 0x1cd   :  { %v2373_v6 = vpop.f32.mrf.mxu3  ;;  %v2277_v1 = vpop.f32.mrf.mxu1 }
 0x1ce   :  { %v2324_v2 = vpop.f32.mrf.mxu2  ;;  %v2228_v59 = vpop.f32.mrf.mxu0 }
 0x1cf   :  { %v2325_v20 = vadd.f32 %v2324_v2, %v2276_v5  ;;  %v2229_v18 = vadd.f32 %v2228_v59, %v5935_v47  ;;  %v6530_v2 = vld [vmem:[#allocation30_spill] sm:$0xff]  ;;  %v4435_v59 = vld [vmem:[#allocation5 + $0x368] sm:$0xf] }
 0x1d1   :  { %v5955_v61 = vadd.f32 %v2373_v6, %v2325_v20  ;;  %v2278_v7 = vadd.f32 %v2277_v1, %v2229_v18  ;;  %v6533_v20 = vld [vmem:[#allocation33_spill] sm:$0xff]  ;;  %v4051_v1 = vld [vmem:[#allocation5 + $0x68] sm:$0xf] }
 0x1d2   :  { %v5160_v6 = vld [vmem:[#allocation5 + $0x74] sm:$0xf0] }
 0x1d3   :  { %v5256_v18 = vld [vmem:[#allocation5 + $0x374] sm:$0xf0]  ;;  %v4052_v31 = vor.u32 %v5160_v6, %v4051_v1 }
 0x1d5   :  { %v2375_v32 = vpop.f32.mrf.mxu3  ;;  %v2280_v33 = vpop.f32.mrf.mxu1  ;;  %2608 = vmatpush.bf16.msra.mxu0 %v4052_v31  ;;  %v6535_v31 = vld [vmem:[#allocation35_spill] sm:$0xff] }
 0x1d6   :  { %v2326_v35 = vpop.f32.mrf.mxu2  ;;  %v2231_v57 = vpop.f32.mrf.mxu0 }
 0x1d7   :  { %v2327_v16 = vadd.f32 %v2326_v35, %v2278_v7  ;;  %v2232_v5 = vadd.f32 %v2231_v57, %v5935_v47  ;;  %v4308_v35 = vor.u32 %v5224_v28, %v4307_v60 }
 0x1d8   :  { %2475 = vmatmul.bf16.gmra.mxu1 %v6531_v38 }
 0x1d9   :  { %v5958_v19 = vadd.f32 %v2375_v32, %v2327_v16  ;;  %v2281_v17 = vadd.f32 %v2280_v33, %v2232_v5  ;;  %2426 = vmatmul.bf16.gmra.mxu0 %v6530_v2  ;;  %v4436_v16 = vor.u32 %v5256_v18, %v4435_v59  ;;  %2706 = vmatpush.bf16.msra.mxu2 %v4308_v35  ;;  %v5192_v2 = vld [vmem:[#allocation5 + $0x174] sm:$0xf0] }
 0x1da   :  { %2573 = vmatmul.bf16.gmra.mxu3 %v6533_v20 }
 0x1db   :  { %2524 = vmatmul.bf16.gmra.mxu2 %v6532_v39  ;;  %2755 = vmatpush.bf16.msra.mxu3 %v4436_v16  ;;  %v4179_v39 = vld [vmem:[#allocation5 + $0x168] sm:$0xf]  ;;  %v6536_v16 = vld [vmem:[#allocation36_spill] sm:$0xff] }
 0x1dc   :  { %v4180_v28 = vor.u32 %v5192_v2, %v4179_v39  ;;  %v4291_v2 = vld [vmem:[#allocation5 + $0x248] sm:$0xf] }
 0x1dd   :  { %v2378_v57 = vpop.f32.mrf.mxu3  ;;  %v2282_v38 = vpop.f32.mrf.mxu1  ;;  %v4035_v39 = vld [vmem:[#allocation5 + $0x48] sm:$0xf] }
 0x1de   :  { %v2329_v7 = vpop.f32.mrf.mxu2  ;;  %v2233_v5 = vpop.f32.mrf.mxu0  ;;  %2657 = vmatpush.bf16.msra.mxu1 %v4180_v28 }
 0x1df   :  { %v2330_v32 = vadd.f32 %v2329_v7, %v2281_v17  ;;  %v2234_v33 = vadd.f32 %v2233_v5, %v5935_v47  ;;  %v6534_v7 = vld [vmem:[#allocation34_spill] sm:$0xff]  ;;  %v4419_v5 = vld [vmem:[#allocation5 + $0x348] sm:$0xf] }
 0x1e1   :  { %v5965_v20 = vadd.f32 %v2378_v57, %v2330_v32  ;;  %v2283_v60 = vadd.f32 %v2282_v38, %v2234_v33  ;;  %v6537_v32 = vld [vmem:[#allocation37_spill] sm:$0xff] }
 0x1e2   :  { %v5220_v38 = vld [vmem:[#allocation5 + $0x254] sm:$0xf0] }
 0x1e3   :  { %v5156_v57 = vld [vmem:[#allocation5 + $0x54] sm:$0xf0] }
 0x1e4   :  { %v5252_v33 = vld [vmem:[#allocation5 + $0x354] sm:$0xf0]  ;;  %v4036_v28 = vor.u32 %v5156_v57, %v4035_v39 }
 0x1e5   :  { %v2380_v1 = vpop.f32.mrf.mxu3  ;;  %v2285_v59 = vpop.f32.mrf.mxu1 }
 0x1e6   :  { %v2331_v36 = vpop.f32.mrf.mxu2  ;;  %v2236_v6 = vpop.f32.mrf.mxu0  ;;  %2609 = vmatpush.bf16.msra.mxu0 %v4036_v28  ;;  %v6539_v28 = vld [vmem:[#allocation39_spill] sm:$0xff] }
 0x1e7   :  { %v2332_v63 = vadd.f32 %v2331_v36, %v2283_v60  ;;  %v2237_v17 = vadd.f32 %v2236_v6, %v5935_v47  ;;  %v4292_v36 = vor.u32 %v5220_v38, %v4291_v2 }
 0x1e8   :  { %2480 = vmatmul.bf16.gmra.mxu1 %v6535_v31 }
 0x1e9   :  { %v5968_v35 = vadd.f32 %v2380_v1, %v2332_v63  ;;  %v2286_v18 = vadd.f32 %v2285_v59, %v2237_v17  ;;  %2431 = vmatmul.bf16.gmra.mxu0 %v6534_v7  ;;  %v4420_v63 = vor.u32 %v5252_v33, %v4419_v5  ;;  %2707 = vmatpush.bf16.msra.mxu2 %v4292_v36  ;;  %v5188_v7 = vld [vmem:[#allocation5 + $0x154] sm:$0xf0] }
 0x1ea   :  { %2578 = vmatmul.bf16.gmra.mxu3 %v6537_v32 }
 0x1eb   :  { %2529 = vmatmul.bf16.gmra.mxu2 %v6536_v16  ;;  %2756 = vmatpush.bf16.msra.mxu3 %v4420_v63  ;;  %v4163_v16 = vld [vmem:[#allocation5 + $0x148] sm:$0xf]  ;;  %v6540_v63 = vld [vmem:[#allocation40_spill] sm:$0xff] }
 0x1ec   :  { %v4164_v38 = vor.u32 %v5188_v7, %v4163_v16  ;;  %v4275_v7 = vld [vmem:[#allocation5 + $0x228] sm:$0xf] }
 0x1ed   :  { %v2383_v6 = vpop.f32.mrf.mxu3  ;;  %v2287_v31 = vpop.f32.mrf.mxu1  ;;  %v4019_v16 = vld [vmem:[#allocation5 + $0x28] sm:$0xf] }
 0x1ee   :  { %v2334_v60 = vpop.f32.mrf.mxu2  ;;  %v2238_v17 = vpop.f32.mrf.mxu0  ;;  %2658 = vmatpush.bf16.msra.mxu1 %v4164_v38 }
 0x1ef   :  { %v2335_v1 = vadd.f32 %v2334_v60, %v2286_v18  ;;  %v2239_v59 = vadd.f32 %v2238_v17, %v5935_v47  ;;  %v6538_v60 = vld [vmem:[#allocation38_spill] sm:$0xff]  ;;  %v4403_v17 = vld [vmem:[#allocation5 + $0x328] sm:$0xf] }
 0x1f1   :  { %v5975_v32 = vadd.f32 %v2383_v6, %v2335_v1  ;;  %v2288_v2 = vadd.f32 %v2287_v31, %v2239_v59  ;;  %v6541_v1 = vld [vmem:[#allocation41_spill] sm:$0xff] }
 0x1f2   :  { %v5216_v31 = vld [vmem:[#allocation5 + $0x234] sm:$0xf0] }
 0x1f3   :  { %v5152_v6 = vld [vmem:[#allocation5 + $0x34] sm:$0xf0] }
 0x1f4   :  { %v5248_v59 = vld [vmem:[#allocation5 + $0x334] sm:$0xf0]  ;;  %v4020_v38 = vor.u32 %v5152_v6, %v4019_v16 }
 0x1f5   :  { %v2385_v39 = vpop.f32.mrf.mxu3  ;;  %v2290_v5 = vpop.f32.mrf.mxu1 }
 0x1f6   :  { %v2336_v4 = vpop.f32.mrf.mxu2  ;;  %v2241_v57 = vpop.f32.mrf.mxu0  ;;  %2610 = vmatpush.bf16.msra.mxu0 %v4020_v38  ;;  %v6543_v38 = vld [vmem:[#allocation43_spill] sm:$0xff] }
 0x1f7   :  { %v2337_v62 = vadd.f32 %v2336_v4, %v2288_v2  ;;  %v2242_v18 = vadd.f32 %v2241_v57, %v5935_v47  ;;  %v4276_v4 = vor.u32 %v5216_v31, %v4275_v7 }
 0x1f8   :  { %2485 = vmatmul.bf16.gmra.mxu1 %v6539_v28 }
 0x1f9   :  { %v5978_v36 = vadd.f32 %v2385_v39, %v2337_v62  ;;  %v2291_v33 = vadd.f32 %v2290_v5, %v2242_v18  ;;  %2436 = vmatmul.bf16.gmra.mxu0 %v6538_v60  ;;  %v4404_v62 = vor.u32 %v5248_v59, %v4403_v17  ;;  %2708 = vmatpush.bf16.msra.mxu2 %v4276_v4  ;;  %v5184_v60 = vld [vmem:[#allocation5 + $0x134] sm:$0xf0] }
 0x1fa   :  { %2583 = vmatmul.bf16.gmra.mxu3 %v6541_v1 }
 0x1fb   :  { %2534 = vmatmul.bf16.gmra.mxu2 %v6540_v63  ;;  %2757 = vmatpush.bf16.msra.mxu3 %v4404_v62  ;;  %v4147_v63 = vld [vmem:[#allocation5 + $0x128] sm:$0xf]  ;;  %v6544_v62 = vld [vmem:[#allocation44_spill] sm:$0xff] }
 0x1fc   :  { %v4148_v31 = vor.u32 %v5184_v60, %v4147_v63  ;;  %v4259_v60 = vld [vmem:[#allocation5 + $0x208] sm:$0xf] }
 0x1fd   :  { %v2388_v57 = vpop.f32.mrf.mxu3  ;;  %v2292_v28 = vpop.f32.mrf.mxu1  ;;  %v4003_v63 = vld [vmem:[#allocation5 + $0x8] sm:$0xf] }
 0x1fe   :  { %v2339_v2 = vpop.f32.mrf.mxu2  ;;  %v2243_v18 = vpop.f32.mrf.mxu0  ;;  %2659 = vmatpush.bf16.msra.mxu1 %v4148_v31 }
 0x1ff   :  { %v2340_v39 = vadd.f32 %v2339_v2, %v2291_v33  ;;  %v2244_v5 = vadd.f32 %v2243_v18, %v5935_v47  ;;  %v6542_v2 = vld [vmem:[#allocation42_spill] sm:$0xff]  ;;  %v4387_v18 = vld [vmem:[#allocation5 + $0x308] sm:$0xf] }
 0x201   :  { %v5985_v1 = vadd.f32 %v2388_v57, %v2340_v39  ;;  %v2293_v7 = vadd.f32 %v2292_v28, %v2244_v5  ;;  %v6545_v39 = vld [vmem:[#allocation45_spill] sm:$0xff] }
 0x202   :  { %v5212_v28 = vld [vmem:[#allocation5 + $0x214] sm:$0xf0] }
 0x203   :  { %v5148_v57 = vld [vmem:[#allocation5 + $0x14] sm:$0xf0] }
 0x204   :  { %v5244_v5 = vld [vmem:[#allocation5 + $0x314] sm:$0xf0]  ;;  %v4004_v31 = vor.u32 %v5148_v57, %v4003_v63 }
 0x205   :  { %v2390_v16 = vpop.f32.mrf.mxu3  ;;  %v2295_v17 = vpop.f32.mrf.mxu1 }
 0x206   :  { %v2341_v55 = vpop.f32.mrf.mxu2  ;;  %v2246_v6 = vpop.f32.mrf.mxu0  ;;  %2611 = vmatpush.bf16.msra.mxu0 %v4004_v31  ;;  %v6547_v31 = vld [vmem:[#allocation47_spill] sm:$0xff] }
 0x207   :  { %v2342_v30 = vadd.f32 %v2341_v55, %v2293_v7  ;;  %v2247_v33 = vadd.f32 %v2246_v6, %v5935_v47  ;;  %v4260_v55 = vor.u32 %v5212_v28, %v4259_v60 }
 0x208   :  { %2490 = vmatmul.bf16.gmra.mxu1 %v6543_v38 }
 0x209   :  { %v5988_v4 = vadd.f32 %v2390_v16, %v2342_v30  ;;  %v2296_v59 = vadd.f32 %v2295_v17, %v2247_v33  ;;  %2441 = vmatmul.bf16.gmra.mxu0 %v6542_v2  ;;  %v4388_v30 = vor.u32 %v5244_v5, %v4387_v18  ;;  %2709 = vmatpush.bf16.msra.mxu2 %v4260_v55  ;;  %v5180_v2 = vld [vmem:[#allocation5 + $0x114] sm:$0xf0] }
 0x20a   :  { %2588 = vmatmul.bf16.gmra.mxu3 %v6545_v39 }
 0x20b   :  { %2539 = vmatmul.bf16.gmra.mxu2 %v6544_v62  ;;  %2758 = vmatpush.bf16.msra.mxu3 %v4388_v30  ;;  %v4131_v62 = vld [vmem:[#allocation5 + $0x108] sm:$0xf]  ;;  %v6548_v30 = vld [vmem:[#allocation48_spill] sm:$0xff] }
 0x20c   :  { %v4132_v28 = vor.u32 %v5180_v2, %v4131_v62  ;;  %v4883_v2 = vld [vmem:[#allocation5 + $0x6e8] sm:$0xf] }
 0x20d   :  { %v2393_v6 = vpop.f32.mrf.mxu3  ;;  %v2297_v38 = vpop.f32.mrf.mxu1  ;;  %v4627_v62 = vld [vmem:[#allocation5 + $0x4e8] sm:$0xf] }
 0x20e   :  { %v2344_v7 = vpop.f32.mrf.mxu2  ;;  %v2248_v33 = vpop.f32.mrf.mxu0  ;;  %2660 = vmatpush.bf16.msra.mxu1 %v4132_v28 }
 0x20f   :  { %v2345_v16 = vadd.f32 %v2344_v7, %v2296_v59  ;;  %v2249_v17 = vadd.f32 %v2248_v33, %v5935_v47  ;;  %v6546_v7 = vld [vmem:[#allocation46_spill] sm:$0xff]  ;;  %v5011_v33 = vld [vmem:[#allocation5 + $0x7e8] sm:$0xf] }
 0x211   :  { %v5995_v39 = vadd.f32 %v2393_v6, %v2345_v16  ;;  %v2298_v60 = vadd.f32 %v2297_v38, %v2249_v17  ;;  %v6549_v16 = vld [vmem:[#allocation49_spill] sm:$0xff] }
 0x212   :  { %v5368_v38 = vld [vmem:[#allocation5 + $0x6f4] sm:$0xf0] }
 0x213   :  { %v5304_v6 = vld [vmem:[#allocation5 + $0x4f4] sm:$0xf0] }
 0x214   :  { %v5400_v17 = vld [vmem:[#allocation5 + $0x7f4] sm:$0xf0]  ;;  %v4628_v28 = vor.u32 %v5304_v6, %v4627_v62 }
 0x215   :  { %v2395_v63 = vpop.f32.mrf.mxu3  ;;  %v2300_v18 = vpop.f32.mrf.mxu1 }
 0x216   :  { %v2346_v22 = vpop.f32.mrf.mxu2  ;;  %v2251_v57 = vpop.f32.mrf.mxu0  ;;  %2800 = vmatpush.bf16.msrb.mxu0 %v4628_v28  ;;  %v6551_v28 = vld [vmem:[#allocation52_spill] sm:$0xff] }
 0x217   :  { %v2347_v21 = vadd.f32 %v2346_v22, %v2298_v60  ;;  %v2252_v59 = vadd.f32 %v2251_v57, %v5935_v47  ;;  %v4884_v22 = vor.u32 %v5368_v38, %v4883_v2  ;;  %v5336_v2 = vld [vmem:[#allocation5 + $0x5f4] sm:$0xf0] }
 0x218   :  { %2495 = vmatmul.bf16.gmra.mxu1 %v6547_v31 }
 0x219   :  { %v5998_v55 = vadd.f32 %v2395_v63, %v2347_v21  ;;  %v2301_v5 = vadd.f32 %v2300_v18, %v2252_v59  ;;  %2446 = vmatmul.bf16.gmra.mxu0 %v6546_v7  ;;  %v5012_v21 = vor.u32 %v5400_v17, %v5011_v33  ;;  %2898 = vmatpush.bf16.msrb.mxu2 %v4884_v22  ;;  %v4755_v7 = vld [vmem:[#allocation5 + $0x5e8] sm:$0xf] }
 0x21a   :  { %2593 = vmatmul.bf16.gmra.mxu3 %v6549_v16  ;;  %v4756_v38 = vor.u32 %v5336_v2, %v4755_v7  ;;  %v4867_v7 = vld [vmem:[#allocation5 + $0x6c8] sm:$0xf] }
 0x21b   :  { %2544 = vmatmul.bf16.gmra.mxu2 %v6548_v30  ;;  %2947 = vmatpush.bf16.msrb.mxu3 %v5012_v21  ;;  %v5364_v21 = vld [vmem:[#allocation5 + $0x6d4] sm:$0xf0] }
 0x21c   :  { %2849 = vmatpush.bf16.msrb.mxu1 %v4756_v38 }
 0x21d   :  { %v2398_v57 = vpop.f32.mrf.mxu3  ;;  %v2302_v31 = vpop.f32.mrf.mxu1 }
 0x21e   :  { %v2349_v60 = vpop.f32.mrf.mxu2  ;;  %v2253_v59 = vpop.f32.mrf.mxu0 }
 0x21f   :  { %v2350_v63 = vadd.f32 %v2349_v60, %v2301_v5  ;;  %v2254_v18 = vadd.f32 %v2253_v59, %v5935_v47  ;;  %v6550_v60 = vld [vmem:[#allocation51_spill] sm:$0xff] }
 0x220   :  { %v4995_v59 = vld [vmem:[#allocation5 + $0x7c8] sm:$0xf] }
 0x221   :  { %v6005_v16 = vadd.f32 %v2398_v57, %v2350_v63  ;;  %v2303_v30 = vadd.f32 %v2302_v31, %v2254_v18  ;;  %v6552_v31 = vld [vmem:[#allocation53_spill] sm:$0xff]  ;;  %v4611_v63 = vld [vmem:[#allocation5 + $0x4c8] sm:$0xf] }
 0x222   :  { %v5300_v57 = vld [vmem:[#allocation5 + $0x4d4] sm:$0xf0] }
 0x223   :  { %v5396_v18 = vld [vmem:[#allocation5 + $0x7d4] sm:$0xf0] }
 0x225   :  { %v2400_v62 = vpop.f32.mrf.mxu3  ;;  %v2305_v33 = vpop.f32.mrf.mxu1 }
 0x226   :  { %v2351_v29 = vpop.f32.mrf.mxu2  ;;  %v2256_v6 = vpop.f32.mrf.mxu0 }
 0x227   :  { %v2352_v34 = vadd.f32 %v2351_v29, %v2303_v30  ;;  %v2257_v5 = vadd.f32 %v2256_v6, %v5935_v47  ;;  %v4868_v30 = vor.u32 %v5364_v21, %v4867_v7  ;;  %v4996_v6 = vor.u32 %v5396_v18, %v4995_v59  ;;  %v4595_v18 = vld [vmem:[#allocation5 + $0x4a8] sm:$0xf] }
 0x228   :  { %2500 = vmatmul.bf16.gmra.mxu1 %v6550_v60  ;;  %v4739_v60 = vld [vmem:[#allocation5 + $0x5c8] sm:$0xf] }
 0x229   :  { %v6008_v22 = vadd.f32 %v2400_v62, %v2352_v34  ;;  %v2306_v17 = vadd.f32 %v2305_v33, %v2257_v5  ;;  %2451 = vmatmul.bf16.gmra.mxu0 %v5853_v0  ;;  %v4612_v62 = vor.u32 %v5300_v57, %v4611_v63  ;;  %2899 = vmatpush.bf16.msrb.mxu2 %v4868_v30  ;;  %v5332_v0 = vld [vmem:[#allocation5 + $0x5d4] sm:$0xf0]  ;;  %v6553_v30 = vld [vmem:[#allocation16_spill] sm:$0xff] }
 0x22a   :  { %2598 = vmatmul.bf16.gmra.mxu3 %v6552_v31  ;;  %v4740_v7 = vor.u32 %v5332_v0, %v4739_v60  ;;  %v4851_v0 = vld [vmem:[#allocation5 + $0x6a8] sm:$0xf]  ;;  %v5360_v60 = vld [vmem:[#allocation5 + $0x6b4] sm:$0xf0] }
 0x22b   :  { %2549 = vmatmul.bf16.gmra.mxu2 %v6551_v28  ;;  %2801 = vmatpush.bf16.msrb.mxu0 %v4612_v62 }
 0x22c   :  { %2948 = vmatpush.bf16.msrb.mxu3 %v4996_v6  ;;  %2850 = vmatpush.bf16.msrb.mxu1 %v4740_v7 }
 0x22d   :  { %v2403_v34 = vpop.f32.mrf.mxu3  ;;  %v2307_v33 = vpop.f32.mrf.mxu1 }
 0x22e   :  { %v2354_v29 = vpop.f32.mrf.mxu2  ;;  %v2258_v38 = vpop.f32.mrf.mxu0 }
 0x22f   :  { %v2355_v2 = vadd.f32 %v2354_v29, %v2306_v17  ;;  %v2259_v5 = vadd.f32 %v2258_v38, %v5935_v47  ;;  %v5392_v38 = vld [vmem:[#allocation5 + $0x7b4] sm:$0xf0] }
 0x231   :  { %v6015_v28 = vadd.f32 %v2403_v34, %v2355_v2  ;;  %v2308_v31 = vadd.f32 %v2307_v33, %v2259_v5  ;;  %v5296_v2 = vld [vmem:[#allocation5 + $0x4b4] sm:$0xf0]  ;;  %v4979_v34 = vld [vmem:[#allocation5 + $0x7a8] sm:$0xf] }
 0x232   :  { %v4596_v62 = vor.u32 %v5296_v2, %v4595_v18 }
 0x234   :  { %2802 = vmatpush.bf16.msrb.mxu0 %v4596_v62  ;;  %v5356_v62 = vld [vmem:[#allocation5 + $0x694] sm:$0xf0] }
 0x235   :  { %v2405_v17 = vpop.f32.mrf.mxu3  ;;  %v2466_v57 = vpop.f32.mrf.mxu1 }
 0x236   :  { %v2356_v21 = vpop.f32.mrf.mxu2  ;;  %v2417_v29 = vpop.f32.mrf.mxu0 }
 0x237   :  { %v2357_v3 = vadd.f32 %v2356_v21, %v2308_v31  ;;  %v2418_v63 = vadd.f32 %v2417_v29, %v5945_v58  ;;  %v4852_v31 = vor.u32 %v5360_v60, %v4851_v0 }
 0x238   :  { %2661 = vmatmul.bf16.vlgmr.msra.gmra.mxu1 %v5633_v53 }
 0x239   :  { %v6018_v59 = vadd.f32 %v2405_v17, %v2357_v3  ;;  %v2467_v47 = vadd.f32 %v2466_v57, %v2418_v63  ;;  %2612 = vmatmul.bf16.vlgmr.msra.gmra.mxu0 %v5631_v48  ;;  %v4980_v3 = vor.u32 %v5392_v38, %v4979_v34  ;;  %2900 = vmatpush.bf16.msrb.mxu2 %v4852_v31  ;;  %v4723_v63 = vld [vmem:[#allocation5 + $0x5a8] sm:$0xf]  ;;  %v5328_v57 = vld [vmem:[#allocation5 + $0x5b4] sm:$0xf0] }
 0x23a   :  { %2759 = vmatmul.bf16.vlgmr.msra.gmra.mxu3 %v6553_v30  ;;  %v4724_v0 = vor.u32 %v5328_v57, %v4723_v63 }
 0x23b   :  { %2710 = vmatmul.bf16.vlgmr.msra.gmra.mxu2 %v5635_v54  ;;  %2949 = vmatpush.bf16.msrb.mxu3 %v4980_v3  ;;  %v4579_v3 = vld [vmem:[#allocation5 + $0x488] sm:$0xf] }
 0x23c   :  { %2851 = vmatpush.bf16.msrb.mxu1 %v4724_v0 }
 0x23d   :  { %v2564_v5 = vpop.f32.mrf.mxu3  ;;  %v2468_v21 = vpop.f32.mrf.mxu1 }
 0x23e   :  { %v2515_v58 = vpop.f32.mrf.mxu2  ;;  %v2419_v33 = vpop.f32.mrf.mxu0 }
 0x23f   :  { %v2516_v6 = vadd.f32 %v2515_v58, %v2467_v47  ;;  %v2420_v7 = vadd.f32 %v2419_v33, %v5948_v23  ;;  %v4835_v58 = vld [vmem:[#allocation5 + $0x688] sm:$0xf] }
 0x240   :  { %v4963_v33 = vld [vmem:[#allocation5 + $0x788] sm:$0xf] }
 0x241   :  { %v2565_v17 = vadd.f32 %v2564_v5, %v2516_v6  ;;  %v2469_v29 = vadd.f32 %v2468_v21, %v2420_v7  ;;  %v4836_v5 = vor.u32 %v5356_v62, %v4835_v58 }
 0x243   :  { %v3389_v23 = vmax.f32 %v2565_v17, 0.0  ;;  %2901 = vmatpush.bf16.msrb.mxu2 %v4836_v5 }
 0x245   :  { %v2566_v54 = vpop.f32.mrf.mxu3  ;;  %v2471_v2 = vpop.f32.mrf.mxu1 }
 0x246   :  { %v2517_v60 = vpop.f32.mrf.mxu2  ;;  %v2422_v18 = vpop.f32.mrf.mxu0 }
 0x247   :  { %v2518_v30 = vadd.f32 %v2517_v60, %v2469_v29  ;;  %v2423_v47 = vadd.f32 %v2422_v18, %v5955_v61  ;;  %v5292_v61 = vld [vmem:[#allocation5 + $0x494] sm:$0xf0] }
 0x248   :  { %2666 = vmatmul.bf16.gmra.mxu1 %v5645_v25  ;;  %v4580_v7 = vor.u32 %v5292_v61, %v4579_v3 }
 0x249   :  { %v2567_v34 = vadd.f32 %v2566_v54, %v2518_v30  ;;  %v2472_v31 = vadd.f32 %v2471_v2, %v2423_v47  ;;  %2617 = vmatmul.bf16.gmra.mxu0 %v5643_v24  ;;  %v5388_v54 = vld [vmem:[#allocation5 + $0x794] sm:$0xf0]  ;;  %v4707_v47 = vld [vmem:[#allocation5 + $0x588] sm:$0xf] }
 0x24a   :  { %2764 = vmatmul.bf16.gmra.mxu3 %v5649_v27  ;;  %v4964_v21 = vor.u32 %v5388_v54, %v4963_v33  ;;  %2803 = vmatpush.bf16.msrb.mxu0 %v4580_v7  ;;  %v5324_v2 = vld [vmem:[#allocation5 + $0x594] sm:$0xf0]  ;;  %v4819_v54 = vld [vmem:[#allocation5 + $0x668] sm:$0xf] }
 0x24b   :  { %v3393_v38 = vmax.f32 %v2567_v34, 0.0  ;;  %2715 = vmatmul.bf16.gmra.mxu2 %v5647_v26  ;;  %v4708_v34 = vor.u32 %v5324_v2, %v4707_v47  ;;  %v4563_v7 = vld [vmem:[#allocation5 + $0x468] sm:$0xf] }
 0x24c   :  { %2950 = vmatpush.bf16.msrb.mxu3 %v4964_v21 }
 0x24d   :  { %v6030_v6 = vpack.c.bf16 %v3393_v38, %v3389_v23  ;;  %v2569_v29 = vpop.f32.mrf.mxu3  ;;  %v2473_v0 = vpop.f32.mrf.mxu1  ;;  %2852 = vmatpush.bf16.msrb.mxu1 %v4708_v34 }
 0x24e   :  { %v2520_v30 = vpop.f32.mrf.mxu2  ;;  %v2424_v63 = vpop.f32.mrf.mxu0 }
 0x24f   :  { %6554 = vst [vmem:[#allocation60_spill] sm:$0xff] %v6030_v6  ;;  %v2521_v17 = vadd.f32 %v2520_v30, %v2472_v31  ;;  %v2425_v57 = vadd.f32 %v2424_v63, %v5958_v19  ;;  %v5352_v30 = vld [vmem:[#allocation5 + $0x674] sm:$0xf0] }
 0x250   :  { %v4820_v21 = vor.u32 %v5352_v30, %v4819_v54 }
 0x251   :  { %v2570_v60 = vadd.f32 %v2569_v29, %v2521_v17  ;;  %v2474_v18 = vadd.f32 %v2473_v0, %v2425_v57  ;;  %v5288_v17 = vld [vmem:[#allocation5 + $0x474] sm:$0xf0]  ;;  %v4947_v29 = vld [vmem:[#allocation5 + $0x768] sm:$0xf] }
 0x252   :  { %v4564_v0 = vor.u32 %v5288_v17, %v4563_v7  ;;  %2902 = vmatpush.bf16.msrb.mxu2 %v4820_v21 }
 0x253   :  { %v3397_v19 = vmax.f32 %v2570_v60, 0.0 }
 0x254   :  { %2804 = vmatpush.bf16.msrb.mxu0 %v4564_v0 }
 0x255   :  { %v2571_v58 = vpop.f32.mrf.mxu3  ;;  %v2476_v3 = vpop.f32.mrf.mxu1 }
 0x256   :  { %v2522_v23 = vpop.f32.mrf.mxu2  ;;  %v2427_v62 = vpop.f32.mrf.mxu0 }
 0x257   :  { %v2523_v38 = vadd.f32 %v2522_v23, %v2474_v18  ;;  %v2428_v31 = vadd.f32 %v2427_v62, %v5965_v20  ;;  %v5384_v20 = vld [vmem:[#allocation5 + $0x774] sm:$0xf0]  ;;  %v4691_v62 = vld [vmem:[#allocation5 + $0x568] sm:$0xf] }
 0x258   :  { %2671 = vmatmul.bf16.gmra.mxu1 %v5657_v50  ;;  %v4948_v18 = vor.u32 %v5384_v20, %v4947_v29  ;;  %v4803_v29 = vld [vmem:[#allocation5 + $0x648] sm:$0xf]  ;;  %v5348_v20 = vld [vmem:[#allocation5 + $0x654] sm:$0xf0] }
 0x259   :  { %v2572_v61 = vadd.f32 %v2571_v58, %v2523_v38  ;;  %v2477_v5 = vadd.f32 %v2476_v3, %v2428_v31  ;;  %2622 = vmatmul.bf16.gmra.mxu0 %v5655_v49  ;;  %v5320_v31 = vld [vmem:[#allocation5 + $0x574] sm:$0xf0]  ;;  %v4804_v0 = vor.u32 %v5348_v20, %v4803_v29 }
 0x25a   :  { %2769 = vmatmul.bf16.gmra.mxu3 %v5661_v52  ;;  %v4692_v3 = vor.u32 %v5320_v31, %v4691_v62 }
 0x25b   :  { %v3401_v33 = vmax.f32 %v2572_v61, 0.0  ;;  %2720 = vmatmul.bf16.gmra.mxu2 %v5659_v51  ;;  %2951 = vmatpush.bf16.msrb.mxu3 %v4948_v18  ;;  %v5284_v18 = vld [vmem:[#allocation5 + $0x454] sm:$0xf0] }
 0x25c   :  { %2853 = vmatpush.bf16.msrb.mxu1 %v4692_v3  ;;  %2903 = vmatpush.bf16.msrb.mxu2 %v4804_v0 }
 0x25d   :  { %v6038_v63 = vpack.c.bf16 %v3401_v33, %v3397_v19  ;;  %v2574_v47 = vpop.f32.mrf.mxu3  ;;  %v2478_v23 = vpop.f32.mrf.mxu1 }
 0x25e   :  { %v2525_v57 = vpop.f32.mrf.mxu2  ;;  %v2429_v2 = vpop.f32.mrf.mxu0 }
 0x25f   :  { %6555 = vst [vmem:[#allocation61_spill] sm:$0xff] %v6038_v63  ;;  %v2526_v60 = vadd.f32 %v2525_v57, %v2477_v5  ;;  %v2430_v34 = vadd.f32 %v2429_v2, %v5968_v35  ;;  %v4547_v57 = vld [vmem:[#allocation5 + $0x448] sm:$0xf] }
 0x261   :  { %v2575_v38 = vadd.f32 %v2574_v47, %v2526_v60  ;;  %v2479_v58 = vadd.f32 %v2478_v23, %v2430_v34  ;;  %v4931_v60 = vld [vmem:[#allocation5 + $0x748] sm:$0xf]  ;;  %v4548_v34 = vor.u32 %v5284_v18, %v4547_v57 }
 0x262   :  { %v4787_v18 = vld [vmem:[#allocation5 + $0x628] sm:$0xf] }
 0x263   :  { %v3405_v35 = vmax.f32 %v2575_v38, 0.0  ;;  %2805 = vmatpush.bf16.msrb.mxu0 %v4548_v34  ;;  %v5280_v34 = vld [vmem:[#allocation5 + $0x434] sm:$0xf0] }
 0x265   :  { %v2576_v33 = vpop.f32.mrf.mxu3  ;;  %v2481_v30 = vpop.f32.mrf.mxu1 }
 0x266   :  { %v2527_v61 = vpop.f32.mrf.mxu2  ;;  %v2432_v54 = vpop.f32.mrf.mxu0 }
 0x267   :  { %v2528_v19 = vadd.f32 %v2527_v61, %v2479_v58  ;;  %v2433_v5 = vadd.f32 %v2432_v54, %v5975_v32  ;;  %v5380_v32 = vld [vmem:[#allocation5 + $0x754] sm:$0xf0] }
 0x268   :  { %2676 = vmatmul.bf16.gmra.mxu1 %v5669_v13  ;;  %v4932_v23 = vor.u32 %v5380_v32, %v4931_v60  ;;  %v5316_v54 = vld [vmem:[#allocation5 + $0x554] sm:$0xf0]  ;;  %v4531_v32 = vld [vmem:[#allocation5 + $0x428] sm:$0xf] }
 0x269   :  { %v2577_v7 = vadd.f32 %v2576_v33, %v2528_v19  ;;  %v2482_v21 = vadd.f32 %v2481_v30, %v2433_v5  ;;  %2627 = vmatmul.bf16.gmra.mxu0 %v5667_v12  ;;  %v4675_v33 = vld [vmem:[#allocation5 + $0x548] sm:$0xf]  ;;  %v5344_v60 = vld [vmem:[#allocation5 + $0x634] sm:$0xf0] }
 0x26a   :  { %2774 = vmatmul.bf16.gmra.mxu3 %v5673_v15  ;;  %v4676_v5 = vor.u32 %v5316_v54, %v4675_v33 }
 0x26b   :  { %v3409_v17 = vmax.f32 %v2577_v7, 0.0  ;;  %2725 = vmatmul.bf16.gmra.mxu2 %v5671_v14  ;;  %2952 = vmatpush.bf16.msrb.mxu3 %v4932_v23  ;;  %v4915_v23 = vld [vmem:[#allocation5 + $0x728] sm:$0xf] }
 0x26c   :  { %2854 = vmatpush.bf16.msrb.mxu1 %v4676_v5 }
 0x26d   :  { %v6046_v47 = vpack.c.bf16 %v3409_v17, %v3405_v35  ;;  %v2579_v58 = vpop.f32.mrf.mxu3  ;;  %v2483_v3 = vpop.f32.mrf.mxu1 }
 0x26e   :  { %v2530_v2 = vpop.f32.mrf.mxu2  ;;  %v2434_v62 = vpop.f32.mrf.mxu0 }
 0x26f   :  { %6556 = vst [vmem:[#allocation62_spill] sm:$0xff] %v6046_v47  ;;  %v2531_v38 = vadd.f32 %v2530_v2, %v2482_v21  ;;  %v2435_v31 = vadd.f32 %v2434_v62, %v5978_v36  ;;  %v4788_v2 = vor.u32 %v5344_v60, %v4787_v18  ;;  %v4532_v62 = vor.u32 %v5280_v34, %v4531_v32  ;;  %v5340_v34 = vld [vmem:[#allocation5 + $0x614] sm:$0xf0] }
 0x271   :  { %v2580_v61 = vadd.f32 %v2579_v58, %v2531_v38  ;;  %v2484_v19 = vadd.f32 %v2483_v3, %v2435_v31  ;;  %2904 = vmatpush.bf16.msrb.mxu2 %v4788_v2  ;;  %2806 = vmatpush.bf16.msrb.mxu0 %v4532_v62  ;;  %v4771_v2 = vld [vmem:[#allocation5 + $0x608] sm:$0xf] }
 0x272   :  { %v4899_v62 = vld [vmem:[#allocation5 + $0x708] sm:$0xf] }
 0x273   :  { %v3413_v36 = vmax.f32 %v2580_v61, 0.0 }
 0x275   :  { %v2581_v35 = vpop.f32.mrf.mxu3  ;;  %v2486_v29 = vpop.f32.mrf.mxu1 }
 0x276   :  { %v2532_v30 = vpop.f32.mrf.mxu2  ;;  %v2437_v17 = vpop.f32.mrf.mxu0 }
 0x277   :  { %v2533_v7 = vadd.f32 %v2532_v30, %v2484_v19  ;;  %v2438_v21 = vadd.f32 %v2437_v17, %v5985_v1  ;;  %v5376_v1 = vld [vmem:[#allocation5 + $0x734] sm:$0xf0] }
 0x278   :  { %2681 = vmatmul.bf16.gmra.mxu1 %v5681_v41  ;;  %v4916_v31 = vor.u32 %v5376_v1, %v4915_v23  ;;  %v4515_v23 = vld [vmem:[#allocation5 + $0x408] sm:$0xf]  ;;  %v4772_v1 = vor.u32 %v5340_v34, %v4771_v2 }
 0x279   :  { %v2582_v20 = vadd.f32 %v2581_v35, %v2533_v7  ;;  %v2487_v57 = vadd.f32 %v2486_v29, %v2438_v21  ;;  %2632 = vmatmul.bf16.gmra.mxu0 %v5679_v40  ;;  %v4659_v7 = vld [vmem:[#allocation5 + $0x528] sm:$0xf]  ;;  %v5312_v35 = vld [vmem:[#allocation5 + $0x534] sm:$0xf0] }
 0x27a   :  { %2779 = vmatmul.bf16.gmra.mxu3 %v5685_v43  ;;  %v4660_v17 = vor.u32 %v5312_v35, %v4659_v7  ;;  %2905 = vmatpush.bf16.msrb.mxu2 %v4772_v1  ;;  %v4373_v1 = vld [vmem:[#allocation5 + $0x2f8] sm:$0xf0] }
 0x27b   :  { %v3417_v0 = vmax.f32 %v2582_v20, 0.0  ;;  %2730 = vmatmul.bf16.gmra.mxu2 %v5683_v42  ;;  %2953 = vmatpush.bf16.msrb.mxu3 %v4916_v31 }
 0x27c   :  { %2855 = vmatpush.bf16.msrb.mxu1 %v4660_v17 }
 0x27d   :  { %v6054_v38 = vpack.c.bf16 %v3417_v0, %v3413_v36  ;;  %v2584_v61 = vpop.f32.mrf.mxu3  ;;  %v2488_v54 = vpop.f32.mrf.mxu1 }
 0x27e   :  { %v2535_v58 = vpop.f32.mrf.mxu2  ;;  %v2439_v19 = vpop.f32.mrf.mxu0 }
 0x27f   :  { %6557 = vst [vmem:[#allocation63_spill] sm:$0xff] %v6054_v38  ;;  %v2536_v3 = vadd.f32 %v2535_v58, %v2487_v57  ;;  %v2440_v33 = vadd.f32 %v2439_v19, %v5988_v4  ;;  %v5276_v58 = vld [vmem:[#allocation5 + $0x414] sm:$0xf0] }
 0x281   :  { %v2585_v5 = vadd.f32 %v2584_v61, %v2536_v3  ;;  %v2489_v30 = vadd.f32 %v2488_v54, %v2440_v33  ;;  %v4516_v61 = vor.u32 %v5276_v58, %v4515_v23  ;;  %v5238_v23 = vld [vmem:[#allocation5 + $0x2ec] sm:$0xf] }
 0x282   :  { %v5174_v58 = vld [vmem:[#allocation5 + $0xec] sm:$0xf] }
 0x283   :  { %v3421_v4 = vmax.f32 %v2585_v5, 0.0  ;;  %2807 = vmatpush.bf16.msrb.mxu0 %v4516_v61 }
 0x285   :  { %v2586_v20 = vpop.f32.mrf.mxu3  ;;  %v2491_v0 = vpop.f32.mrf.mxu1 }
 0x286   :  { %v2537_v21 = vpop.f32.mrf.mxu2  ;;  %v2442_v36 = vpop.f32.mrf.mxu0 }
 0x287   :  { %v2538_v29 = vadd.f32 %v2537_v21, %v2489_v30  ;;  %v2443_v57 = vadd.f32 %v2442_v36, %v5995_v39  ;;  %v5372_v39 = vld [vmem:[#allocation5 + $0x714] sm:$0xf0]  ;;  %v4643_v21 = vld [vmem:[#allocation5 + $0x508] sm:$0xf] }
 0x288   :  { %2686 = vmatmul.bf16.gmra.mxu1 %v5693_v9  ;;  %v4900_v19 = vor.u32 %v5372_v39, %v4899_v62  ;;  %v4376_v62 = vor.u32 %v5238_v23, %v4373_v1  ;;  %v4117_v39 = vld [vmem:[#allocation5 + $0xf8] sm:$0xf0]  ;;  %v6560_v1 = vld [vmem:[#allocation19_spill] sm:$0xff] }
 0x289   :  { %v2587_v18 = vadd.f32 %v2586_v20, %v2538_v29  ;;  %v2492_v60 = vadd.f32 %v2491_v0, %v2443_v57  ;;  %2637 = vmatmul.bf16.gmra.mxu0 %v5691_v8  ;;  %v5308_v29 = vld [vmem:[#allocation5 + $0x514] sm:$0xf0] }
 0x28a   :  { %2784 = vmatmul.bf16.gmra.mxu3 %v5697_v11  ;;  %v4644_v20 = vor.u32 %v5308_v29, %v4643_v21  ;;  %3094 = vmatpush.bf16.msra.mxu2 %v4376_v62  ;;  %v5206_v29 = vld [vmem:[#allocation5 + $0x1ec] sm:$0xf]  ;;  %v6562_v62 = vld [vmem:[#allocation21_spill] sm:$0xff] }
 0x28b   :  { %v3425_v32 = vmax.f32 %v2587_v18, 0.0  ;;  %2735 = vmatmul.bf16.gmra.mxu2 %v5695_v10  ;;  %2954 = vmatpush.bf16.msrb.mxu3 %v4900_v19 }
 0x28c   :  { %2856 = vmatpush.bf16.msrb.mxu1 %v4644_v20  ;;  %v4245_v20 = vld [vmem:[#allocation5 + $0x1f8] sm:$0xf0] }
 0x28d   :  { %v6062_v31 = vpack.c.bf16 %v3425_v32, %v3421_v4  ;;  %v2589_v54 = vpop.f32.mrf.mxu3  ;;  %v2493_v7 = vpop.f32.mrf.mxu1 }
 0x28e   :  { %v2540_v3 = vpop.f32.mrf.mxu2  ;;  %v2444_v5 = vpop.f32.mrf.mxu0 }
 0x28f   :  { %6558 = vst [vmem:[#allocation64_spill] sm:$0xff] %v6062_v31  ;;  %v2541_v33 = vadd.f32 %v2540_v3, %v2492_v60  ;;  %v2445_v30 = vadd.f32 %v2444_v5, %v5998_v55  ;;  %v5270_v3 = vld [vmem:[#allocation5 + $0x3ec] sm:$0xf]  ;;  %v4197_v31 = vld [vmem:[#allocation5 + $0x198] sm:$0xf0] }
 0x291   :  { %v2590_v35 = vadd.f32 %v2589_v54, %v2541_v33  ;;  %v2494_v17 = vadd.f32 %v2493_v7, %v2445_v30  ;;  %v4120_v33 = vor.u32 %v5174_v58, %v4117_v39  ;;  %v6561_v58 = vld [vmem:[#allocation20_spill] sm:$0xff] }
 0x292   :  { %v5234_v39 = vld [vmem:[#allocation5 + $0x2cc] sm:$0xf] }
 0x293   :  { %v3429_v55 = vmax.f32 %v2590_v35, 0.0  ;;  %2996 = vmatpush.bf16.msra.mxu0 %v4120_v33  ;;  %v4101_v33 = vld [vmem:[#allocation5 + $0xd8] sm:$0xf0] }
 0x295   :  { %v2591_v0 = vpop.f32.mrf.mxu3  ;;  %v2496_v4 = vpop.f32.mrf.mxu1 }
 0x296   :  { %v2542_v36 = vpop.f32.mrf.mxu2  ;;  %v2447_v18 = vpop.f32.mrf.mxu0 }
 0x297   :  { %v2543_v57 = vadd.f32 %v2542_v36, %v2494_v17  ;;  %v2448_v60 = vadd.f32 %v2447_v18, %v6005_v16  ;;  %v4501_v16 = vld [vmem:[#allocation5 + $0x3f8] sm:$0xf0] }
 0x298   :  { %2691 = vmatmul.bf16.gmra.mxu1 %v5705_v45  ;;  %v4504_v54 = vor.u32 %v5270_v3, %v4501_v16  ;;  %v4357_v3 = vld [vmem:[#allocation5 + $0x2d8] sm:$0xf0]  ;;  %v5170_v16 = vld [vmem:[#allocation5 + $0xcc] sm:$0xf] }
 0x299   :  { %v2592_v32 = vadd.f32 %v2591_v0, %v2543_v57  ;;  %v2497_v2 = vadd.f32 %v2496_v4, %v2448_v60  ;;  %2642 = vmatmul.bf16.gmra.mxu0 %v5703_v44  ;;  %v4248_v57 = vor.u32 %v5206_v29, %v4245_v20 }
 0x29a   :  { %2789 = vmatmul.bf16.gmra.mxu3 %v6514_v37 }
 0x29b   :  { %v3433_v34 = vmax.f32 %v2592_v32, 0.0  ;;  %2740 = vmatmul.bf16.gmra.mxu2 %v5707_v46  ;;  %3143 = vmatpush.bf16.msra.mxu3 %v4504_v54  ;;  %v5266_v54 = vld [vmem:[#allocation5 + $0x3cc] sm:$0xf] }
 0x29c   :  { %3045 = vmatpush.bf16.msra.mxu1 %v4248_v57 }
 0x29d   :  { %v6070_v61 = vpack.c.bf16 %v3433_v34, %v3429_v55  ;;  %v2594_v30 = vpop.f32.mrf.mxu3  ;;  %v2498_v17 = vpop.f32.mrf.mxu1 }
 0x29e   :  { %v2545_v19 = vpop.f32.mrf.mxu2  ;;  %v2449_v7 = vpop.f32.mrf.mxu0 }
 0x29f   :  { %6559 = vst [vmem:[#allocation65_spill] sm:$0xff] %v6070_v61  ;;  %v2546_v5 = vadd.f32 %v2545_v19, %v2497_v2  ;;  %v2450_v35 = vadd.f32 %v2449_v7, %v6008_v22  ;;  %v4360_v19 = vor.u32 %v5234_v39, %v4357_v3  ;;  %v4104_v7 = vor.u32 %v5170_v16, %v4101_v33  ;;  %v5194_v61 = vld [vmem:[#allocation5 + $0x18c] sm:$0xf] }
 0x2a1   :  { %v2595_v21 = vadd.f32 %v2594_v30, %v2546_v5  ;;  %v2499_v36 = vadd.f32 %v2498_v17, %v2450_v35  ;;  %3095 = vmatpush.bf16.msra.mxu2 %v4360_v19  ;;  %2997 = vmatpush.bf16.msra.mxu0 %v4104_v7  ;;  %v6564_v19 = vld [vmem:[#allocation22_spill] sm:$0xff]  ;;  %v6567_v7 = vld [vmem:[#allocation25_spill] sm:$0xff] }
 0x2a3   :  { %v3437_v22 = vmax.f32 %v2595_v21, 0.0 }
 0x2a5   :  { %v2596_v60 = vpop.f32.mrf.mxu3  ;;  %v2501_v2 = vpop.f32.mrf.mxu1 }
 0x2a6   :  { %v2547_v0 = vpop.f32.mrf.mxu2  ;;  %v2452_v4 = vpop.f32.mrf.mxu0 }
 0x2a7   :  { %v2548_v18 = vadd.f32 %v2547_v0, %v2499_v36  ;;  %v2453_v32 = vadd.f32 %v2452_v4, %v6015_v28  ;;  %v4485_v28 = vld [vmem:[#allocation5 + $0x3d8] sm:$0xf0]  ;;  %v5202_v0 = vld [vmem:[#allocation5 + $0x1cc] sm:$0xf] }
 0x2a8   :  { %2696 = vmatmul.bf16.gmra.mxu1 %v6560_v1  ;;  %v4488_v35 = vor.u32 %v5266_v54, %v4485_v28  ;;  %v6565_v28 = vld [vmem:[#allocation23_spill] sm:$0xff] }
 0x2a9   :  { %v2597_v55 = vadd.f32 %v2596_v60, %v2548_v18  ;;  %v2502_v34 = vadd.f32 %v2501_v2, %v2453_v32  ;;  %2647 = vmatmul.bf16.gmra.mxu0 %v6516_v56  ;;  %v4229_v18 = vld [vmem:[#allocation5 + $0x1d8] sm:$0xf0]  ;;  %v5447_v32 = vld [vmem:[#allocation7] sm:$0xf] }
 0x2aa   :  { %2794 = vmatmul.bf16.gmra.mxu3 %v6562_v62  ;;  %v4232_v4 = vor.u32 %v5202_v0, %v4229_v18  ;;  %v6081_v2 = vperm.slane %v5447_v32, 2  ;;  %v4469_v0 = vld [vmem:[#allocation5 + $0x3b8] sm:$0xf0] }
 0x2ab   :  { %v3441_v23 = vmax.f32 %v2597_v55, 0.0  ;;  %2745 = vmatmul.bf16.gmra.mxu2 %v6561_v58  ;;  %3144 = vmatpush.bf16.msra.mxu3 %v4488_v35  ;;  %v5230_v35 = vld [vmem:[#allocation5 + $0x2ac] sm:$0xf]  ;;  %v4741_v62 = vld [vmem:[#allocation5 + $0x5d8] sm:$0xf0] }
 0x2ac   :  { %3046 = vmatpush.bf16.msra.mxu1 %v4232_v4 }
 0x2ad   :  { %v6078_v5 = vpack.c.bf16 %v3441_v23, %v3437_v22  ;;  %v2599_v21 = vpop.f32.mrf.mxu3  ;;  %v2503_v36 = vpop.f32.mrf.mxu1 }
 0x2ae   :  { %v2550_v30 = vpop.f32.mrf.mxu2  ;;  %v2454_v29 = vpop.f32.mrf.mxu0 }
 0x2af   :  { %6563 = vst [vmem:[#allocation19_spill] sm:$0xff] %v6078_v5  ;;  %v2551_v17 = vadd.f32 %v2550_v30, %v2502_v34  ;;  %v2455_v20 = vadd.f32 %v2454_v29, %v6018_v59  ;;  %v6566_v30 = vld [vmem:[#allocation24_spill] sm:$0xff] }
 0x2b1   :  { %v2600_v57 = vadd.f32 %v2599_v21, %v2551_v17  ;;  %v2504_v60 = vadd.f32 %v2503_v36, %v2455_v20  ;;  %v4341_v17 = vld [vmem:[#allocation5 + $0x2b8] sm:$0xf0]  ;;  %v5166_v21 = vld [vmem:[#allocation5 + $0xac] sm:$0xf] }
 0x2b2   :  { %v4344_v29 = vor.u32 %v5230_v35, %v4341_v17  ;;  %v4085_v20 = vld [vmem:[#allocation5 + $0xb8] sm:$0xf0]  ;;  %v5262_v36 = vld [vmem:[#allocation5 + $0x3ac] sm:$0xf] }
 0x2b3   :  { %v3445_v33 = vmax.f32 %v2600_v57, 0.0  ;;  %v4088_v4 = vor.u32 %v5166_v21, %v4085_v20  ;;  %v4472_v32 = vor.u32 %v5262_v36, %v4469_v0 }
 0x2b4   :  { %3096 = vmatpush.bf16.msra.mxu2 %v4344_v29 }
 0x2b5   :  { %v2601_v34 = vpop.f32.mrf.mxu3  ;;  %v2662_v3 = vpop.f32.mrf.mxu1  ;;  %2998 = vmatpush.bf16.msra.mxu0 %v4088_v4  ;;  %3145 = vmatpush.bf16.msra.mxu3 %v4472_v32  ;;  %v6570_v4 = vld [vmem:[#allocation27_spill] sm:$0xff]  ;;  %v6571_v32 = vld [vmem:[#allocation28_spill] sm:$0xff] }
 0x2b6   :  { %v2552_v55 = vpop.f32.mrf.mxu2  ;;  %v2613_v23 = vpop.f32.mrf.mxu0 }
 0x2b7   :  { %v2553_v22 = vadd.f32 %v2552_v55, %v2504_v60  ;;  %v2614_v39 = vadd.f32 %v2613_v23, %v6081_v2 }
 0x2b8   :  { %2857 = vmatmul.bf16.vlgmr.msrb.gmra.mxu1 %v6565_v28 }
 0x2b9   :  { %v2602_v59 = vadd.f32 %v2601_v34, %v2553_v22  ;;  %v2663_v16 = vadd.f32 %v2662_v3, %v2614_v39  ;;  %2808 = vmatmul.bf16.vlgmr.msrb.gmra.mxu0 %v6564_v19  ;;  %v5198_v3 = vld [vmem:[#allocation5 + $0x1ac] sm:$0xf] }
 0x2ba   :  { %2955 = vmatmul.bf16.vlgmr.msrb.gmra.mxu3 %v6567_v7 }
 0x2bb   :  { %v3449_v54 = vmax.f32 %v2602_v59, 0.0  ;;  %2906 = vmatmul.bf16.vlgmr.msrb.gmra.mxu2 %v6566_v30  ;;  %v4213_v59 = vld [vmem:[#allocation5 + $0x1b8] sm:$0xf0] }
 0x2bc   :  { %v4216_v17 = vor.u32 %v5198_v3, %v4213_v59  ;;  %v4069_v3 = vld [vmem:[#allocation5 + $0x98] sm:$0xf0]  ;;  %v5258_v59 = vld [vmem:[#allocation5 + $0x38c] sm:$0xf] }
 0x2bd   :  { %v6088_v18 = vpack.c.bf16 %v3449_v54, %v3445_v33  ;;  %v2760_v55 = vpop.f32.mrf.mxu3  ;;  %v2664_v23 = vpop.f32.mrf.mxu1 }
 0x2be   :  { %v2711_v60 = vpop.f32.mrf.mxu2  ;;  %v2615_v22 = vpop.f32.mrf.mxu0  ;;  %3047 = vmatpush.bf16.msra.mxu1 %v4216_v17 }
 0x2bf   :  { %6568 = vst [vmem:[#allocation66_spill] sm:$0xff] %v6088_v18  ;;  %v2712_v57 = vadd.f32 %v2711_v60, %v2663_v16  ;;  %v2616_v34 = vadd.f32 %v2615_v22, %v6081_v2  ;;  %v6569_v60 = vld [vmem:[#allocation26_spill] sm:$0xff] }
 0x2c0   :  { %v4325_v22 = vld [vmem:[#allocation5 + $0x298] sm:$0xf0] }
 0x2c1   :  { %v6091_v39 = vadd.f32 %v2760_v55, %v2712_v57  ;;  %v2665_v35 = vadd.f32 %v2664_v23, %v2616_v34  ;;  %v6572_v57 = vld [vmem:[#allocation29_spill] sm:$0xff]  ;;  %v5226_v55 = vld [vmem:[#allocation5 + $0x28c] sm:$0xf] }
 0x2c2   :  { %v5162_v34 = vld [vmem:[#allocation5 + $0x8c] sm:$0xf]  ;;  %v4328_v23 = vor.u32 %v5226_v55, %v4325_v22  ;;  %v4200_v22 = vor.u32 %v5194_v61, %v4197_v31  ;;  %v4309_v61 = vld [vmem:[#allocation5 + $0x278] sm:$0xf0] }
 0x2c3   :  { %v5222_v31 = vld [vmem:[#allocation5 + $0x26c] sm:$0xf] }
 0x2c4   :  { %3097 = vmatpush.bf16.msra.mxu2 %v4328_v23  ;;  %3048 = vmatpush.bf16.msra.mxu1 %v4200_v22 }
 0x2c5   :  { %v2762_v21 = vpop.f32.mrf.mxu3  ;;  %v2667_v36 = vpop.f32.mrf.mxu1 }
 0x2c6   :  { %v2713_v33 = vpop.f32.mrf.mxu2  ;;  %v2618_v20 = vpop.f32.mrf.mxu0 }
 0x2c7   :  { %v2714_v54 = vadd.f32 %v2713_v33, %v2665_v35  ;;  %v2619_v16 = vadd.f32 %v2618_v20, %v6081_v2  ;;  %v4453_v35 = vld [vmem:[#allocation5 + $0x398] sm:$0xf0]  ;;  %v4072_v33 = vor.u32 %v5162_v34, %v4069_v3 }
 0x2c8   :  { %2862 = vmatmul.bf16.gmra.mxu1 %v6570_v4 }
 0x2c9   :  { %v6094_v29 = vadd.f32 %v2762_v21, %v2714_v54  ;;  %v2668_v0 = vadd.f32 %v2667_v36, %v2619_v16  ;;  %2813 = vmatmul.bf16.gmra.mxu0 %v6569_v60  ;;  %v4456_v54 = vor.u32 %v5258_v59, %v4453_v35 }
 0x2ca   :  { %2960 = vmatmul.bf16.gmra.mxu3 %v6572_v57  ;;  %2999 = vmatpush.bf16.msra.mxu0 %v4072_v33  ;;  %v6574_v33 = vld [vmem:[#allocation31_spill] sm:$0xff] }
 0x2cb   :  { %2911 = vmatmul.bf16.gmra.mxu2 %v6571_v32  ;;  %3146 = vmatpush.bf16.msra.mxu3 %v4456_v54  ;;  %v6575_v54 = vld [vmem:[#allocation32_spill] sm:$0xff] }
 0x2cd   :  { %v2765_v20 = vpop.f32.mrf.mxu3  ;;  %v2669_v18 = vpop.f32.mrf.mxu1 }
 0x2ce   :  { %v2716_v17 = vpop.f32.mrf.mxu2  ;;  %v2620_v16 = vpop.f32.mrf.mxu0 }
 0x2cf   :  { %v2717_v21 = vadd.f32 %v2716_v17, %v2668_v0  ;;  %v2621_v36 = vadd.f32 %v2620_v16, %v6081_v2  ;;  %v6573_v17 = vld [vmem:[#allocation30_spill] sm:$0xff]  ;;  %v5254_v16 = vld [vmem:[#allocation5 + $0x36c] sm:$0xf] }
 0x2d1   :  { %v6101_v5 = vadd.f32 %v2765_v20, %v2717_v21  ;;  %v2670_v55 = vadd.f32 %v2669_v18, %v2621_v36  ;;  %v6576_v21 = vld [vmem:[#allocation33_spill] sm:$0xff]  ;;  %v5158_v18 = vld [vmem:[#allocation5 + $0x6c] sm:$0xf]  ;;  %v4053_v20 = vld [vmem:[#allocation5 + $0x78] sm:$0xf0] }
 0x2d2   :  { %v4437_v36 = vld [vmem:[#allocation5 + $0x378] sm:$0xf0]  ;;  %v4056_v22 = vor.u32 %v5158_v18, %v4053_v20 }
 0x2d4   :  { %3000 = vmatpush.bf16.msra.mxu0 %v4056_v22  ;;  %v6578_v22 = vld [vmem:[#allocation35_spill] sm:$0xff] }
 0x2d5   :  { %v2767_v34 = vpop.f32.mrf.mxu3  ;;  %v2672_v59 = vpop.f32.mrf.mxu1 }
 0x2d6   :  { %v2718_v38 = vpop.f32.mrf.mxu2  ;;  %v2623_v3 = vpop.f32.mrf.mxu0 }
 0x2d7   :  { %v2719_v47 = vadd.f32 %v2718_v38, %v2670_v55  ;;  %v2624_v0 = vadd.f32 %v2623_v3, %v6081_v2  ;;  %v4312_v38 = vor.u32 %v5222_v31, %v4309_v61 }
 0x2d8   :  { %2867 = vmatmul.bf16.gmra.mxu1 %v6574_v33 }
 0x2d9   :  { %v6104_v23 = vadd.f32 %v2767_v34, %v2719_v47  ;;  %v2673_v35 = vadd.f32 %v2672_v59, %v2624_v0  ;;  %2818 = vmatmul.bf16.gmra.mxu0 %v6573_v17  ;;  %v4440_v47 = vor.u32 %v5254_v16, %v4437_v36  ;;  %3098 = vmatpush.bf16.msra.mxu2 %v4312_v38 }
 0x2da   :  { %2965 = vmatmul.bf16.gmra.mxu3 %v6576_v21  ;;  %v5190_v21 = vld [vmem:[#allocation5 + $0x16c] sm:$0xf] }
 0x2db   :  { %2916 = vmatmul.bf16.gmra.mxu2 %v6575_v54  ;;  %3147 = vmatpush.bf16.msra.mxu3 %v4440_v47  ;;  %v4181_v54 = vld [vmem:[#allocation5 + $0x178] sm:$0xf0]  ;;  %v6579_v47 = vld [vmem:[#allocation36_spill] sm:$0xff] }
 0x2dc   :  { %v4184_v61 = vor.u32 %v5190_v21, %v4181_v54  ;;  %v4293_v54 = vld [vmem:[#allocation5 + $0x258] sm:$0xf0]  ;;  %v5154_v21 = vld [vmem:[#allocation5 + $0x4c] sm:$0xf] }
 0x2dd   :  { %v2770_v3 = vpop.f32.mrf.mxu3  ;;  %v2674_v63 = vpop.f32.mrf.mxu1 }
 0x2de   :  { %v2721_v55 = vpop.f32.mrf.mxu2  ;;  %v2625_v0 = vpop.f32.mrf.mxu0  ;;  %3049 = vmatpush.bf16.msra.mxu1 %v4184_v61 }
 0x2df   :  { %v2722_v34 = vadd.f32 %v2721_v55, %v2673_v35  ;;  %v2626_v59 = vadd.f32 %v2625_v0, %v6081_v2  ;;  %v6577_v55 = vld [vmem:[#allocation34_spill] sm:$0xff]  ;;  %v5250_v0 = vld [vmem:[#allocation5 + $0x34c] sm:$0xf] }
 0x2e1   :  { %v6111_v6 = vadd.f32 %v2770_v3, %v2722_v34  ;;  %v2675_v31 = vadd.f32 %v2674_v63, %v2626_v59  ;;  %v6580_v34 = vld [vmem:[#allocation37_spill] sm:$0xff]  ;;  %v5218_v63 = vld [vmem:[#allocation5 + $0x24c] sm:$0xf]  ;;  %v4037_v3 = vld [vmem:[#allocation5 + $0x58] sm:$0xf0] }
 0x2e2   :  { %v4421_v59 = vld [vmem:[#allocation5 + $0x358] sm:$0xf0]  ;;  %v4040_v61 = vor.u32 %v5154_v21, %v4037_v3 }
 0x2e4   :  { %3001 = vmatpush.bf16.msra.mxu0 %v4040_v61  ;;  %v6582_v61 = vld [vmem:[#allocation39_spill] sm:$0xff] }
 0x2e5   :  { %v2772_v18 = vpop.f32.mrf.mxu3  ;;  %v2677_v16 = vpop.f32.mrf.mxu1 }
 0x2e6   :  { %v2723_v33 = vpop.f32.mrf.mxu2  ;;  %v2628_v20 = vpop.f32.mrf.mxu0 }
 0x2e7   :  { %v2724_v17 = vadd.f32 %v2723_v33, %v2675_v31  ;;  %v2629_v35 = vadd.f32 %v2628_v20, %v6081_v2  ;;  %v4296_v33 = vor.u32 %v5218_v63, %v4293_v54 }
 0x2e8   :  { %2872 = vmatmul.bf16.gmra.mxu1 %v6578_v22 }
 0x2e9   :  { %v6114_v38 = vadd.f32 %v2772_v18, %v2724_v17  ;;  %v2678_v36 = vadd.f32 %v2677_v16, %v2629_v35  ;;  %2823 = vmatmul.bf16.gmra.mxu0 %v6577_v55  ;;  %v4424_v17 = vor.u32 %v5250_v0, %v4421_v59  ;;  %3099 = vmatpush.bf16.msra.mxu2 %v4296_v33  ;;  %v4165_v55 = vld [vmem:[#allocation5 + $0x158] sm:$0xf0] }
 0x2ea   :  { %2970 = vmatmul.bf16.gmra.mxu3 %v6580_v34 }
 0x2eb   :  { %2921 = vmatmul.bf16.gmra.mxu2 %v6579_v47  ;;  %3148 = vmatpush.bf16.msra.mxu3 %v4424_v17  ;;  %v5186_v47 = vld [vmem:[#allocation5 + $0x14c] sm:$0xf] }
 0x2ec   :  { %v4168_v54 = vor.u32 %v5186_v47, %v4165_v55  ;;  %v6583_v17 = vld [vmem:[#allocation40_spill] sm:$0xff] }
 0x2ed   :  { %v2775_v20 = vpop.f32.mrf.mxu3  ;;  %v2679_v22 = vpop.f32.mrf.mxu1  ;;  %v5214_v55 = vld [vmem:[#allocation5 + $0x22c] sm:$0xf] }
 0x2ee   :  { %v2726_v31 = vpop.f32.mrf.mxu2  ;;  %v2630_v35 = vpop.f32.mrf.mxu0  ;;  %3050 = vmatpush.bf16.msra.mxu1 %v4168_v54  ;;  %v5150_v47 = vld [vmem:[#allocation5 + $0x2c] sm:$0xf] }
 0x2ef   :  { %v2727_v18 = vadd.f32 %v2726_v31, %v2678_v36  ;;  %v2631_v16 = vadd.f32 %v2630_v35, %v6081_v2  ;;  %v6581_v31 = vld [vmem:[#allocation38_spill] sm:$0xff]  ;;  %v5246_v35 = vld [vmem:[#allocation5 + $0x32c] sm:$0xf] }
 0x2f1   :  { %v6121_v34 = vadd.f32 %v2775_v20, %v2727_v18  ;;  %v2680_v63 = vadd.f32 %v2679_v22, %v2631_v16  ;;  %v6584_v18 = vld [vmem:[#allocation41_spill] sm:$0xff]  ;;  %v4277_v22 = vld [vmem:[#allocation5 + $0x238] sm:$0xf0] }
 0x2f2   :  { %v4021_v20 = vld [vmem:[#allocation5 + $0x38] sm:$0xf0] }
 0x2f3   :  { %v4405_v16 = vld [vmem:[#allocation5 + $0x338] sm:$0xf0]  ;;  %v4024_v54 = vor.u32 %v5150_v47, %v4021_v20 }
 0x2f5   :  { %v2777_v21 = vpop.f32.mrf.mxu3  ;;  %v2682_v0 = vpop.f32.mrf.mxu1  ;;  %3002 = vmatpush.bf16.msra.mxu0 %v4024_v54  ;;  %v6586_v54 = vld [vmem:[#allocation43_spill] sm:$0xff] }
 0x2f6   :  { %v2728_v57 = vpop.f32.mrf.mxu2  ;;  %v2633_v3 = vpop.f32.mrf.mxu0 }
 0x2f7   :  { %v2729_v32 = vadd.f32 %v2728_v57, %v2680_v63  ;;  %v2634_v36 = vadd.f32 %v2633_v3, %v6081_v2  ;;  %v4280_v57 = vor.u32 %v5214_v55, %v4277_v22 }
 0x2f8   :  { %2877 = vmatmul.bf16.gmra.mxu1 %v6582_v61 }
 0x2f9   :  { %v6124_v33 = vadd.f32 %v2777_v21, %v2729_v32  ;;  %v2683_v59 = vadd.f32 %v2682_v0, %v2634_v36  ;;  %2828 = vmatmul.bf16.gmra.mxu0 %v6581_v31  ;;  %v4408_v32 = vor.u32 %v5246_v35, %v4405_v16  ;;  %3100 = vmatpush.bf16.msra.mxu2 %v4280_v57  ;;  %v4149_v31 = vld [vmem:[#allocation5 + $0x138] sm:$0xf0] }
 0x2fa   :  { %2975 = vmatmul.bf16.gmra.mxu3 %v6584_v18 }
 0x2fb   :  { %2926 = vmatmul.bf16.gmra.mxu2 %v6583_v17  ;;  %3149 = vmatpush.bf16.msra.mxu3 %v4408_v32  ;;  %v5182_v17 = vld [vmem:[#allocation5 + $0x12c] sm:$0xf] }
 0x2fc   :  { %v4152_v22 = vor.u32 %v5182_v17, %v4149_v31  ;;  %v6587_v32 = vld [vmem:[#allocation44_spill] sm:$0xff] }
 0x2fd   :  { %v2780_v3 = vpop.f32.mrf.mxu3  ;;  %v2684_v61 = vpop.f32.mrf.mxu1  ;;  %v5210_v31 = vld [vmem:[#allocation5 + $0x20c] sm:$0xf] }
 0x2fe   :  { %v2731_v63 = vpop.f32.mrf.mxu2  ;;  %v2635_v36 = vpop.f32.mrf.mxu0  ;;  %3051 = vmatpush.bf16.msra.mxu1 %v4152_v22  ;;  %v5146_v17 = vld [vmem:[#allocation5 + $0xc] sm:$0xf] }
 0x2ff   :  { %v2732_v21 = vadd.f32 %v2731_v63, %v2683_v59  ;;  %v2636_v0 = vadd.f32 %v2635_v36, %v6081_v2  ;;  %v6585_v63 = vld [vmem:[#allocation42_spill] sm:$0xff]  ;;  %v5242_v36 = vld [vmem:[#allocation5 + $0x30c] sm:$0xf] }
 0x301   :  { %v6131_v18 = vadd.f32 %v2780_v3, %v2732_v21  ;;  %v2685_v55 = vadd.f32 %v2684_v61, %v2636_v0  ;;  %v6588_v21 = vld [vmem:[#allocation45_spill] sm:$0xff]  ;;  %v4261_v61 = vld [vmem:[#allocation5 + $0x218] sm:$0xf0] }
 0x302   :  { %v4005_v3 = vld [vmem:[#allocation5 + $0x18] sm:$0xf0] }
 0x303   :  { %v4389_v0 = vld [vmem:[#allocation5 + $0x318] sm:$0xf0]  ;;  %v4008_v22 = vor.u32 %v5146_v17, %v4005_v3 }
 0x305   :  { %v2782_v47 = vpop.f32.mrf.mxu3  ;;  %v2687_v35 = vpop.f32.mrf.mxu1  ;;  %3003 = vmatpush.bf16.msra.mxu0 %v4008_v22  ;;  %v6590_v22 = vld [vmem:[#allocation47_spill] sm:$0xff] }
 0x306   :  { %v2733_v4 = vpop.f32.mrf.mxu2  ;;  %v2638_v20 = vpop.f32.mrf.mxu0 }
 0x307   :  { %v2734_v60 = vadd.f32 %v2733_v4, %v2685_v55  ;;  %v2639_v59 = vadd.f32 %v2638_v20, %v6081_v2  ;;  %v4264_v4 = vor.u32 %v5210_v31, %v4261_v61 }
 0x308   :  { %2882 = vmatmul.bf16.gmra.mxu1 %v6586_v54 }
 0x309   :  { %v6134_v57 = vadd.f32 %v2782_v47, %v2734_v60  ;;  %v2688_v16 = vadd.f32 %v2687_v35, %v2639_v59  ;;  %2833 = vmatmul.bf16.gmra.mxu0 %v6585_v63  ;;  %v4392_v60 = vor.u32 %v5242_v36, %v4389_v0  ;;  %3101 = vmatpush.bf16.msra.mxu2 %v4264_v4  ;;  %v4133_v63 = vld [vmem:[#allocation5 + $0x118] sm:$0xf0] }
 0x30a   :  { %2980 = vmatmul.bf16.gmra.mxu3 %v6588_v21 }
 0x30b   :  { %2931 = vmatmul.bf16.gmra.mxu2 %v6587_v32  ;;  %3150 = vmatpush.bf16.msra.mxu3 %v4392_v60  ;;  %v5178_v32 = vld [vmem:[#allocation5 + $0x10c] sm:$0xf] }
 0x30c   :  { %v4136_v61 = vor.u32 %v5178_v32, %v4133_v63  ;;  %v6591_v60 = vld [vmem:[#allocation48_spill] sm:$0xff] }
 0x30d   :  { %v2785_v20 = vpop.f32.mrf.mxu3  ;;  %v2689_v54 = vpop.f32.mrf.mxu1  ;;  %v5366_v63 = vld [vmem:[#allocation5 + $0x6ec] sm:$0xf] }
 0x30e   :  { %v2736_v55 = vpop.f32.mrf.mxu2  ;;  %v2640_v59 = vpop.f32.mrf.mxu0  ;;  %3052 = vmatpush.bf16.msra.mxu1 %v4136_v61  ;;  %v5302_v32 = vld [vmem:[#allocation5 + $0x4ec] sm:$0xf] }
 0x30f   :  { %v2737_v47 = vadd.f32 %v2736_v55, %v2688_v16  ;;  %v2641_v35 = vadd.f32 %v2640_v59, %v6081_v2  ;;  %v6589_v55 = vld [vmem:[#allocation46_spill] sm:$0xff]  ;;  %v5398_v59 = vld [vmem:[#allocation5 + $0x7ec] sm:$0xf] }
 0x311   :  { %v6141_v21 = vadd.f32 %v2785_v20, %v2737_v47  ;;  %v2690_v31 = vadd.f32 %v2689_v54, %v2641_v35  ;;  %v6592_v47 = vld [vmem:[#allocation49_spill] sm:$0xff]  ;;  %v4885_v54 = vld [vmem:[#allocation5 + $0x6f8] sm:$0xf0] }
 0x312   :  { %v4629_v20 = vld [vmem:[#allocation5 + $0x4f8] sm:$0xf0] }
 0x313   :  { %v5013_v35 = vld [vmem:[#allocation5 + $0x7f8] sm:$0xf0]  ;;  %v4632_v61 = vor.u32 %v5302_v32, %v4629_v20 }
 0x315   :  { %v2787_v17 = vpop.f32.mrf.mxu3  ;;  %v2692_v36 = vpop.f32.mrf.mxu1  ;;  %3192 = vmatpush.bf16.msrb.mxu0 %v4632_v61  ;;  %v6594_v61 = vld [vmem:[#allocation51_spill] sm:$0xff] }
 0x316   :  { %v2738_v7 = vpop.f32.mrf.mxu2  ;;  %v2643_v3 = vpop.f32.mrf.mxu0 }
 0x317   :  { %v2739_v30 = vadd.f32 %v2738_v7, %v2690_v31  ;;  %v2644_v16 = vadd.f32 %v2643_v3, %v6081_v2  ;;  %v4888_v7 = vor.u32 %v5366_v63, %v4885_v54  ;;  %v4757_v63 = vld [vmem:[#allocation5 + $0x5f8] sm:$0xf0] }
 0x318   :  { %2887 = vmatmul.bf16.gmra.mxu1 %v6590_v22 }
 0x319   :  { %v6144_v4 = vadd.f32 %v2787_v17, %v2739_v30  ;;  %v2693_v0 = vadd.f32 %v2692_v36, %v2644_v16  ;;  %2838 = vmatmul.bf16.gmra.mxu0 %v6589_v55  ;;  %v5016_v30 = vor.u32 %v5398_v59, %v5013_v35  ;;  %3290 = vmatpush.bf16.msrb.mxu2 %v4888_v7  ;;  %v5334_v55 = vld [vmem:[#allocation5 + $0x5ec] sm:$0xf] }
 0x31a   :  { %2985 = vmatmul.bf16.gmra.mxu3 %v6592_v47  ;;  %v4760_v54 = vor.u32 %v5334_v55, %v4757_v63  ;;  %v5362_v55 = vld [vmem:[#allocation5 + $0x6cc] sm:$0xf]  ;;  %v4997_v63 = vld [vmem:[#allocation5 + $0x7d8] sm:$0xf0] }
 0x31b   :  { %2936 = vmatmul.bf16.gmra.mxu2 %v6591_v60  ;;  %3339 = vmatpush.bf16.msrb.mxu3 %v5016_v30  ;;  %v6595_v30 = vld [vmem:[#allocation52_spill] sm:$0xff] }
 0x31c   :  { %3241 = vmatpush.bf16.msrb.mxu1 %v4760_v54 }
 0x31d   :  { %v2790_v3 = vpop.f32.mrf.mxu3  ;;  %v2694_v22 = vpop.f32.mrf.mxu1 }
 0x31e   :  { %v2741_v31 = vpop.f32.mrf.mxu2  ;;  %v2645_v16 = vpop.f32.mrf.mxu0 }
 0x31f   :  { %v2742_v17 = vadd.f32 %v2741_v31, %v2693_v0  ;;  %v2646_v36 = vadd.f32 %v2645_v16, %v6081_v2  ;;  %v6593_v31 = vld [vmem:[#allocation50_spill] sm:$0xff] }
 0x320   :  { %v4613_v16 = vld [vmem:[#allocation5 + $0x4d8] sm:$0xf0] }
 0x321   :  { %v6151_v47 = vadd.f32 %v2790_v3, %v2742_v17  ;;  %v2695_v60 = vadd.f32 %v2694_v22, %v2646_v36  ;;  %v6596_v22 = vld [vmem:[#allocation53_spill] sm:$0xff]  ;;  %v4869_v17 = vld [vmem:[#allocation5 + $0x6d8] sm:$0xf0]  ;;  %v5298_v3 = vld [vmem:[#allocation5 + $0x4cc] sm:$0xf] }
 0x322   :  { %v5394_v36 = vld [vmem:[#allocation5 + $0x7cc] sm:$0xf] }
 0x325   :  { %v2792_v32 = vpop.f32.mrf.mxu3  ;;  %v2697_v59 = vpop.f32.mrf.mxu1 }
 0x326   :  { %v2743_v28 = vpop.f32.mrf.mxu2  ;;  %v2648_v20 = vpop.f32.mrf.mxu0 }
 0x327   :  { %v2744_v19 = vadd.f32 %v2743_v28, %v2695_v60  ;;  %v2649_v0 = vadd.f32 %v2648_v20, %v6081_v2  ;;  %v4872_v60 = vor.u32 %v5362_v55, %v4869_v17  ;;  %v4616_v20 = vor.u32 %v5298_v3, %v4613_v16 }
 0x328   :  { %2892 = vmatmul.bf16.gmra.mxu1 %v6594_v61 }
 0x329   :  { %v6154_v7 = vadd.f32 %v2792_v32, %v2744_v19  ;;  %v2698_v35 = vadd.f32 %v2697_v59, %v2649_v0  ;;  %2843 = vmatmul.bf16.gmra.mxu0 %v6593_v31  ;;  %v5000_v0 = vor.u32 %v5394_v36, %v4997_v63  ;;  %3291 = vmatpush.bf16.msrb.mxu2 %v4872_v60  ;;  %v5330_v31 = vld [vmem:[#allocation5 + $0x5cc] sm:$0xf]  ;;  %v6597_v60 = vld [vmem:[#allocation15_spill] sm:$0xff] }
 0x32a   :  { %2990 = vmatmul.bf16.gmra.mxu3 %v6596_v22  ;;  %3193 = vmatpush.bf16.msrb.mxu0 %v4616_v20  ;;  %v4744_v55 = vor.u32 %v5330_v31, %v4741_v62  ;;  %v5358_v62 = vld [vmem:[#allocation5 + $0x6ac] sm:$0xf]  ;;  %v4853_v31 = vld [vmem:[#allocation5 + $0x6b8] sm:$0xf0] }
 0x32b   :  { %2941 = vmatmul.bf16.gmra.mxu2 %v6595_v30  ;;  %3340 = vmatpush.bf16.msrb.mxu3 %v5000_v0  ;;  %v5294_v63 = vld [vmem:[#allocation5 + $0x4ac] sm:$0xf] }
 0x32c   :  { %3242 = vmatpush.bf16.msrb.mxu1 %v4744_v55 }
 0x32d   :  { %v2795_v19 = vpop.f32.mrf.mxu3  ;;  %v2699_v61 = vpop.f32.mrf.mxu1 }
 0x32e   :  { %v2746_v28 = vpop.f32.mrf.mxu2  ;;  %v2650_v32 = vpop.f32.mrf.mxu0 }
 0x32f   :  { %v2747_v54 = vadd.f32 %v2746_v28, %v2698_v35  ;;  %v2651_v59 = vadd.f32 %v2650_v32, %v6081_v2  ;;  %v4981_v32 = vld [vmem:[#allocation5 + $0x7b8] sm:$0xf0] }
 0x331   :  { %v6161_v30 = vadd.f32 %v2795_v19, %v2747_v54  ;;  %v2700_v22 = vadd.f32 %v2699_v61, %v2651_v59  ;;  %v6598_v61 = vld [vmem:[#allocation16_spill] sm:$0xff]  ;;  %v4597_v54 = vld [vmem:[#allocation5 + $0x4b8] sm:$0xf0] }
 0x332   :  { %v5390_v19 = vld [vmem:[#allocation5 + $0x7ac] sm:$0xf]  ;;  %v4600_v20 = vor.u32 %v5294_v63, %v4597_v54 }
 0x334   :  { %3194 = vmatpush.bf16.msrb.mxu0 %v4600_v20  ;;  %v5290_v20 = vld [vmem:[#allocation5 + $0x48c] sm:$0xf] }
 0x335   :  { %v2797_v35 = vpop.f32.mrf.mxu3  ;;  %v2858_v16 = vpop.f32.mrf.mxu1 }
 0x336   :  { %v2748_v17 = vpop.f32.mrf.mxu2  ;;  %v2809_v28 = vpop.f32.mrf.mxu0 }
 0x337   :  { %v2749_v58 = vadd.f32 %v2748_v17, %v2700_v22  ;;  %v2810_v3 = vadd.f32 %v2809_v28, %v6091_v39  ;;  %v4856_v22 = vor.u32 %v5358_v62, %v4853_v31  ;;  %v5326_v28 = vld [vmem:[#allocation5 + $0x5ac] sm:$0xf] }
 0x338   :  { %3053 = vmatmul.bf16.vlgmr.msra.gmra.mxu1 %v5633_v53 }
 0x339   :  { %v6164_v36 = vadd.f32 %v2797_v35, %v2749_v58  ;;  %v2859_v2 = vadd.f32 %v2858_v16, %v2810_v3  ;;  %3004 = vmatmul.bf16.vlgmr.msra.gmra.mxu0 %v5631_v48  ;;  %v4984_v58 = vor.u32 %v5390_v19, %v4981_v32  ;;  %3292 = vmatpush.bf16.msrb.mxu2 %v4856_v22  ;;  %v4725_v3 = vld [vmem:[#allocation5 + $0x5b8] sm:$0xf0]  ;;  %v5354_v32 = vld [vmem:[#allocation5 + $0x68c] sm:$0xf] }
 0x33a   :  { %3151 = vmatmul.bf16.vlgmr.msra.gmra.mxu3 %v6598_v61  ;;  %v4728_v16 = vor.u32 %v5326_v28, %v4725_v3 }
 0x33b   :  { %3102 = vmatmul.bf16.vlgmr.msra.gmra.mxu2 %v6597_v60  ;;  %3341 = vmatpush.bf16.msrb.mxu3 %v4984_v58 }
 0x33c   :  { %3243 = vmatpush.bf16.msrb.mxu1 %v4728_v16  ;;  %v5322_v16 = vld [vmem:[#allocation5 + $0x58c] sm:$0xf] }
 0x33d   :  { %v2956_v59 = vpop.f32.mrf.mxu3  ;;  %v2860_v53 = vpop.f32.mrf.mxu1 }
 0x33e   :  { %v2907_v39 = vpop.f32.mrf.mxu2  ;;  %v2811_v55 = vpop.f32.mrf.mxu0 }
 0x33f   :  { %v2908_v0 = vadd.f32 %v2907_v39, %v2859_v2  ;;  %v2812_v48 = vadd.f32 %v2811_v55, %v6094_v29  ;;  %v4837_v39 = vld [vmem:[#allocation5 + $0x698] sm:$0xf0] }
 0x340   :  { %v4965_v55 = vld [vmem:[#allocation5 + $0x798] sm:$0xf0] }
 0x341   :  { %v2957_v17 = vadd.f32 %v2956_v59, %v2908_v0  ;;  %v2861_v35 = vadd.f32 %v2860_v53, %v2812_v48  ;;  %v4840_v0 = vor.u32 %v5354_v32, %v4837_v39  ;;  %v5386_v59 = vld [vmem:[#allocation5 + $0x78c] sm:$0xf] }
 0x342   :  { %v5350_v39 = vld [vmem:[#allocation5 + $0x66c] sm:$0xf] }
 0x343   :  { %v3390_v29 = vmax.f32 %v2957_v17, 0.0  ;;  %3293 = vmatpush.bf16.msrb.mxu2 %v4840_v0  ;;  %v5286_v0 = vld [vmem:[#allocation5 + $0x46c] sm:$0xf] }
 0x345   :  { %v2958_v62 = vpop.f32.mrf.mxu3  ;;  %v2863_v63 = vpop.f32.mrf.mxu1 }
 0x346   :  { %v2909_v60 = vpop.f32.mrf.mxu2  ;;  %v2814_v31 = vpop.f32.mrf.mxu0 }
 0x347   :  { %v2910_v61 = vadd.f32 %v2909_v60, %v2861_v35  ;;  %v2815_v2 = vadd.f32 %v2814_v31, %v6101_v5  ;;  %v4581_v5 = vld [vmem:[#allocation5 + $0x498] sm:$0xf0] }
 0x348   :  { %3058 = vmatmul.bf16.gmra.mxu1 %v5645_v25  ;;  %v4584_v53 = vor.u32 %v5290_v20, %v4581_v5  ;;  %v4709_v60 = vld [vmem:[#allocation5 + $0x598] sm:$0xf0] }
 0x349   :  { %v2959_v54 = vadd.f32 %v2958_v62, %v2910_v61  ;;  %v2864_v22 = vadd.f32 %v2863_v63, %v2815_v2  ;;  %3009 = vmatmul.bf16.gmra.mxu0 %v5643_v24  ;;  %v4968_v24 = vor.u32 %v5386_v59, %v4965_v55  ;;  %v4712_v61 = vor.u32 %v5322_v16, %v4709_v60  ;;  %v4821_v20 = vld [vmem:[#allocation5 + $0x678] sm:$0xf0]  ;;  %v5382_v55 = vld [vmem:[#allocation5 + $0x76c] sm:$0xf] }
 0x34a   :  { %3156 = vmatmul.bf16.gmra.mxu3 %v5649_v27  ;;  %3195 = vmatpush.bf16.msrb.mxu0 %v4584_v53  ;;  %v4824_v5 = vor.u32 %v5350_v39, %v4821_v20  ;;  %v4565_v59 = vld [vmem:[#allocation5 + $0x478] sm:$0xf0]  ;;  %v5378_v20 = vld [vmem:[#allocation5 + $0x74c] sm:$0xf] }
 0x34b   :  { %v3394_v19 = vmax.f32 %v2959_v54, 0.0  ;;  %3107 = vmatmul.bf16.gmra.mxu2 %v5647_v26  ;;  %3342 = vmatpush.bf16.msrb.mxu3 %v4968_v24  ;;  %v4568_v24 = vor.u32 %v5286_v0, %v4565_v59  ;;  %v4549_v39 = vld [vmem:[#allocation5 + $0x458] sm:$0xf0] }
 0x34c   :  { %3244 = vmatpush.bf16.msrb.mxu1 %v4712_v61  ;;  %3294 = vmatpush.bf16.msrb.mxu2 %v4824_v5 }
 0x34d   :  { %v6176_v58 = vpack.c.bf16 %v3394_v19, %v3390_v29  ;;  %v2961_v35 = vpop.f32.mrf.mxu3  ;;  %v2865_v26 = vpop.f32.mrf.mxu1 }
 0x34e   :  { %v2912_v48 = vpop.f32.mrf.mxu2  ;;  %v2816_v28 = vpop.f32.mrf.mxu0  ;;  %3196 = vmatpush.bf16.msrb.mxu0 %v4568_v24 }
 0x34f   :  { %v2913_v17 = vadd.f32 %v2912_v48, %v2864_v22  ;;  %v2817_v25 = vadd.f32 %v2816_v28, %v6104_v23 }
 0x351   :  { %v2962_v27 = vadd.f32 %v2961_v35, %v2913_v17  ;;  %v2866_v3 = vadd.f32 %v2865_v26, %v2817_v25  ;;  %v5318_v26 = vld [vmem:[#allocation5 + $0x56c] sm:$0xf] }
 0x353   :  { %v3398_v23 = vmax.f32 %v2962_v27, 0.0  ;;  %v4693_v27 = vld [vmem:[#allocation5 + $0x578] sm:$0xf0] }
 0x355   :  { %v2963_v2 = vpop.f32.mrf.mxu3  ;;  %v2868_v22 = vpop.f32.mrf.mxu1 }
 0x356   :  { %v2914_v62 = vpop.f32.mrf.mxu2  ;;  %v2819_v63 = vpop.f32.mrf.mxu0 }
 0x357   :  { %v2915_v31 = vadd.f32 %v2914_v62, %v2866_v3  ;;  %v2820_v54 = vadd.f32 %v2819_v63, %v6111_v6  ;;  %v4949_v6 = vld [vmem:[#allocation5 + $0x778] sm:$0xf0]  ;;  %v4696_v3 = vor.u32 %v5318_v26, %v4693_v27 }
 0x358   :  { %3063 = vmatmul.bf16.gmra.mxu1 %v5657_v50 }
 0x359   :  { %v2964_v29 = vadd.f32 %v2963_v2, %v2915_v31  ;;  %v2869_v19 = vadd.f32 %v2868_v22, %v2820_v54  ;;  %3014 = vmatmul.bf16.gmra.mxu0 %v5655_v49  ;;  %v4952_v49 = vor.u32 %v5382_v55, %v4949_v6  ;;  %3245 = vmatpush.bf16.msrb.mxu1 %v4696_v3 }
 0x35a   :  { %3161 = vmatmul.bf16.gmra.mxu3 %v5661_v52 }
 0x35b   :  { %v3402_v32 = vmax.f32 %v2964_v29, 0.0  ;;  %3112 = vmatmul.bf16.gmra.mxu2 %v5659_v51  ;;  %3343 = vmatpush.bf16.msrb.mxu3 %v4952_v49  ;;  %v5346_v29 = vld [vmem:[#allocation5 + $0x64c] sm:$0xf] }
 0x35c   :  { %v5314_v49 = vld [vmem:[#allocation5 + $0x54c] sm:$0xf] }
 0x35d   :  { %v6184_v48 = vpack.c.bf16 %v3402_v32, %v3398_v23  ;;  %v2966_v35 = vpop.f32.mrf.mxu3  ;;  %v2870_v51 = vpop.f32.mrf.mxu1  ;;  %v5282_v23 = vld [vmem:[#allocation5 + $0x44c] sm:$0xf] }
 0x35e   :  { %v2917_v53 = vpop.f32.mrf.mxu2  ;;  %v2821_v28 = vpop.f32.mrf.mxu0  ;;  %v4552_v59 = vor.u32 %v5282_v23, %v4549_v39  ;;  %v5310_v39 = vld [vmem:[#allocation5 + $0x52c] sm:$0xf] }
 0x35f   :  { %v2918_v17 = vadd.f32 %v2917_v53, %v2869_v19  ;;  %v2822_v50 = vadd.f32 %v2821_v28, %v6114_v38  ;;  %v4805_v19 = vld [vmem:[#allocation5 + $0x658] sm:$0xf0] }
 0x360   :  { %v4808_v32 = vor.u32 %v5346_v29, %v4805_v19  ;;  %3197 = vmatpush.bf16.msrb.mxu0 %v4552_v59 }
 0x361   :  { %v2967_v52 = vadd.f32 %v2966_v35, %v2918_v17  ;;  %v2871_v25 = vadd.f32 %v2870_v51, %v2822_v50  ;;  %v4677_v17 = vld [vmem:[#allocation5 + $0x558] sm:$0xf0] }
 0x362   :  { %3295 = vmatpush.bf16.msrb.mxu2 %v4808_v32  ;;  %v4680_v35 = vor.u32 %v5314_v49, %v4677_v17  ;;  %v4773_v49 = vld [vmem:[#allocation5 + $0x618] sm:$0xf0]  ;;  %v5274_v17 = vld [vmem:[#allocation5 + $0x40c] sm:$0xf] }
 0x363   :  { %v3406_v38 = vmax.f32 %v2967_v52, 0.0 }
 0x364   :  { %3246 = vmatpush.bf16.msrb.mxu1 %v4680_v35 }
 0x365   :  { %v2968_v61 = vpop.f32.mrf.mxu3  ;;  %v2873_v2 = vpop.f32.mrf.mxu1 }
 0x366   :  { %v2919_v16 = vpop.f32.mrf.mxu2  ;;  %v2824_v62 = vpop.f32.mrf.mxu0 }
 0x367   :  { %v2920_v60 = vadd.f32 %v2919_v16, %v2871_v25  ;;  %v2825_v31 = vadd.f32 %v2824_v62, %v6121_v34  ;;  %v4933_v34 = vld [vmem:[#allocation5 + $0x758] sm:$0xf0]  ;;  %v5278_v62 = vld [vmem:[#allocation5 + $0x42c] sm:$0xf] }
 0x368   :  { %3068 = vmatmul.bf16.gmra.mxu1 %v5669_v13 }
 0x369   :  { %v2969_v63 = vadd.f32 %v2968_v61, %v2920_v60  ;;  %v2874_v54 = vadd.f32 %v2873_v2, %v2825_v31  ;;  %3019 = vmatmul.bf16.gmra.mxu0 %v5667_v12  ;;  %v4936_v12 = vor.u32 %v5378_v20, %v4933_v34  ;;  %v5342_v60 = vld [vmem:[#allocation5 + $0x62c] sm:$0xf]  ;;  %v4789_v61 = vld [vmem:[#allocation5 + $0x638] sm:$0xf0] }
 0x36a   :  { %3166 = vmatmul.bf16.gmra.mxu3 %v5673_v15  ;;  %v4792_v31 = vor.u32 %v5342_v60, %v4789_v61  ;;  %v4533_v2 = vld [vmem:[#allocation5 + $0x438] sm:$0xf0] }
 0x36b   :  { %v3410_v22 = vmax.f32 %v2969_v63, 0.0  ;;  %3117 = vmatmul.bf16.gmra.mxu2 %v5671_v14  ;;  %3344 = vmatpush.bf16.msrb.mxu3 %v4936_v12  ;;  %v5374_v63 = vld [vmem:[#allocation5 + $0x72c] sm:$0xf]  ;;  %v4661_v20 = vld [vmem:[#allocation5 + $0x538] sm:$0xf0] }
 0x36c   :  { %3296 = vmatpush.bf16.msrb.mxu2 %v4792_v31  ;;  %v4664_v34 = vor.u32 %v5310_v39, %v4661_v20  ;;  %v4645_v60 = vld [vmem:[#allocation5 + $0x518] sm:$0xf0] }
 0x36d   :  { %v6192_v0 = vpack.c.bf16 %v3410_v22, %v3406_v38  ;;  %v2971_v6 = vpop.f32.mrf.mxu3  ;;  %v2875_v14 = vpop.f32.mrf.mxu1  ;;  %v4536_v22 = vor.u32 %v5278_v62, %v4533_v2 }
 0x36e   :  { %v2922_v5 = vpop.f32.mrf.mxu2  ;;  %v2826_v53 = vpop.f32.mrf.mxu0  ;;  %3247 = vmatpush.bf16.msrb.mxu1 %v4664_v34 }
 0x36f   :  { %v2923_v55 = vadd.f32 %v2922_v5, %v2874_v54  ;;  %v2827_v13 = vadd.f32 %v2826_v53, %v6124_v33  ;;  %3198 = vmatpush.bf16.msrb.mxu0 %v4536_v22 }
 0x371   :  { %v2972_v15 = vadd.f32 %v2971_v6, %v2923_v55  ;;  %v2876_v24 = vadd.f32 %v2875_v14, %v2827_v13 }
 0x373   :  { %v3414_v33 = vmax.f32 %v2972_v15, 0.0 }
 0x375   :  { %v2973_v51 = vpop.f32.mrf.mxu3  ;;  %v2878_v26 = vpop.f32.mrf.mxu1 }
 0x376   :  { %v2924_v28 = vpop.f32.mrf.mxu2  ;;  %v2829_v52 = vpop.f32.mrf.mxu0 }
 0x377   :  { %v2925_v50 = vadd.f32 %v2924_v28, %v2876_v24  ;;  %v2830_v25 = vadd.f32 %v2829_v52, %v6131_v18  ;;  %v4917_v18 = vld [vmem:[#allocation5 + $0x738] sm:$0xf0]  ;;  %v5338_v24 = vld [vmem:[#allocation5 + $0x60c] sm:$0xf] }
 0x378   :  { %3073 = vmatmul.bf16.gmra.mxu1 %v5681_v41  ;;  %v4776_v35 = vor.u32 %v5338_v24, %v4773_v49  ;;  %v4517_v28 = vld [vmem:[#allocation5 + $0x418] sm:$0xf0] }
 0x379   :  { %v2974_v27 = vadd.f32 %v2973_v51, %v2925_v50  ;;  %v2879_v3 = vadd.f32 %v2878_v26, %v2830_v25  ;;  %3024 = vmatmul.bf16.gmra.mxu0 %v5679_v40  ;;  %v4920_v40 = vor.u32 %v5374_v63, %v4917_v18  ;;  %v5370_v50 = vld [vmem:[#allocation5 + $0x70c] sm:$0xf]  ;;  %v4520_v25 = vor.u32 %v5274_v17, %v4517_v28  ;;  %v5432_v28 = vld [vmem:[#allocation8 + $0xf8] sm:$0xff] }
 0x37a   :  { %3171 = vmatmul.bf16.gmra.mxu3 %v5685_v43  ;;  %3297 = vmatpush.bf16.msrb.mxu2 %v4776_v35  ;;  %v5408_v35 = vld [vmem:[#allocation8 + $0x38] sm:$0xff] }
 0x37b   :  { %v3418_v16 = vmax.f32 %v2974_v27, 0.0  ;;  %3122 = vmatmul.bf16.gmra.mxu2 %v5683_v42  ;;  %3345 = vmatpush.bf16.msrb.mxu3 %v4920_v40 }
 0x37c   :  { %3199 = vmatpush.bf16.msrb.mxu0 %v4520_v25 }
 0x37d   :  { %v6200_v54 = vpack.c.bf16 %v3418_v16, %v3414_v33  ;;  %v2976_v19 = vpop.f32.mrf.mxu3  ;;  %v2880_v42 = vpop.f32.mrf.mxu1  ;;  %v5306_v16 = vld [vmem:[#allocation5 + $0x50c] sm:$0xf] }
 0x37e   :  { %v2927_v38 = vpop.f32.mrf.mxu2  ;;  %v2831_v23 = vpop.f32.mrf.mxu0  ;;  %v4648_v61 = vor.u32 %v5306_v16, %v4645_v60  ;;  %v6602_v60 = vld [vmem:[#allocation23_spill] sm:$0xff] }
 0x37f   :  { %v2928_v29 = vadd.f32 %v2927_v38, %v2879_v3  ;;  %v2832_v41 = vadd.f32 %v2831_v23, %v6134_v57 }
 0x380   :  { %3248 = vmatpush.bf16.msrb.mxu1 %v4648_v61  ;;  %3744 = vmatpush.bf16.msra.mxu0 %v5408_v35  ;;  %v6603_v61 = vld [vmem:[#allocation24_spill] sm:$0xff] }
 0x381   :  { %v2977_v43 = vadd.f32 %v2976_v19, %v2928_v29  ;;  %v2881_v32 = vadd.f32 %v2880_v42, %v2832_v41 }
 0x383   :  { %v3422_v57 = vmax.f32 %v2977_v43, 0.0 }
 0x385   :  { %v2978_v12 = vpop.f32.mrf.mxu3  ;;  %v2883_v53 = vpop.f32.mrf.mxu1 }
 0x386   :  { %v2929_v5 = vpop.f32.mrf.mxu2  ;;  %v2834_v55 = vpop.f32.mrf.mxu0 }
 0x387   :  { %v2930_v59 = vadd.f32 %v2929_v5, %v2881_v32  ;;  %v2835_v6 = vadd.f32 %v2834_v55, %v6141_v21  ;;  %v4901_v21 = vld [vmem:[#allocation5 + $0x718] sm:$0xf0] }
 0x388   :  { %3078 = vmatmul.bf16.gmra.mxu1 %v5693_v9 }
 0x389   :  { %v2979_v13 = vadd.f32 %v2978_v12, %v2930_v59  ;;  %v2884_v14 = vadd.f32 %v2883_v53, %v2835_v6  ;;  %3029 = vmatmul.bf16.gmra.mxu0 %v5691_v8  ;;  %v4904_v8 = vor.u32 %v5370_v50, %v4901_v21  ;;  %v6599_v53 = vld [vmem:[#allocation20_spill] sm:$0xff]  ;;  %v5448_v21 = vld [vmem:[#allocation7] sm:$0xf] }
 0x38a   :  { %3176 = vmatmul.bf16.gmra.mxu3 %v5697_v11 }
 0x38b   :  { %v3426_v15 = vmax.f32 %v2979_v13, 0.0  ;;  %3127 = vmatmul.bf16.gmra.mxu2 %v5695_v10  ;;  %3346 = vmatpush.bf16.msrb.mxu3 %v4904_v8  ;;  %v5424_v13 = vld [vmem:[#allocation8 + $0xb8] sm:$0xff] }
 0x38c   :  { %3842 = vmatpush.bf16.msra.mxu2 %v5424_v13 }
 0x38d   :  { %v6208_v51 = vpack.c.bf16 %v3426_v15, %v3422_v57  ;;  %v2981_v27 = vpop.f32.mrf.mxu3  ;;  %v2885_v10 = vpop.f32.mrf.mxu1 }
 0x38e   :  { %v2932_v52 = vpop.f32.mrf.mxu2  ;;  %v2836_v3 = vpop.f32.mrf.mxu0 }
 0x38f   :  { %v2933_v26 = vadd.f32 %v2932_v52, %v2884_v14  ;;  %v2837_v9 = vadd.f32 %v2836_v3, %v6144_v4  ;;  %3891 = vmatpush.bf16.msra.mxu3 %v5432_v28  ;;  %v6227_v52 = vperm.slane %v5448_v21, 3 }
 0x391   :  { %v2982_v11 = vadd.f32 %v2981_v27, %v2933_v26  ;;  %v2886_v33 = vadd.f32 %v2885_v10, %v2837_v9 }
 0x393   :  { %v3430_v4 = vmax.f32 %v2982_v11, 0.0  ;;  %v6601_v11 = vld [vmem:[#allocation22_spill] sm:$0xff] }
 0x395   :  { %v2983_v2 = vpop.f32.mrf.mxu3  ;;  %v2888_v38 = vpop.f32.mrf.mxu1 }
 0x396   :  { %v2934_v62 = vpop.f32.mrf.mxu2  ;;  %v2839_v63 = vpop.f32.mrf.mxu0 }
 0x397   :  { %v2935_v31 = vadd.f32 %v2934_v62, %v2886_v33  ;;  %v2840_v18 = vadd.f32 %v2839_v63, %v6151_v47  ;;  %v6604_v62 = vld [vmem:[#allocation25_spill] sm:$0xff] }
 0x398   :  { %3083 = vmatmul.bf16.gmra.mxu1 %v5705_v45 }
 0x399   :  { %v2984_v22 = vadd.f32 %v2983_v2, %v2935_v31  ;;  %v2889_v40 = vadd.f32 %v2888_v38, %v2840_v18  ;;  %3034 = vmatmul.bf16.gmra.mxu0 %v5703_v44  ;;  %v5423_v31 = vld [vmem:[#allocation8 + $0xb0] sm:$0xff] }
 0x39a   :  { %3181 = vmatmul.bf16.gmra.mxu3 %v6514_v37  ;;  %3843 = vmatpush.bf16.msra.mxu2 %v5423_v31 }
 0x39b   :  { %v3434_v29 = vmax.f32 %v2984_v22, 0.0  ;;  %3132 = vmatmul.bf16.gmra.mxu2 %v5707_v46 }
 0x39d   :  { %v6216_v19 = vpack.c.bf16 %v3434_v29, %v3430_v4  ;;  %v2986_v42 = vpop.f32.mrf.mxu3  ;;  %v2890_v32 = vpop.f32.mrf.mxu1 }
 0x39e   :  { %v2937_v23 = vpop.f32.mrf.mxu2  ;;  %v2841_v43 = vpop.f32.mrf.mxu0 }
 0x39f   :  { %v2938_v41 = vadd.f32 %v2937_v23, %v2889_v40  ;;  %v2842_v47 = vadd.f32 %v2841_v43, %v6154_v7  ;;  %v6600_v7 = vld [vmem:[#allocation21_spill] sm:$0xff] }
 0x3a0   :  { %v5407_v23 = vld [vmem:[#allocation8 + $0x30] sm:$0xff] }
 0x3a1   :  { %v2987_v39 = vadd.f32 %v2986_v42, %v2938_v41  ;;  %v2891_v20 = vadd.f32 %v2890_v32, %v2842_v47  ;;  %v5431_v41 = vld [vmem:[#allocation8 + $0xf0] sm:$0xff]  ;;  %3745 = vmatpush.bf16.msra.mxu0 %v5407_v23 }
 0x3a2   :  { %v5415_v43 = vld [vmem:[#allocation8 + $0x70] sm:$0xff]  ;;  %3892 = vmatpush.bf16.msra.mxu3 %v5431_v41 }
 0x3a3   :  { %v3438_v55 = vmax.f32 %v2987_v39, 0.0 }
 0x3a5   :  { %v2988_v5 = vpop.f32.mrf.mxu3  ;;  %v2893_v46 = vpop.f32.mrf.mxu1 }
 0x3a6   :  { %v2939_v44 = vpop.f32.mrf.mxu2  ;;  %v2844_v59 = vpop.f32.mrf.mxu0 }
 0x3a7   :  { %v2940_v34 = vadd.f32 %v2939_v44, %v2891_v20  ;;  %v2845_v45 = vadd.f32 %v2844_v59, %v6161_v30 }
 0x3a8   :  { %3088 = vmatmul.bf16.gmra.mxu1 %v6560_v1  ;;  %v5416_v1 = vld [vmem:[#allocation8 + $0x78] sm:$0xff] }
 0x3a9   :  { %v2989_v12 = vadd.f32 %v2988_v5, %v2940_v34  ;;  %v2894_v37 = vadd.f32 %v2893_v46, %v2845_v45  ;;  %3039 = vmatmul.bf16.gmra.mxu0 %v6516_v56  ;;  %3793 = vmatpush.bf16.msra.mxu1 %v5416_v1  ;;  %v6605_v45 = vld [vmem:[#allocation26_spill] sm:$0xff]  ;;  %v6606_v46 = vld [vmem:[#allocation27_spill] sm:$0xff] }
 0x3aa   :  { %3186 = vmatmul.bf16.gmra.mxu3 %v6600_v7 }
 0x3ab   :  { %v3442_v6 = vmax.f32 %v2989_v12, 0.0  ;;  %3137 = vmatmul.bf16.gmra.mxu2 %v6599_v53  ;;  %v6607_v12 = vld [vmem:[#allocation28_spill] sm:$0xff] }
 0x3ad   :  { %v6224_v14 = vpack.c.bf16 %v3442_v6, %v3438_v55  ;;  %v2991_v30 = vpop.f32.mrf.mxu3  ;;  %v2895_v17 = vpop.f32.mrf.mxu1  ;;  %3794 = vmatpush.bf16.msra.mxu1 %v5415_v43  ;;  %v5422_v55 = vld [vmem:[#allocation8 + $0xa8] sm:$0xff] }
 0x3ae   :  { %v2942_v57 = vpop.f32.mrf.mxu2  ;;  %v2846_v24 = vpop.f32.mrf.mxu0  ;;  %3844 = vmatpush.bf16.msra.mxu2 %v5422_v55 }
 0x3af   :  { %v2943_v15 = vadd.f32 %v2942_v57, %v2894_v37  ;;  %v2847_v49 = vadd.f32 %v2846_v24, %v6164_v36  ;;  %v6608_v37 = vld [vmem:[#allocation29_spill] sm:$0xff]  ;;  %v5406_v24 = vld [vmem:[#allocation8 + $0x28] sm:$0xff] }
 0x3b0   :  { %3746 = vmatpush.bf16.msra.mxu0 %v5406_v24 }
 0x3b1   :  { %v2992_v56 = vadd.f32 %v2991_v30, %v2943_v15  ;;  %v2896_v50 = vadd.f32 %v2895_v17, %v2847_v49  ;;  %v5430_v49 = vld [vmem:[#allocation8 + $0xe8] sm:$0xff] }
 0x3b2   :  { %3893 = vmatpush.bf16.msra.mxu3 %v5430_v49 }
 0x3b3   :  { %v3446_v33 = vmax.f32 %v2992_v56, 0.0  ;;  %v5414_v56 = vld [vmem:[#allocation8 + $0x68] sm:$0xff] }
 0x3b4   :  { %3795 = vmatpush.bf16.msra.mxu1 %v5414_v56 }
 0x3b5   :  { %v2993_v26 = vpop.f32.mrf.mxu3  ;;  %v3054_v9 = vpop.f32.mrf.mxu1 }
 0x3b6   :  { %v2944_v25 = vpop.f32.mrf.mxu2  ;;  %v3005_v27 = vpop.f32.mrf.mxu0 }
 0x3b7   :  { %v2945_v8 = vadd.f32 %v2944_v25, %v2896_v50  ;;  %v3006_v3 = vadd.f32 %v3005_v27, %v6227_v52  ;;  %v6609_v27 = vld [vmem:[#allocation30_spill] sm:$0xff] }
 0x3b8   :  { %3249 = vmatmul.bf16.vlgmr.msrb.gmra.mxu1 %v6602_v60 }
 0x3b9   :  { %v2994_v36 = vadd.f32 %v2993_v26, %v2945_v8  ;;  %v3055_v10 = vadd.f32 %v3054_v9, %v3006_v3  ;;  %3200 = vmatmul.bf16.vlgmr.msrb.gmra.mxu0 %v6601_v11  ;;  %v6610_v3 = vld [vmem:[#allocation31_spill] sm:$0xff]  ;;  %v6611_v9 = vld [vmem:[#allocation32_spill] sm:$0xff] }
 0x3ba   :  { %3347 = vmatmul.bf16.vlgmr.msrb.gmra.mxu3 %v6604_v62 }
 0x3bb   :  { %v3450_v16 = vmax.f32 %v2994_v36, 0.0  ;;  %3298 = vmatmul.bf16.vlgmr.msrb.gmra.mxu2 %v6603_v61  ;;  %v6612_v36 = vld [vmem:[#allocation33_spill] sm:$0xff] }
 0x3bd   :  { %v6234_v2 = vpack.c.bf16 %v3450_v16, %v3446_v33  ;;  %v3152_v38 = vpop.f32.mrf.mxu3  ;;  %v3056_v4 = vpop.f32.mrf.mxu1 }
 0x3be   :  { %v3103_v63 = vpop.f32.mrf.mxu2  ;;  %v3007_v22 = vpop.f32.mrf.mxu0 }
 0x3bf   :  { %v3104_v18 = vadd.f32 %v3103_v63, %v3055_v10  ;;  %v3008_v40 = vadd.f32 %v3007_v22, %v6227_v52  ;;  %v5421_v10 = vld [vmem:[#allocation8 + $0xa0] sm:$0xff] }
 0x3c0   :  { %3845 = vmatpush.bf16.msra.mxu2 %v5421_v10  ;;  %v5405_v63 = vld [vmem:[#allocation8 + $0x20] sm:$0xff] }
 0x3c1   :  { %v6237_v29 = vadd.f32 %v3152_v38, %v3104_v18  ;;  %v3057_v42 = vadd.f32 %v3056_v4, %v3008_v40  ;;  %v5429_v18 = vld [vmem:[#allocation8 + $0xe0] sm:$0xff]  ;;  %3747 = vmatpush.bf16.msra.mxu0 %v5405_v63 }
 0x3c2   :  { %v5413_v22 = vld [vmem:[#allocation8 + $0x60] sm:$0xff]  ;;  %3894 = vmatpush.bf16.msra.mxu3 %v5429_v18  ;;  %v5411_v18 = vld [vmem:[#allocation8 + $0x50] sm:$0xff] }
 0x3c3   :  { %3796 = vmatpush.bf16.msra.mxu1 %v5413_v22 }
 0x3c5   :  { %v3154_v39 = vpop.f32.mrf.mxu3  ;;  %v3059_v34 = vpop.f32.mrf.mxu1 }
 0x3c6   :  { %v3105_v47 = vpop.f32.mrf.mxu2  ;;  %v3010_v20 = vpop.f32.mrf.mxu0 }
 0x3c7   :  { %v3106_v32 = vadd.f32 %v3105_v47, %v3057_v42  ;;  %v3011_v44 = vadd.f32 %v3010_v20, %v6227_v52  ;;  %v6614_v20 = vld [vmem:[#allocation35_spill] sm:$0xff] }
 0x3c8   :  { %3254 = vmatmul.bf16.gmra.mxu1 %v6606_v46 }
 0x3c9   :  { %v6240_v5 = vadd.f32 %v3154_v39, %v3106_v32  ;;  %v3060_v59 = vadd.f32 %v3059_v34, %v3011_v44  ;;  %3205 = vmatmul.bf16.gmra.mxu0 %v6605_v45  ;;  %v6613_v39 = vld [vmem:[#allocation34_spill] sm:$0xff]  ;;  %v6615_v44 = vld [vmem:[#allocation36_spill] sm:$0xff]  ;;  %v6616_v34 = vld [vmem:[#allocation37_spill] sm:$0xff] }
 0x3ca   :  { %3352 = vmatmul.bf16.gmra.mxu3 %v6608_v37 }
 0x3cb   :  { %3303 = vmatmul.bf16.gmra.mxu2 %v6607_v12 }
 0x3cd   :  { %v3157_v7 = vpop.f32.mrf.mxu3  ;;  %v3061_v15 = vpop.f32.mrf.mxu1 }
 0x3ce   :  { %v3108_v6 = vpop.f32.mrf.mxu2  ;;  %v3012_v13 = vpop.f32.mrf.mxu0 }
 0x3cf   :  { %v3109_v53 = vadd.f32 %v3108_v6, %v3060_v59  ;;  %v3013_v57 = vadd.f32 %v3012_v13, %v6227_v52  ;;  %v5420_v59 = vld [vmem:[#allocation8 + $0x98] sm:$0xff] }
 0x3d0   :  { %3846 = vmatpush.bf16.msra.mxu2 %v5420_v59  ;;  %v5428_v13 = vld [vmem:[#allocation8 + $0xd8] sm:$0xff] }
 0x3d1   :  { %v6247_v30 = vadd.f32 %v3157_v7, %v3109_v53  ;;  %v3062_v17 = vadd.f32 %v3061_v15, %v3013_v57  ;;  %v5404_v7 = vld [vmem:[#allocation8 + $0x18] sm:$0xff]  ;;  %3895 = vmatpush.bf16.msra.mxu3 %v5428_v13 }
 0x3d2   :  { %v5412_v15 = vld [vmem:[#allocation8 + $0x58] sm:$0xff]  ;;  %3748 = vmatpush.bf16.msra.mxu0 %v5404_v7  ;;  %v5426_v7 = vld [vmem:[#allocation8 + $0xc8] sm:$0xff] }
 0x3d3   :  { %3797 = vmatpush.bf16.msra.mxu1 %v5412_v15 }
 0x3d5   :  { %v3159_v50 = vpop.f32.mrf.mxu3  ;;  %v3064_v25 = vpop.f32.mrf.mxu1 }
 0x3d6   :  { %v3110_v35 = vpop.f32.mrf.mxu2  ;;  %v3015_v1 = vpop.f32.mrf.mxu0 }
 0x3d7   :  { %v3111_v28 = vadd.f32 %v3110_v35, %v3062_v17  ;;  %v3016_v21 = vadd.f32 %v3015_v1, %v6227_v52  ;;  %3798 = vmatpush.bf16.msra.mxu1 %v5411_v18  ;;  %v5425_v18 = vld [vmem:[#allocation8 + $0xc0] sm:$0xff] }
 0x3d8   :  { %3259 = vmatmul.bf16.gmra.mxu1 %v6610_v3  ;;  %v5419_v3 = vld [vmem:[#allocation8 + $0x90] sm:$0xff] }
 0x3d9   :  { %v6250_v8 = vadd.f32 %v3159_v50, %v3111_v28  ;;  %v3065_v26 = vadd.f32 %v3064_v25, %v3016_v21  ;;  %3210 = vmatmul.bf16.gmra.mxu0 %v6609_v27  ;;  %v6617_v21 = vld [vmem:[#allocation38_spill] sm:$0xff]  ;;  %v6618_v25 = vld [vmem:[#allocation39_spill] sm:$0xff]  ;;  %v6620_v27 = vld [vmem:[#allocation41_spill] sm:$0xff]  ;;  %3847 = vmatpush.bf16.msra.mxu2 %v5419_v3 }
 0x3da   :  { %3357 = vmatmul.bf16.gmra.mxu3 %v6612_v36  ;;  %v6627_v3 = vld [vmem:[#allocation48_spill] sm:$0xff] }
 0x3db   :  { %3308 = vmatmul.bf16.gmra.mxu2 %v6611_v9 }
 0x3dd   :  { %v3162_v16 = vpop.f32.mrf.mxu3  ;;  %v3066_v62 = vpop.f32.mrf.mxu1 }
 0x3de   :  { %v3113_v11 = vpop.f32.mrf.mxu2  ;;  %v3017_v60 = vpop.f32.mrf.mxu0 }
 0x3df   :  { %v3114_v33 = vadd.f32 %v3113_v11, %v3065_v26  ;;  %v3018_v61 = vadd.f32 %v3017_v60, %v6227_v52  ;;  %v6619_v26 = vld [vmem:[#allocation40_spill] sm:$0xff] }
 0x3e1   :  { %v6257_v31 = vadd.f32 %v3162_v16, %v3114_v33  ;;  %v3067_v38 = vadd.f32 %v3066_v62, %v3018_v61  ;;  %v5403_v61 = vld [vmem:[#allocation8 + $0x10] sm:$0xff] }
 0x3e2   :  { %v5427_v62 = vld [vmem:[#allocation8 + $0xd0] sm:$0xff]  ;;  %3749 = vmatpush.bf16.msra.mxu0 %v5403_v61 }
 0x3e3   :  { %3896 = vmatpush.bf16.msra.mxu3 %v5427_v62 }
 0x3e5   :  { %v3164_v23 = vpop.f32.mrf.mxu3  ;;  %v3069_v43 = vpop.f32.mrf.mxu1 }
 0x3e6   :  { %v3115_v40 = vpop.f32.mrf.mxu2  ;;  %v3020_v41 = vpop.f32.mrf.mxu0 }
 0x3e7   :  { %v3116_v4 = vadd.f32 %v3115_v40, %v3067_v38  ;;  %v3021_v42 = vadd.f32 %v3020_v41, %v6227_v52  ;;  %3897 = vmatpush.bf16.msra.mxu3 %v5426_v7 }
 0x3e8   :  { %3264 = vmatmul.bf16.gmra.mxu1 %v6614_v20  ;;  %v6624_v20 = vld [vmem:[#allocation45_spill] sm:$0xff] }
 0x3e9   :  { %v6260_v47 = vadd.f32 %v3164_v23, %v3116_v4  ;;  %v3070_v32 = vadd.f32 %v3069_v43, %v3021_v42  ;;  %3215 = vmatmul.bf16.gmra.mxu0 %v6613_v39  ;;  %v6621_v43 = vld [vmem:[#allocation42_spill] sm:$0xff]  ;;  %v6623_v39 = vld [vmem:[#allocation44_spill] sm:$0xff] }
 0x3ea   :  { %3362 = vmatmul.bf16.gmra.mxu3 %v6616_v34 }
 0x3eb   :  { %3313 = vmatmul.bf16.gmra.mxu2 %v6615_v44  ;;  %v5418_v44 = vld [vmem:[#allocation8 + $0x88] sm:$0xff]  ;;  %3898 = vmatpush.bf16.msra.mxu3 %v5425_v18 }
 0x3ec   :  { %3848 = vmatpush.bf16.msra.mxu2 %v5418_v44  ;;  %v6631_v44 = vld [vmem:[#allocation52_spill] sm:$0xff] }
 0x3ed   :  { %v3167_v12 = vpop.f32.mrf.mxu3  ;;  %v3071_v6 = vpop.f32.mrf.mxu1 }
 0x3ee   :  { %v3118_v45 = vpop.f32.mrf.mxu2  ;;  %v3022_v37 = vpop.f32.mrf.mxu0 }
 0x3ef   :  { %v3119_v46 = vadd.f32 %v3118_v45, %v3070_v32  ;;  %v3023_v55 = vadd.f32 %v3022_v37, %v6227_v52  ;;  %v6622_v32 = vld [vmem:[#allocation43_spill] sm:$0xff] }
 0x3f1   :  { %v6267_v53 = vadd.f32 %v3167_v12, %v3119_v46  ;;  %v3072_v57 = vadd.f32 %v3071_v6, %v3023_v55  ;;  %v5402_v6 = vld [vmem:[#allocation8 + $0x8] sm:$0xff] }
 0x3f2   :  { %3750 = vmatpush.bf16.msra.mxu0 %v5402_v6 }
 0x3f5   :  { %v3169_v17 = vpop.f32.mrf.mxu3  ;;  %v3074_v28 = vpop.f32.mrf.mxu1 }
 0x3f6   :  { %v3120_v24 = vpop.f32.mrf.mxu2  ;;  %v3025_v56 = vpop.f32.mrf.mxu0 }
 0x3f7   :  { %v3121_v49 = vadd.f32 %v3120_v24, %v3072_v57  ;;  %v3026_v35 = vadd.f32 %v3025_v56, %v6227_v52  ;;  %v5410_v57 = vld [vmem:[#allocation8 + $0x48] sm:$0xff]  ;;  %v5401_v56 = vld [vmem:[#allocation8] sm:$0xff] }
 0x3f8   :  { %3269 = vmatmul.bf16.gmra.mxu1 %v6618_v25  ;;  %3751 = vmatpush.bf16.msra.mxu0 %v5401_v56 }
 0x3f9   :  { %v6270_v50 = vadd.f32 %v3169_v17, %v3121_v49  ;;  %v3075_v1 = vadd.f32 %v3074_v28, %v3026_v35  ;;  %3220 = vmatmul.bf16.gmra.mxu0 %v6617_v21  ;;  %3799 = vmatpush.bf16.msra.mxu1 %v5410_v57  ;;  %v5409_v35 = vld [vmem:[#allocation8 + $0x40] sm:$0xff] }
 0x3fa   :  { %3367 = vmatmul.bf16.gmra.mxu3 %v6620_v27  ;;  %v5417_v28 = vld [vmem:[#allocation8 + $0x80] sm:$0xff] }
 0x3fb   :  { %3318 = vmatmul.bf16.gmra.mxu2 %v6619_v26  ;;  %v6625_v26 = vld [vmem:[#allocation46_spill] sm:$0xff]  ;;  %v6626_v27 = vld [vmem:[#allocation47_spill] sm:$0xff] }
 0x3fc   :  { %3849 = vmatpush.bf16.msra.mxu2 %v5417_v28  ;;  %v6633_v28 = vld [vmem:[#allocation54_spill] sm:$0xff] }
 0x3fd   :  { %v3172_v10 = vpop.f32.mrf.mxu3  ;;  %v3076_v16 = vpop.f32.mrf.mxu1  ;;  %3800 = vmatpush.bf16.msra.mxu1 %v5409_v35 }
 0x3fe   :  { %v3123_v9 = vpop.f32.mrf.mxu2  ;;  %v3027_v11 = vpop.f32.mrf.mxu0 }
 0x3ff   :  { %v3124_v36 = vadd.f32 %v3123_v9, %v3075_v1  ;;  %v3028_v33 = vadd.f32 %v3027_v11, %v6227_v52  ;;  %v6628_v9 = vld [vmem:[#allocation49_spill] sm:$0xff] }
 0x401   :  { %v6277_v60 = vadd.f32 %v3172_v10, %v3124_v36  ;;  %v3077_v63 = vadd.f32 %v3076_v16, %v3028_v33 }
 0x405   :  { %v6281_v40 = vpop.f32.mrf.mxu3  ;;  %v3079_v41 = vpop.f32.mrf.mxu1 }
 0x406   :  { %v3125_v38 = vpop.f32.mrf.mxu2  ;;  %v3030_v4 = vpop.f32.mrf.mxu0 }
 0x407   :  { %v6279_v22 = vadd.f32 %v3125_v38, %v3077_v63  ;;  %v3031_v23 = vadd.f32 %v3030_v4, %v6227_v52 }
 0x408   :  { %3274 = vmatmul.bf16.gmra.mxu1 %v6622_v32 }
 0x409   :  { %v3080_v42 = vadd.f32 %v3079_v41, %v3031_v23  ;;  %3225 = vmatmul.bf16.gmra.mxu0 %v6621_v43 }
 0x40a   :  { %3372 = vmatmul.bf16.gmra.mxu3 %v6624_v20  ;;  %v6630_v20 = vld [vmem:[#allocation51_spill] sm:$0xff] }
 0x40b   :  { %3323 = vmatmul.bf16.gmra.mxu2 %v6623_v39  ;;  %v6629_v39 = vld [vmem:[#allocation50_spill] sm:$0xff] }
 0x40d   :  { %v3177_v45 = vpop.f32.mrf.mxu3  ;;  %v3081_v37 = vpop.f32.mrf.mxu1 }
 0x40e   :  { %v3128_v34 = vpop.f32.mrf.mxu2  ;;  %v3032_v46 = vpop.f32.mrf.mxu0 }
 0x40f   :  { %v3129_v59 = vadd.f32 %v3128_v34, %v3080_v42  ;;  %v3033_v12 = vadd.f32 %v3032_v46, %v6227_v52  ;;  %v6632_v34 = vld [vmem:[#allocation53_spill] sm:$0xff] }
 0x411   :  { %v6289_v55 = vadd.f32 %v3177_v45, %v3129_v59  ;;  %v3082_v13 = vadd.f32 %v3081_v37, %v3033_v12 }
 0x415   :  { %v6293_v49 = vpop.f32.mrf.mxu3  ;;  %v3084_v21 = vpop.f32.mrf.mxu1 }
 0x416   :  { %v3130_v15 = vpop.f32.mrf.mxu2  ;;  %v3035_v17 = vpop.f32.mrf.mxu0 }
 0x417   :  { %v6291_v24 = vadd.f32 %v3130_v15, %v3082_v13  ;;  %v3036_v1 = vadd.f32 %v3035_v17, %v6227_v52 }
 0x418   :  { %3279 = vmatmul.bf16.gmra.mxu1 %v6626_v27 }
 0x419   :  { %v3085_v25 = vadd.f32 %v3084_v21, %v3036_v1  ;;  %3230 = vmatmul.bf16.gmra.mxu0 %v6625_v26  ;;  %v6634_v1 = vld [vmem:[#allocation60_spill] sm:$0xff] }
 0x41a   :  { %3377 = vmatmul.bf16.gmra.mxu3 %v6628_v9 }
 0x41b   :  { %3328 = vmatmul.bf16.gmra.mxu2 %v6627_v3 }
 0x41d   :  { %v3182_v11 = vpop.f32.mrf.mxu3  ;;  %v3086_v61 = vpop.f32.mrf.mxu1 }
 0x41e   :  { %v3133_v36 = vpop.f32.mrf.mxu2  ;;  %v3037_v33 = vpop.f32.mrf.mxu0 }
 0x41f   :  { %v3134_v10 = vadd.f32 %v3133_v36, %v3085_v25  ;;  %v3038_v16 = vadd.f32 %v3037_v33, %v6227_v52 }
 0x421   :  { %v6301_v62 = vadd.f32 %v3182_v11, %v3134_v10  ;;  %v3087_v63 = vadd.f32 %v3086_v61, %v3038_v16 }
 0x425   :  { %v6305_v23 = vpop.f32.mrf.mxu3  ;;  %v3089_v43 = vpop.f32.mrf.mxu1 }
 0x426   :  { %v3135_v38 = vpop.f32.mrf.mxu2  ;;  %v3040_v41 = vpop.f32.mrf.mxu0 }
 0x427   :  { %v6303_v4 = vadd.f32 %v3135_v38, %v3087_v63  ;;  %v3041_v42 = vadd.f32 %v3040_v41, %v6227_v52  ;;  %v6635_v41 = vld [vmem:[#allocation55_spill] sm:$0xff] }
 0x428   :  { %3284 = vmatmul.bf16.gmra.mxu1 %v6630_v20 }
 0x429   :  { %v3090_v32 = vadd.f32 %v3089_v43, %v3041_v42  ;;  %3235 = vmatmul.bf16.gmra.mxu0 %v6629_v39  ;;  %v6636_v42 = vld [vmem:[#allocation61_spill] sm:$0xff] }
 0x42a   :  { %3382 = vmatmul.bf16.gmra.mxu3 %v6632_v34 }
 0x42b   :  { %3333 = vmatmul.bf16.gmra.mxu2 %v6631_v44 }
 0x42d   :  { %v3187_v46 = vpop.f32.mrf.mxu3  ;;  %v3091_v6 = vpop.f32.mrf.mxu1 }
 0x42e   :  { %v3138_v59 = vpop.f32.mrf.mxu2  ;;  %v3042_v12 = vpop.f32.mrf.mxu0 }
 0x42f   :  { %v3139_v45 = vadd.f32 %v3138_v59, %v3090_v32  ;;  %v3043_v37 = vadd.f32 %v3042_v12, %v6227_v52 }
 0x431   :  { %v6313_v7 = vadd.f32 %v3187_v46, %v3139_v45  ;;  %v3092_v13 = vadd.f32 %v3091_v6, %v3043_v37 }
 0x435   :  { %v6317_v17 = vpop.f32.mrf.mxu3  ;;  %v3250_v35 = vpop.f32.mrf.mxu1 }
 0x436   :  { %v3140_v57 = vpop.f32.mrf.mxu2  ;;  %v3201_v56 = vpop.f32.mrf.mxu0 }
 0x437   :  { %v6315_v15 = vadd.f32 %v3140_v57, %v3092_v13  ;;  %v3202_v21 = vadd.f32 %v3201_v56, %v6237_v29 }
 0x438   :  { %3801 = vmatmul.bf16.vlgmr.msra.gmra.mxu1 %v6634_v1  ;;  %v6638_v1 = vld [vmem:[#allocation62_spill] sm:$0xff] }
 0x439   :  { %3752 = vmatmul.bf16.vlgmr.msra.gmra.mxu0 %v6633_v28  ;;  %v3251_v3 = vadd.f32 %v3250_v35, %v3202_v21  ;;  %v6637_v35 = vld [vmem:[#allocation56_spill] sm:$0xff] }
 0x43b   :  { %3850 = vmatmul.bf16.vlgmr.msra.gmra.mxu2 %v6176_v58 }
 0x43d   :  { %v3348_v25 = vpop.f32.mrf.mxu3  ;;  %v3252_v27 = vpop.f32.mrf.mxu1 }
 0x43e   :  { %v3299_v52 = vpop.f32.mrf.mxu2  ;;  %v3203_v26 = vpop.f32.mrf.mxu0 }
 0x43f   :  { %v3204_v9 = vadd.f32 %v3203_v26, %v6240_v5  ;;  %v3300_v36 = vadd.f32 %v3299_v52, %v3251_v3 }
 0x441   :  { %v3253_v10 = vadd.f32 %v3252_v27, %v3204_v9  ;;  %v3349_v33 = vadd.f32 %v3348_v25, %v3300_v36 }
 0x443   :  { %v3391_v58 = vmax.f32 %v3349_v33, 0.0 }
 0x445   :  { %v3350_v61 = vpop.f32.mrf.mxu3  ;;  %v3255_v18 = vpop.f32.mrf.mxu1 }
 0x446   :  { %v3301_v11 = vpop.f32.mrf.mxu2  ;;  %v3206_v63 = vpop.f32.mrf.mxu0 }
 0x447   :  { %v3302_v16 = vadd.f32 %v3301_v11, %v3253_v10  ;;  %v3207_v5 = vadd.f32 %v3206_v63, %v6247_v30 }
 0x448   :  { %3806 = vmatmul.bf16.gmra.mxu1 %v6636_v42 }
 0x449   :  { %v3351_v38 = vadd.f32 %v3350_v61, %v3302_v16  ;;  %3757 = vmatmul.bf16.gmra.mxu0 %v6635_v41  ;;  %v3256_v34 = vadd.f32 %v3255_v18, %v3207_v5 }
 0x44b   :  { %v3395_v29 = vmax.f32 %v3351_v38, 0.0  ;;  %3855 = vmatmul.bf16.gmra.mxu2 %v6184_v48  ;;  %v6639_v38 = vld [vmem:[#allocation57_spill] sm:$0xff] }
 0x44d   :  { %v3455_v43 = vpack.c.bf16 %v3395_v29, %v3391_v58  ;;  %v3353_v39 = vpop.f32.mrf.mxu3  ;;  %v3257_v44 = vpop.f32.mrf.mxu1  ;;  %v6640_v58 = vld [vmem:[#allocation63_spill] sm:$0xff] }
 0x44e   :  { %v3304_v32 = vpop.f32.mrf.mxu2  ;;  %v3208_v20 = vpop.f32.mrf.mxu0 }
 0x44f   :  { %3899 = vmatmul.bf16.vlgmr.msra.gmra.mxu3 %v3455_v43  ;;  %v3209_v59 = vadd.f32 %v3208_v20, %v6250_v8  ;;  %v3305_v45 = vadd.f32 %v3304_v32, %v3256_v34 }
 0x451   :  { %v3258_v46 = vadd.f32 %v3257_v44, %v3209_v59  ;;  %v3354_v37 = vadd.f32 %v3353_v39, %v3305_v45 }
 0x453   :  { %v3399_v30 = vmax.f32 %v3354_v37, 0.0 }
 0x455   :  { %v3355_v13 = vpop.f32.mrf.mxu3  ;;  %v3260_v56 = vpop.f32.mrf.mxu1 }
 0x456   :  { %v3306_v12 = vpop.f32.mrf.mxu2  ;;  %v3211_v57 = vpop.f32.mrf.mxu0 }
 0x457   :  { %v3307_v6 = vadd.f32 %v3306_v12, %v3258_v46  ;;  %v3212_v21 = vadd.f32 %v3211_v57, %v6257_v31 }
 0x458   :  { %3811 = vmatmul.bf16.gmra.mxu1 %v6638_v1 }
 0x459   :  { %v3356_v48 = vadd.f32 %v3355_v13, %v3307_v6  ;;  %3762 = vmatmul.bf16.gmra.mxu0 %v6637_v35  ;;  %v3261_v3 = vadd.f32 %v3260_v56, %v3212_v21  ;;  %v6641_v13 = vld [vmem:[#allocation58_spill] sm:$0xff]  ;;  %v6642_v56 = vld [vmem:[#allocation64_spill] sm:$0xff] }
 0x45b   :  { %v3403_v28 = vmax.f32 %v3356_v48, 0.0  ;;  %3860 = vmatmul.bf16.gmra.mxu2 %v6192_v0 }
 0x45d   :  { %v3459_v8 = vpack.c.bf16 %v3403_v28, %v3399_v30  ;;  %v3358_v25 = vpop.f32.mrf.mxu3  ;;  %v3262_v27 = vpop.f32.mrf.mxu1  ;;  %v3175_v30 = vadd.f32 %v6281_v40, %v6279_v22  ;;  %v6644_v22 = vld [vmem:[#allocation65_spill] sm:$0xff] }
 0x45e   :  { %v3309_v52 = vpop.f32.mrf.mxu2  ;;  %v3213_v26 = vpop.f32.mrf.mxu0 }
 0x45f   :  { %3904 = vmatmul.bf16.gmra.mxu3 %v3459_v8  ;;  %v3214_v9 = vadd.f32 %v3213_v26, %v6260_v47  ;;  %v3310_v36 = vadd.f32 %v3309_v52, %v3261_v3 }
 0x461   :  { %v3263_v10 = vadd.f32 %v3262_v27, %v3214_v9  ;;  %v3359_v33 = vadd.f32 %v3358_v25, %v3310_v36 }
 0x463   :  { %v3407_v31 = vmax.f32 %v3359_v33, 0.0 }
 0x465   :  { %v3360_v61 = vpop.f32.mrf.mxu3  ;;  %v3265_v18 = vpop.f32.mrf.mxu1 }
 0x466   :  { %v3311_v11 = vpop.f32.mrf.mxu2  ;;  %v3216_v63 = vpop.f32.mrf.mxu0 }
 0x467   :  { %v3312_v16 = vadd.f32 %v3311_v11, %v3263_v10  ;;  %v3217_v29 = vadd.f32 %v3216_v63, %v6267_v53  ;;  %v6643_v11 = vld [vmem:[#allocation17_spill] sm:$0xff] }
 0x468   :  { %3816 = vmatmul.bf16.gmra.mxu1 %v6640_v58 }
 0x469   :  { %v3361_v0 = vadd.f32 %v3360_v61, %v3312_v16  ;;  %3767 = vmatmul.bf16.gmra.mxu0 %v6639_v38  ;;  %v3266_v39 = vadd.f32 %v3265_v18, %v3217_v29  ;;  %v3180_v18 = vadd.f32 %v6293_v49, %v6291_v24  ;;  %v6646_v24 = vld [vmem:[#allocation19_spill] sm:$0xff] }
 0x46b   :  { %v3411_v41 = vmax.f32 %v3361_v0, 0.0  ;;  %3865 = vmatmul.bf16.gmra.mxu2 %v6200_v54 }
 0x46d   :  { %v3463_v47 = vpack.c.bf16 %v3411_v41, %v3407_v31  ;;  %v3363_v43 = vpop.f32.mrf.mxu3  ;;  %v3267_v32 = vpop.f32.mrf.mxu1 }
 0x46e   :  { %v3314_v42 = vpop.f32.mrf.mxu2  ;;  %v3218_v5 = vpop.f32.mrf.mxu0 }
 0x46f   :  { %3909 = vmatmul.bf16.gmra.mxu3 %v3463_v47  ;;  %v3219_v20 = vadd.f32 %v3218_v5, %v6270_v50  ;;  %v3315_v44 = vadd.f32 %v3314_v42, %v3266_v39 }
 0x471   :  { %v3268_v34 = vadd.f32 %v3267_v32, %v3219_v20  ;;  %v3364_v45 = vadd.f32 %v3363_v43, %v3315_v44 }
 0x473   :  { %v3415_v53 = vmax.f32 %v3364_v45, 0.0 }
 0x475   :  { %v3365_v12 = vpop.f32.mrf.mxu3  ;;  %v3270_v6 = vpop.f32.mrf.mxu1 }
 0x476   :  { %v3316_v59 = vpop.f32.mrf.mxu2  ;;  %v3221_v37 = vpop.f32.mrf.mxu0 }
 0x477   :  { %v3317_v46 = vadd.f32 %v3316_v59, %v3268_v34  ;;  %v3222_v48 = vadd.f32 %v3221_v37, %v6277_v60 }
 0x478   :  { %3821 = vmatmul.bf16.gmra.mxu1 %v6642_v56 }
 0x479   :  { %v3366_v54 = vadd.f32 %v3365_v12, %v3317_v46  ;;  %3772 = vmatmul.bf16.gmra.mxu0 %v6641_v13  ;;  %v3271_v8 = vadd.f32 %v3270_v6, %v3222_v48  ;;  %v3185_v46 = vadd.f32 %v6305_v23, %v6303_v4  ;;  %v6648_v4 = vld [vmem:[#allocation66_spill] sm:$0xff] }
 0x47b   :  { %v3419_v57 = vmax.f32 %v3366_v54, 0.0  ;;  %3870 = vmatmul.bf16.gmra.mxu2 %v6208_v51 }
 0x47d   :  { %v3467_v50 = vpack.c.bf16 %v3419_v57, %v3415_v53  ;;  %v3368_v28 = vpop.f32.mrf.mxu3  ;;  %v3272_v21 = vpop.f32.mrf.mxu1 }
 0x47e   :  { %v3319_v35 = vpop.f32.mrf.mxu2  ;;  %v3223_v1 = vpop.f32.mrf.mxu0 }
 0x47f   :  { %3914 = vmatmul.bf16.gmra.mxu3 %v3467_v50  ;;  %v3224_v52 = vadd.f32 %v3223_v1, %v3175_v30  ;;  %v3320_v25 = vadd.f32 %v3319_v35, %v3271_v8 }
 0x481   :  { %v3273_v26 = vadd.f32 %v3272_v21, %v3224_v52  ;;  %v3369_v3 = vadd.f32 %v3368_v28, %v3320_v25  ;;  %v3190_v25 = vadd.f32 %v6317_v17, %v6315_v15 }
 0x483   :  { %v3423_v33 = vmax.f32 %v3369_v3, 0.0 }
 0x485   :  { %v3370_v36 = vpop.f32.mrf.mxu3  ;;  %v3275_v10 = vpop.f32.mrf.mxu1 }
 0x486   :  { %v3321_v27 = vpop.f32.mrf.mxu2  ;;  %v3226_v51 = vpop.f32.mrf.mxu0 }
 0x487   :  { %v3322_v9 = vadd.f32 %v3321_v27, %v3273_v26  ;;  %v3227_v61 = vadd.f32 %v3226_v51, %v6289_v55  ;;  %v6645_v55 = vld [vmem:[#allocation18_spill] sm:$0xff] }
 0x488   :  { %3826 = vmatmul.bf16.gmra.mxu1 %v6644_v22 }
 0x489   :  { %v3371_v60 = vadd.f32 %v3370_v36, %v3322_v9  ;;  %3777 = vmatmul.bf16.gmra.mxu0 %v6643_v11  ;;  %v3276_v41 = vadd.f32 %v3275_v10, %v3227_v61 }
 0x48b   :  { %v3427_v16 = vmax.f32 %v3371_v60, 0.0  ;;  %3875 = vmatmul.bf16.gmra.mxu2 %v6216_v19 }
 0x48d   :  { %v3471_v40 = vpack.c.bf16 %v3427_v16, %v3423_v33  ;;  %v3373_v0 = vpop.f32.mrf.mxu3  ;;  %v3277_v31 = vpop.f32.mrf.mxu1 }
 0x48e   :  { %v3324_v63 = vpop.f32.mrf.mxu2  ;;  %v3228_v38 = vpop.f32.mrf.mxu0 }
 0x48f   :  { %3919 = vmatmul.bf16.gmra.mxu3 %v3471_v40  ;;  %v3229_v58 = vadd.f32 %v3228_v38, %v3180_v18  ;;  %v3325_v29 = vadd.f32 %v3324_v63, %v3276_v41  ;;  %v6366_v38 = vld [vmem:[%s6391_s4] ss:$0 sm:$0xff] }
 0x491   :  { %v3278_v47 = vadd.f32 %v3277_v31, %v3229_v58  ;;  %v3374_v43 = vadd.f32 %v3373_v0, %v3325_v29 }
 0x493   :  { %v3431_v44 = vmax.f32 %v3374_v43, 0.0 }
 0x495   :  { %v3375_v32 = vpop.f32.mrf.mxu3  ;;  %v3280_v39 = vpop.f32.mrf.mxu1 }
 0x496   :  { %v3326_v42 = vpop.f32.mrf.mxu2  ;;  %v3231_v19 = vpop.f32.mrf.mxu0 }
 0x497   :  { %v3327_v5 = vadd.f32 %v3326_v42, %v3278_v47  ;;  %v3232_v59 = vadd.f32 %v3231_v19, %v6301_v62  ;;  %v6647_v62 = vld [vmem:[#allocation59_spill] sm:$0xff] }
 0x498   :  { %3831 = vmatmul.bf16.gmra.mxu1 %v6646_v24 }
 0x499   :  { %v3376_v20 = vadd.f32 %v3375_v32, %v3327_v5  ;;  %3782 = vmatmul.bf16.gmra.mxu0 %v6645_v55  ;;  %v3281_v54 = vadd.f32 %v3280_v39, %v3232_v59 }
 0x49b   :  { %v3435_v34 = vmax.f32 %v3376_v20, 0.0  ;;  %3880 = vmatmul.bf16.gmra.mxu2 %v6224_v14 }
 0x49d   :  { %v3475_v49 = vpack.c.bf16 %v3435_v34, %v3431_v44  ;;  %v3378_v12 = vpop.f32.mrf.mxu3  ;;  %v3282_v6 = vpop.f32.mrf.mxu1 }
 0x49e   :  { %v3329_v45 = vpop.f32.mrf.mxu2  ;;  %v3233_v37 = vpop.f32.mrf.mxu0 }
 0x49f   :  { %3924 = vmatmul.bf16.gmra.mxu3 %v3475_v49  ;;  %v3234_v13 = vadd.f32 %v3233_v37, %v3185_v46  ;;  %v3330_v53 = vadd.f32 %v3329_v45, %v3281_v54 }
 0x4a1   :  { %v3283_v57 = vadd.f32 %v3282_v6, %v3234_v13  ;;  %v3379_v48 = vadd.f32 %v3378_v12, %v3330_v53 }
 0x4a3   :  { %v3439_v1 = vmax.f32 %v3379_v48, 0.0 }
 0x4a5   :  { %v3380_v35 = vpop.f32.mrf.mxu3  ;;  %v3285_v30 = vpop.f32.mrf.mxu1 }
 0x4a6   :  { %v3331_v56 = vpop.f32.mrf.mxu2  ;;  %v3236_v14 = vpop.f32.mrf.mxu0 }
 0x4a7   :  { %v3332_v50 = vadd.f32 %v3331_v56, %v3283_v57  ;;  %v3237_v8 = vadd.f32 %v3236_v14, %v6313_v7 }
 0x4a8   :  { %3836 = vmatmul.bf16.gmra.mxu1 %v6648_v4 }
 0x4a9   :  { %v3381_v28 = vadd.f32 %v3380_v35, %v3332_v50  ;;  %3787 = vmatmul.bf16.gmra.mxu0 %v6647_v62  ;;  %v3286_v9 = vadd.f32 %v3285_v30, %v3237_v8 }
 0x4ab   :  { %v3443_v21 = vmax.f32 %v3381_v28, 0.0  ;;  %3885 = vmatmul.bf16.gmra.mxu2 %v6234_v2 }
 0x4ad   :  { %v3479_v23 = vpack.c.bf16 %v3443_v21, %v3439_v1  ;;  %v3383_v26 = vpop.f32.mrf.mxu3  ;;  %v3287_v3 = vpop.f32.mrf.mxu1 }
 0x4ae   :  { %v3334_v52 = vpop.f32.mrf.mxu2  ;;  %v3238_v27 = vpop.f32.mrf.mxu0 }
 0x4af   :  { %3929 = vmatmul.bf16.gmra.mxu3 %v3479_v23  ;;  %v3239_v36 = vadd.f32 %v3238_v27, %v3190_v25  ;;  %v3335_v51 = vadd.f32 %v3334_v52, %v3286_v9 }
 0x4b1   :  { %v3288_v10 = vadd.f32 %v3287_v3, %v3239_v36  ;;  %v3384_v11 = vadd.f32 %v3383_v26, %v3335_v51 }
 0x4b3   :  { %v3447_v7 = vmax.f32 %v3384_v11, 0.0 }
 0x4b5   :  { %v3385_v2 = vpop.f32.mrf.mxu3  ;;  %v3802_v22 = vpop.f32.mrf.mxu1 }
 0x4b6   :  { %v3336_v60 = vpop.f32.mrf.mxu2  ;;  %v3753_v16 = vpop.f32.mrf.mxu0 }
 0x4b7   :  { %v3337_v33 = vadd.f32 %v3336_v60, %v3288_v10  ;;  %v3754_v58 = vadd.f32 %v6366_v38, %v3753_v16 }
 0x4b9   :  { %v3386_v40 = vadd.f32 %v3385_v2, %v3337_v33  ;;  %v3803_v47 = vadd.f32 %v3802_v22, %v3754_v58 }
 0x4bb   :  { %v3451_v61 = vmax.f32 %v3386_v40, 0.0 }
 0x4bd   :  { %v3483_v63 = vpack.c.bf16 %v3451_v61, %v3447_v7  ;;  %v3804_v17 = vpop.f32.mrf.mxu1 }
 0x4be   :  { %v3851_v18 = vpop.f32.mrf.mxu2  ;;  %v3755_v15 = vpop.f32.mrf.mxu0 }
 0x4bf   :  { %3934 = vmatmul.bf16.gmra.mxu3 %v3483_v63  ;;  %v3852_v5 = vadd.f32 %v3851_v18, %v3803_v47  ;;  %v3756_v19 = vadd.f32 %v6366_v38, %v3755_v15 }
 0x4c1   :  { %v3805_v44 = vadd.f32 %v3804_v17, %v3756_v19 }
 0x4c5   :  { %v3807_v41 = vpop.f32.mrf.mxu1 }
 0x4c6   :  { %v3853_v0 = vpop.f32.mrf.mxu2  ;;  %v3758_v31 = vpop.f32.mrf.mxu0 }
 0x4c7   :  { %v3854_v49 = vadd.f32 %v3853_v0, %v3805_v44  ;;  %v3759_v45 = vadd.f32 %v6366_v38, %v3758_v31 }
 0x4c9   :  { %v3808_v6 = vadd.f32 %v3807_v41, %v3759_v45 }
 0x4cd   :  { %v3809_v43 = vpop.f32.mrf.mxu1 }
 0x4ce   :  { %v3856_v29 = vpop.f32.mrf.mxu2  ;;  %v3760_v42 = vpop.f32.mrf.mxu0 }
 0x4cf   :  { %v3857_v13 = vadd.f32 %v3856_v29, %v3808_v6  ;;  %v3761_v56 = vadd.f32 %v6366_v38, %v3760_v42 }
 0x4d1   :  { %v3810_v14 = vadd.f32 %v3809_v43, %v3761_v56 }
 0x4d2   :  { %v3900_v32 = vpop.f32.mrf.mxu3 }
 0x4d3   :  { %v3901_v39 = vadd.f32 %v3900_v32, %v3852_v5 }
 0x4d5   :  { %v3940_v20 = vmax.f32 %v3901_v39, 0.0  ;;  %v3812_v24 = vpop.f32.mrf.mxu1 }
 0x4d6   :  { %v3858_v55 = vpop.f32.mrf.mxu2  ;;  %v3763_v34 = vpop.f32.mrf.mxu0 }
 0x4d7   :  { %3956 = vst [vmem:[#allocation10] sm:$0xff] %v3940_v20  ;;  %v3859_v28 = vadd.f32 %v3858_v55, %v3810_v14  ;;  %v3764_v1 = vadd.f32 %v6366_v38, %v3763_v34 }
 0x4d9   :  { %v3813_v52 = vadd.f32 %v3812_v24, %v3764_v1 }
 0x4da   :  { %v3902_v59 = vpop.f32.mrf.mxu3 }
 0x4db   :  { %v3903_v46 = vadd.f32 %v3902_v59, %v3854_v49 }
 0x4dd   :  { %v3941_v12 = vmax.f32 %v3903_v46, 0.0  ;;  %v3814_v53 = vpop.f32.mrf.mxu1 }
 0x4de   :  { %v3861_v37 = vpop.f32.mrf.mxu2  ;;  %v3765_v54 = vpop.f32.mrf.mxu0 }
 0x4df   :  { %3957 = vst [vmem:[#allocation10 + $0x8] sm:$0xff] %v3941_v12  ;;  %v3862_v26 = vadd.f32 %v3861_v37, %v3813_v52  ;;  %v3766_v3 = vadd.f32 %v6366_v38, %v3765_v54 }
 0x4e1   :  { %v3815_v60 = vadd.f32 %v3814_v53, %v3766_v3 }
 0x4e2   :  { %v3905_v57 = vpop.f32.mrf.mxu3 }
 0x4e3   :  { %v3906_v48 = vadd.f32 %v3905_v57, %v3857_v13 }
 0x4e5   :  { %v3942_v50 = vmax.f32 %v3906_v48, 0.0  ;;  %v3817_v21 = vpop.f32.mrf.mxu1 }
 0x4e6   :  { %v3863_v35 = vpop.f32.mrf.mxu2  ;;  %v3768_v30 = vpop.f32.mrf.mxu0 }
 0x4e7   :  { %3958 = vst [vmem:[#allocation10 + $0x10] sm:$0xff] %v3942_v50  ;;  %v3864_v11 = vadd.f32 %v3863_v35, %v3815_v60  ;;  %v3769_v2 = vadd.f32 %v6366_v38, %v3768_v30 }
 0x4e9   :  { %v3818_v7 = vadd.f32 %v3817_v21, %v3769_v2 }
 0x4ea   :  { %v3907_v62 = vpop.f32.mrf.mxu3 }
 0x4eb   :  { %v3908_v4 = vadd.f32 %v3907_v62, %v3859_v28 }
 0x4ed   :  { %v3943_v23 = vmax.f32 %v3908_v4, 0.0  ;;  %v3819_v36 = vpop.f32.mrf.mxu1 }
 0x4ee   :  { %v3866_v8 = vpop.f32.mrf.mxu2  ;;  %v3770_v25 = vpop.f32.mrf.mxu0 }
 0x4ef   :  { %3959 = vst [vmem:[#allocation10 + $0x18] sm:$0xff] %v3943_v23  ;;  %v3867_v18 = vadd.f32 %v3866_v8, %v3818_v7  ;;  %v3771_v17 = vadd.f32 %v6366_v38, %v3770_v25 }
 0x4f1   :  { %v3820_v58 = vadd.f32 %v3819_v36, %v3771_v17 }
 0x4f2   :  { %v3910_v27 = vpop.f32.mrf.mxu3 }
 0x4f3   :  { %v3911_v9 = vadd.f32 %v3910_v27, %v3862_v26 }
 0x4f5   :  { %v3944_v51 = vmax.f32 %v3911_v9, 0.0  ;;  %v3822_v61 = vpop.f32.mrf.mxu1 }
 0x4f6   :  { %v3868_v10 = vpop.f32.mrf.mxu2  ;;  %v3773_v33 = vpop.f32.mrf.mxu0 }
 0x4f7   :  { %3960 = vst [vmem:[#allocation10 + $0x20] sm:$0xff] %v3944_v51  ;;  %v3869_v29 = vadd.f32 %v3868_v10, %v3820_v58  ;;  %v3774_v5 = vadd.f32 %v6366_v38, %v3773_v33 }
 0x4f9   :  { %v3823_v20 = vadd.f32 %v3822_v61, %v3774_v5 }
 0x4fa   :  { %v3912_v16 = vpop.f32.mrf.mxu3 }
 0x4fb   :  { %v3913_v22 = vadd.f32 %v3912_v16, %v3864_v11 }
 0x4fd   :  { %v3945_v40 = vmax.f32 %v3913_v22, 0.0  ;;  %v3824_v47 = vpop.f32.mrf.mxu1 }
 0x4fe   :  { %v3871_v63 = vpop.f32.mrf.mxu2  ;;  %v3775_v31 = vpop.f32.mrf.mxu0 }
 0x4ff   :  { %3961 = vst [vmem:[#allocation10 + $0x28] sm:$0xff] %v3945_v40  ;;  %v3872_v55 = vadd.f32 %v3871_v63, %v3823_v20  ;;  %v3776_v34 = vadd.f32 %v6366_v38, %v3775_v31 }
 0x501   :  { %v3825_v46 = vadd.f32 %v3824_v47, %v3776_v34 }
 0x502   :  { %v3915_v15 = vpop.f32.mrf.mxu3 }
 0x503   :  { %v3916_v0 = vadd.f32 %v3915_v15, %v3867_v18 }
 0x505   :  { %v3946_v41 = vmax.f32 %v3916_v0, 0.0  ;;  %v3827_v24 = vpop.f32.mrf.mxu1 }
 0x506   :  { %v3873_v42 = vpop.f32.mrf.mxu2  ;;  %v3778_v39 = vpop.f32.mrf.mxu0 }
 0x507   :  { %3962 = vst [vmem:[#allocation10 + $0x30] sm:$0xff] %v3946_v41  ;;  %v3874_v37 = vadd.f32 %v3873_v42, %v3825_v46  ;;  %v3779_v54 = vadd.f32 %v6366_v38, %v3778_v39 }
 0x509   :  { %v3828_v48 = vadd.f32 %v3827_v24, %v3779_v54 }
 0x50a   :  { %v3917_v43 = vpop.f32.mrf.mxu3 }
 0x50b   :  { %v3918_v32 = vadd.f32 %v3917_v43, %v3869_v29 }
 0x50d   :  { %v3947_v19 = vmax.f32 %v3918_v32, 0.0  ;;  %v3829_v53 = vpop.f32.mrf.mxu1 }
 0x50e   :  { %v3876_v59 = vpop.f32.mrf.mxu2  ;;  %v3780_v12 = vpop.f32.mrf.mxu0 }
 0x50f   :  { %3963 = vst [vmem:[#allocation10 + $0x38] sm:$0xff] %v3947_v19  ;;  %v3877_v50 = vadd.f32 %v3876_v59, %v3828_v48  ;;  %v3781_v30 = vadd.f32 %v6366_v38, %v3780_v12 }
 0x511   :  { %v3830_v1 = vadd.f32 %v3829_v53, %v3781_v30 }
 0x512   :  { %v3920_v44 = vpop.f32.mrf.mxu3 }
 0x513   :  { %v3921_v49 = vadd.f32 %v3920_v44, %v3872_v55 }
 0x515   :  { %v3948_v45 = vmax.f32 %v3921_v49, 0.0  ;;  %v3832_v21 = vpop.f32.mrf.mxu1 }
 0x516   :  { %v3878_v56 = vpop.f32.mrf.mxu2  ;;  %v3783_v35 = vpop.f32.mrf.mxu0 }
 0x517   :  { %3964 = vst [vmem:[#allocation10 + $0x40] sm:$0xff] %v3948_v45  ;;  %v3879_v23 = vadd.f32 %v3878_v56, %v3830_v1  ;;  %v3784_v52 = vadd.f32 %v6366_v38, %v3783_v35 }
 0x519   :  { %v3833_v3 = vadd.f32 %v3832_v21, %v3784_v52 }
 0x51a   :  { %v3922_v6 = vpop.f32.mrf.mxu3 }
 0x51b   :  { %v3923_v13 = vadd.f32 %v3922_v6, %v3874_v37 }
 0x51d   :  { %v3949_v57 = vmax.f32 %v3923_v13, 0.0  ;;  %v3834_v36 = vpop.f32.mrf.mxu1 }
 0x51e   :  { %v3881_v4 = vpop.f32.mrf.mxu2  ;;  %v3785_v26 = vpop.f32.mrf.mxu0 }
 0x51f   :  { %3965 = vst [vmem:[#allocation10 + $0x48] sm:$0xff] %v3949_v57  ;;  %v3882_v9 = vadd.f32 %v3881_v4, %v3833_v3  ;;  %v3786_v60 = vadd.f32 %v6366_v38, %v3785_v26 }
 0x521   :  { %v3835_v2 = vadd.f32 %v3834_v36, %v3786_v60 }
 0x522   :  { %v3925_v14 = vpop.f32.mrf.mxu3 }
 0x523   :  { %v3926_v28 = vadd.f32 %v3925_v14, %v3877_v50 }
 0x525   :  { %v3950_v62 = vmax.f32 %v3926_v28, 0.0  ;;  %v3837_v63 = vpop.f32.mrf.mxu1 }
 0x526   :  { %v3883_v51 = vpop.f32.mrf.mxu2  ;;  %v3788_v16 = vpop.f32.mrf.mxu0 }
 0x527   :  { %3966 = vst [vmem:[#allocation10 + $0x50] sm:$0xff] %v3950_v62  ;;  %v3884_v22 = vadd.f32 %v3883_v51, %v3835_v2  ;;  %v3789_v7 = vadd.f32 %v6366_v38, %v3788_v16 }
 0x529   :  { %v3838_v17 = vadd.f32 %v3837_v63, %v3789_v7 }
 0x52a   :  { %v3927_v8 = vpop.f32.mrf.mxu3 }
 0x52b   :  { %v3928_v25 = vadd.f32 %v3927_v8, %v3879_v23 }
 0x52d   :  { %v3951_v27 = vmax.f32 %v3928_v25, 0.0  ;;  %v3839_v42 = vpop.f32.mrf.mxu1 }
 0x52e   :  { %v3886_v18 = vpop.f32.mrf.mxu2  ;;  %v3790_v0 = vpop.f32.mrf.mxu0 }
 0x52f   :  { %3967 = vst [vmem:[#allocation10 + $0x58] sm:$0xff] %v3951_v27  ;;  %v3887_v31 = vadd.f32 %v3886_v18, %v3838_v17  ;;  %v3791_v58 = vadd.f32 %v6366_v38, %v3790_v0 }
 0x531   :  { %v3840_v5 = vadd.f32 %v3839_v42, %v3791_v58 }
 0x532   :  { %v3930_v10 = vpop.f32.mrf.mxu3 }
 0x533   :  { %v3931_v11 = vadd.f32 %v3930_v10, %v3882_v9 }
 0x535   :  { %v3952_v33 = vmax.f32 %v3931_v11, 0.0 }
 0x536   :  { %v3888_v43 = vpop.f32.mrf.mxu2 }
 0x537   :  { %3968 = vst [vmem:[#allocation10 + $0x60] sm:$0xff] %v3952_v33  ;;  %v3889_v32 = vadd.f32 %v3888_v43, %v3840_v5 }
 0x53a   :  { %v3932_v40 = vpop.f32.mrf.mxu3 }
 0x53b   :  { %v3933_v61 = vadd.f32 %v3932_v40, %v3884_v22 }
 0x53d   :  { %v3953_v15 = vmax.f32 %v3933_v61, 0.0 }
 0x53f   :  { %3969 = vst [vmem:[#allocation10 + $0x68] sm:$0xff] %v3953_v15 }
 0x542   :  { %v3935_v41 = vpop.f32.mrf.mxu3 }
 0x543   :  { %v3936_v29 = vadd.f32 %v3935_v41, %v3887_v31 }
 0x545   :  { %v3954_v47 = vmax.f32 %v3936_v29, 0.0 }
 0x547   :  { %3970 = vst [vmem:[#allocation10 + $0x70] sm:$0xff] %v3954_v47 }
 0x54a   :  { %v3937_v19 = vpop.f32.mrf.mxu3 }
 0x54b   :  { %v3938_v39 = vadd.f32 %v3937_v19, %v3889_v32 }
 0x54d   :  { %v3955_v20 = vmax.f32 %v3938_v39, 0.0 }
 0x54f   :  { %3971 = vst [vmem:[#allocation10 + $0x78] sm:$0xff] %v3955_v20 }
 0x550   :  { %3975 = vsyncadd [#allocation4], 1920  ;;  %s3978_s17 = sshll.u32 %s6392_s5, 4  ;;  %s5586_s18 = smov [#allocation10]   ;;  %s3979_s17 = int_to_ptr.hbm [resolvable:$true] %s3978_s17 }
 0x551   :  { %s3976_s19 = sshll.u32 %s5586_s18, 4  ;;  %s5587_s20 = smov 128   ;;  %s3977_s19 = int_to_ptr.vmem [resolvable:$true] %s3976_s19 }
 0x552   :  { %s5588_s21 = smov 8  }
 0x553   :  { %3984 = dma.vmem_to_hbm [thread:$0]  %s3977_s19, 128, %s3979_s17, [#allocation4], %s5587_s20, %s5587_s20, %s5588_s21  }
 0x554   :  { %5575 = dma.done.wait [#allocation4], 2048  }
 0x555   :  { %5576 = vsyncadd [#allocation4], 4294965248 }
 0x556   :  { %3989 = vsyncpa [#allocation3], 1 }
 0x557   :  { %3990 = vsyncpa [#allocation6], 1 }
 0x558   :  { %3991 = vsyncpa [#allocation9], 1 }
 0x559   :  { %3992 = vsyncpa [#allocation4], 1 }

</bundles_post_ra>
